<compile_context>
chip_gen: v7x
topology: tpu7x:2x2x1
jax: 0.10.0
libtpu: 0.0.40
codegen_flags: <defaults>
</compile_context>

<pallas_src>
import functools

import jax
import jax.numpy as jnp
from jax import lax
from jax.experimental import pallas as pl
from jax.experimental.pallas import tpu as pltpu


DIM_SCALE = 4          # fixed by the module (p1 = p2 = 4, 16x channel expand)
LN_EPS = 1e-5          # torch.nn.LayerNorm default
STAT_W = 128           # lane width of the chunk-statistics matrices (>= 16)


def _expand_norm_kernel(x_ref, w_ref, savg_ref, sbc_ref, g_ref, b_ref, o_ref,
                        *, w_tokens, rows_per_step, four_d):
    """Fused Linear(D -> 16D, no bias) + per-c-chunk LayerNorm + scatter.

    x_ref:    (tm, D)        token tile, tm = rows_per_step * W
    w_ref:    (D, 16D)       expand weight (transposed vs. torch layout)
    savg_ref: (16D, 128)     block-diagonal chunk-averaging matrix (1/D entries)
    sbc_ref:  (128, 16D)     chunk -> lanes broadcast matrix (0/1 entries)
    g_ref:    (1, 16D)       LayerNorm gamma, pre-tiled 16x
    b_ref:    (1, 16D)       LayerNorm beta, pre-tiled 16x
    o_ref:    (4*rows, W, 4D) output block, row-major == final tensor order
    """
    f32 = jnp.float32

    # MXU matmul, f32 accumulation. y columns are laid out as (p1, p2, c).
    y = jnp.dot(x_ref[...], w_ref[...], preferred_element_type=f32)      # (tm, 16D)

    # Per-chunk (length-D) LayerNorm stats, kept lane-dense via small matmuls
    # (avoids (tm, 16, D) reshapes / relayouts; work lands on the idle MXU).
    mean_c = jnp.dot(y, savg_ref[...], preferred_element_type=f32)       # (tm, 128)
    mean = jnp.dot(mean_c, sbc_ref[...], preferred_element_type=f32)     # (tm, 16D)
    centered = y - mean
    var_c = jnp.dot(centered * centered, savg_ref[...],
                    preferred_element_type=f32)                          # (tm, 128)
    inv_c = lax.rsqrt(var_c + LN_EPS)                                    # (tm, 128)
    inv = jnp.dot(inv_c, sbc_ref[...], preferred_element_type=f32)       # (tm, 16D)

    normed = centered * inv * g_ref[...] + b_ref[...]
    out_vals = normed.astype(o_ref.dtype)

    # Scatter feature chunks to their spatial rows: token (row r, col w),
    # chunk p1 -> output row 4*r + p1, spatial col w, lanes (p2*D + c).
    # Pure 2-D slices of the matmul result; no transpose / reshape needed.
    for r in range(rows_per_step):
        row0 = r * w_tokens
        for p1 in range(DIM_SCALE):
            o_ref[DIM_SCALE * r + p1, :, :] = out_vals[
                row0:row0 + w_tokens, p1 * four_d:(p1 + 1) * four_d]


def _rows_per_step(total_rows, w, target_tokens, max_unrolled_rows=64):
    """Pick image-rows-per-grid-step: big tiles, >= 2 grid steps, tm % 8 == 0."""
    max_rows = max(1, min(target_tokens // max(w, 1), max_unrolled_rows))
    divisors = [d for d in range(1, total_rows + 1) if total_rows % d == 0]
    ok = [d for d in divisors if (d * w) % 8 == 0 or d == total_rows]
    if not ok:
        ok = [total_rows]
    cands = [d for d in ok if d <= max_rows and total_rows // d >= 2]
    if not cands:
        cands = [d for d in ok if d <= max_rows]
    if not cands:
        cands = [min(ok)]
    return max(cands)


def final_patch_expand_x4(x, w_expand, gamma, beta, input_resolution, *,
                          target_tokens_per_step=512, out_dtype=None):
    """x: (B, T, N, D); returns (B, T, 4H, 4W, D)."""
    H, W = input_resolution
    B, T, N, D = x.shape
    assert N == H * W, "input feature has wrong size"
    P2 = DIM_SCALE * DIM_SCALE          # 16
    E = P2 * D                          # 16*D
    four_d = DIM_SCALE * D              # 4*D
    assert w_expand.shape == (D, E)
    if out_dtype is None:
        out_dtype = x.dtype

    total_rows = B * T * H              # number of (b, t, h) image rows
    R = _rows_per_step(total_rows, W, target_tokens_per_step)
    tm = R * W
    grid = total_rows // R

    x_flat = x.reshape(total_rows * W, D)

    f32 = jnp.float32
    # Chunk-averaging / chunk-broadcast matrices (block diagonal, small).
    chunk_id = jnp.arange(E, dtype=jnp.int32) // D                    # (16D,)
    sel = (chunk_id[:, None] == jnp.arange(STAT_W, dtype=jnp.int32)[None, :])
    sel = sel.astype(f32)                                             # (16D, 128)
    s_avg = sel * (1.0 / D)                                           # (16D, 128)
    s_bcast = jnp.transpose(sel)                                      # (128, 16D)
    # Gamma/beta pre-tiled to the lane-dense (1, 16D) layout.
    g_tiled = jnp.tile(gamma.astype(f32).reshape(1, D), (1, P2))
    b_tiled = jnp.tile(beta.astype(f32).reshape(1, D), (1, P2))

    kernel = functools.partial(_expand_norm_kernel, w_tokens=W,
                               rows_per_step=R, four_d=four_d)

    # NOTE(v7x / large D): for D >= 256 consider bf16 weights, a second grid
    # axis over 16D output columns, and pltpu.CompilerParams(vmem_limit_bytes=...)
    # so the grid-invariant weight block fits the 64 MiB VMEM budget.
    out_flat = pl.pallas_call(
        kernel,
        out_shape=jax.ShapeDtypeStruct((total_rows * DIM_SCALE, W, four_d),
                                       out_dtype),
        grid_spec=pltpu.PrefetchScalarGridSpec(
            num_scalar_prefetch=0,
            grid=(grid,),
            in_specs=[
                pl.BlockSpec((tm, D), lambda i: (i, 0)),        # x tokens
                pl.BlockSpec((D, E), lambda i: (0, 0)),         # expand weight
                pl.BlockSpec((E, STAT_W), lambda i: (0, 0)),    # chunk avg
                pl.BlockSpec((STAT_W, E), lambda i: (0, 0)),    # chunk bcast
                pl.BlockSpec((1, E), lambda i: (0, 0)),         # gamma tiled
                pl.BlockSpec((1, E), lambda i: (0, 0)),         # beta tiled
            ],
            out_specs=pl.BlockSpec((DIM_SCALE * R, W, four_d),
                                   lambda i: (i, 0, 0)),
        ),
        compiler_params=pltpu.CompilerParams(
            dimension_semantics=("parallel",),
        ),
    )(x_flat, w_expand, s_avg, s_bcast, g_tiled, b_tiled)

    # The kernel already wrote data in the final 'b t (h p1) (w p2) c' linear
    # order, so this reshape is a pure metadata change (bitcast, no HBM copy).
    return out_flat.reshape(B, T, H * DIM_SCALE, W * DIM_SCALE, D)


def _reference(x, w_expand, gamma, beta, input_resolution):
    """Pure-JAX reference mirroring the PyTorch forward."""
    H, W = input_resolution
    B, T, N, D = x.shape
    p = DIM_SCALE
    y = jnp.einsum("btnd,de->btne", x, w_expand)
    y = y.reshape(B, T, H, W, p, p, D).transpose(0, 1, 2, 4, 3, 5, 6)
    y = y.reshape(B, T, H * p, W * p, D)
    mean = jnp.mean(y, axis=-1, keepdims=True)
    var = jnp.mean((y - mean) ** 2, axis=-1, keepdims=True)
    return (y - mean) * lax.rsqrt(var + LN_EPS) * gamma + beta


if __name__ == "__main__":
    key = jax.random.PRNGKey(0)
    k_x, k_w, k_g, k_b = jax.random.split(key, 4)

    # Small shapes consistent with the module's forward.
    B, T = 2, 2
    H, W = 8, 8
    dim = 32
    N = H * W

    x = jax.random.normal(k_x, (B, T, N, dim), dtype=jnp.float32)
    # torch Linear weight is (out, in) = (16*dim, dim); kernel uses its transpose.
    w_expand = jax.random.normal(
        k_w, (dim, DIM_SCALE * DIM_SCALE * dim), dtype=jnp.float32
    ) * (1.0 / jnp.sqrt(dim))
    gamma = 1.0 + 0.1 * jax.random.normal(k_g, (dim,), dtype=jnp.float32)
    beta = 0.1 * jax.random.normal(k_b, (dim,), dtype=jnp.float32)

    ref = _reference(x, w_expand, gamma, beta, (H, W))

    # f32 I/O path: tight check against the pure-JAX reference.
    fn = jax.jit(functools.partial(final_patch_expand_x4, input_resolution=(H, W)))
    out = jax.block_until_ready(fn(x, w_expand, gamma, beta))
    assert out.shape == (B, T, H * DIM_SCALE, W * DIM_SCALE, dim), out.shape
    err = float(jnp.max(jnp.abs(out - ref)))
    assert err < 5e-4, err

    # bf16 I/O path (halves the dominant HBM streams); LN math stays in f32.
    fn_bf16 = jax.jit(functools.partial(final_patch_expand_x4,
                                        input_resolution=(H, W),
                                        out_dtype=jnp.bfloat16))
    out_bf16 = jax.block_until_ready(
        fn_bf16(x.astype(jnp.bfloat16), w_expand.astype(jnp.bfloat16), gamma, beta))
    assert out_bf16.shape == out.shape and out_bf16.dtype == jnp.bfloat16
    err_bf16 = float(jnp.max(jnp.abs(out_bf16.astype(jnp.float32) - ref)))
    assert err_bf16 < 0.25, err_bf16

    print("KERNEL_OK")
</pallas_src>

<mosaic_0001>
module attributes {stable_mosaic.version = 11 : i64} {
  func.func @_expand_norm_kernel(%arg0: i32, %arg1: memref<128x32xf32, #tpu.memory_space<vmem>>, %arg2: memref<32x512xf32, #tpu.memory_space<vmem>>, %arg3: memref<512x128xf32, #tpu.memory_space<vmem>>, %arg4: memref<128x512xf32, #tpu.memory_space<vmem>>, %arg5: memref<1x512xf32, #tpu.memory_space<vmem>>, %arg6: memref<1x512xf32, #tpu.memory_space<vmem>>, %arg7: memref<64x8x128xf32, #tpu.memory_space<vmem>>) attributes {dimension_semantics = [#tpu.dimension_semantics<parallel>], iteration_bounds = array<i64: 2>, scalar_prefetch = 0 : i64, scratch_operands = 0 : i64, tpu.core_type = #tpu.core_type<tc>, window_params = [{transform_indices = @transform_0, window_bounds = array<i64: 128, 32>}, {pipeline_mode = #tpu.pipeline_mode<synchronous>, transform_indices = @transform_1, window_bounds = array<i64: 32, 512>}, {pipeline_mode = #tpu.pipeline_mode<synchronous>, transform_indices = @transform_2, window_bounds = array<i64: 512, 128>}, {pipeline_mode = #tpu.pipeline_mode<synchronous>, transform_indices = @transform_3, window_bounds = array<i64: 128, 512>}, {pipeline_mode = #tpu.pipeline_mode<synchronous>, transform_indices = @transform_4, window_bounds = array<i64: 1, 512>}, {pipeline_mode = #tpu.pipeline_mode<synchronous>, transform_indices = @transform_5, window_bounds = array<i64: 1, 512>}, {transform_indices = @transform_6, window_bounds = array<i64: 64, 8, 128>}]} {
    %c0 = arith.constant 0 : index
    %c0_0 = arith.constant 0 : index
    %0 = vector.load %arg1[%c0, %c0_0] : memref<128x32xf32, #tpu.memory_space<vmem>>, vector<128x32xf32>
    %c0_1 = arith.constant 0 : index
    %c0_2 = arith.constant 0 : index
    %1 = vector.load %arg2[%c0_1, %c0_2] : memref<32x512xf32, #tpu.memory_space<vmem>>, vector<32x512xf32>
    %cst = arith.constant dense<0.000000e+00> : vector<128x512xf32>
    %2 = tpu.matmul %0, %1, %cst {dimension_numbers = #tpu.dot_dimension_numbers<[1], [0], [0], [1], [0, 0, 1, 1], [], []>} : vector<128x32xf32>, vector<32x512xf32>, vector<128x512xf32> -> vector<128x512xf32>
    %c0_3 = arith.constant 0 : index
    %c0_4 = arith.constant 0 : index
    %3 = vector.load %arg3[%c0_3, %c0_4] : memref<512x128xf32, #tpu.memory_space<vmem>>, vector<512x128xf32>
    %cst_5 = arith.constant dense<0.000000e+00> : vector<128x128xf32>
    %4 = tpu.matmul %2, %3, %cst_5 {dimension_numbers = #tpu.dot_dimension_numbers<[1], [0], [0], [1], [0, 0, 1, 1], [], []>} : vector<128x512xf32>, vector<512x128xf32>, vector<128x128xf32> -> vector<128x128xf32>
    %c0_6 = arith.constant 0 : index
    %c0_7 = arith.constant 0 : index
    %5 = vector.load %arg4[%c0_6, %c0_7] : memref<128x512xf32, #tpu.memory_space<vmem>>, vector<128x512xf32>
    %cst_8 = arith.constant dense<0.000000e+00> : vector<128x512xf32>
    %6 = tpu.matmul %4, %5, %cst_8 {dimension_numbers = #tpu.dot_dimension_numbers<[1], [0], [0], [1], [0, 0, 1, 1], [], []>} : vector<128x128xf32>, vector<128x512xf32>, vector<128x512xf32> -> vector<128x512xf32>
    %7 = arith.subf %2, %6 : vector<128x512xf32>
    %8 = arith.mulf %7, %7 : vector<128x512xf32>
    %c0_9 = arith.constant 0 : index
    %c0_10 = arith.constant 0 : index
    %9 = vector.load %arg3[%c0_9, %c0_10] : memref<512x128xf32, #tpu.memory_space<vmem>>, vector<512x128xf32>
    %cst_11 = arith.constant dense<0.000000e+00> : vector<128x128xf32>
    %10 = tpu.matmul %8, %9, %cst_11 {dimension_numbers = #tpu.dot_dimension_numbers<[1], [0], [0], [1], [0, 0, 1, 1], [], []>} : vector<128x512xf32>, vector<512x128xf32>, vector<128x128xf32> -> vector<128x128xf32>
    %cst_12 = arith.constant 9.99999974E-6 : f32
    %11 = vector.broadcast %cst_12 : f32 to vector<128x128xf32>
    %12 = arith.addf %10, %11 : vector<128x128xf32>
    %13 = math.rsqrt %12 : vector<128x128xf32>
    %c0_13 = arith.constant 0 : index
    %c0_14 = arith.constant 0 : index
    %14 = vector.load %arg4[%c0_13, %c0_14] : memref<128x512xf32, #tpu.memory_space<vmem>>, vector<128x512xf32>
    %cst_15 = arith.constant dense<0.000000e+00> : vector<128x512xf32>
    %15 = tpu.matmul %13, %14, %cst_15 {dimension_numbers = #tpu.dot_dimension_numbers<[1], [0], [0], [1], [0, 0, 1, 1], [], []>} : vector<128x128xf32>, vector<128x512xf32>, vector<128x512xf32> -> vector<128x512xf32>
    %16 = arith.mulf %7, %15 : vector<128x512xf32>
    %c0_16 = arith.constant 0 : index
    %c0_17 = arith.constant 0 : index
    %17 = vector.load %arg5[%c0_16, %c0_17] : memref<1x512xf32, #tpu.memory_space<vmem>>, vector<1x512xf32>
    %18 = vector.broadcast %17 : vector<1x512xf32> to vector<128x512xf32>
    %19 = arith.mulf %16, %18 : vector<128x512xf32>
    %c0_18 = arith.constant 0 : index
    %c0_19 = arith.constant 0 : index
    %20 = vector.load %arg6[%c0_18, %c0_19] : memref<1x512xf32, #tpu.memory_space<vmem>>, vector<1x512xf32>
    %21 = vector.broadcast %20 : vector<1x512xf32> to vector<128x512xf32>
    %22 = arith.addf %19, %21 : vector<128x512xf32>
    %23 = vector.extract_strided_slice %22 {offsets = [0, 0], sizes = [8, 128], strides = [1, 1]} : vector<128x512xf32> to vector<8x128xf32>
    %c0_20 = arith.constant 0 : index
    %c0_21 = arith.constant 0 : index
    %c0_22 = arith.constant 0 : index
    %24 = vector.load %arg7[%c0_20, %c0_21, %c0_22] : memref<64x8x128xf32, #tpu.memory_space<vmem>>, vector<1x8x128xf32>
    %25 = vector.shape_cast %24 : vector<1x8x128xf32> to vector<8x128xf32>
    %26 = vector.shape_cast %23 : vector<8x128xf32> to vector<1x8x128xf32>
    tpu.vector_store %arg7[%c0_20, %c0_21, %c0_22], %26 {strides = array<i32>} : memref<64x8x128xf32, #tpu.memory_space<vmem>>, vector<1x8x128xf32>,
    %27 = vector.extract_strided_slice %22 {offsets = [0, 128], sizes = [8, 128], strides = [1, 1]} : vector<128x512xf32> to vector<8x128xf32>
    %c1 = arith.constant 1 : index
    %c0_23 = arith.constant 0 : index
    %c0_24 = arith.constant 0 : index
    %28 = vector.load %arg7[%c1, %c0_23, %c0_24] : memref<64x8x128xf32, #tpu.memory_space<vmem>>, vector<1x8x128xf32>
    %29 = vector.shape_cast %28 : vector<1x8x128xf32> to vector<8x128xf32>
    %30 = vector.shape_cast %27 : vector<8x128xf32> to vector<1x8x128xf32>
    tpu.vector_store %arg7[%c1, %c0_23, %c0_24], %30 {strides = array<i32>} : memref<64x8x128xf32, #tpu.memory_space<vmem>>, vector<1x8x128xf32>,
    %31 = vector.extract_strided_slice %22 {offsets = [0, 256], sizes = [8, 128], strides = [1, 1]} : vector<128x512xf32> to vector<8x128xf32>
    %c2 = arith.constant 2 : index
    %c0_25 = arith.constant 0 : index
    %c0_26 = arith.constant 0 : index
    %32 = vector.load %arg7[%c2, %c0_25, %c0_26] : memref<64x8x128xf32, #tpu.memory_space<vmem>>, vector<1x8x128xf32>
    %33 = vector.shape_cast %32 : vector<1x8x128xf32> to vector<8x128xf32>
    %34 = vector.shape_cast %31 : vector<8x128xf32> to vector<1x8x128xf32>
    tpu.vector_store %arg7[%c2, %c0_25, %c0_26], %34 {strides = array<i32>} : memref<64x8x128xf32, #tpu.memory_space<vmem>>, vector<1x8x128xf32>,
    %35 = vector.extract_strided_slice %22 {offsets = [0, 384], sizes = [8, 128], strides = [1, 1]} : vector<128x512xf32> to vector<8x128xf32>
    %c3 = arith.constant 3 : index
    %c0_27 = arith.constant 0 : index
    %c0_28 = arith.constant 0 : index
    %36 = vector.load %arg7[%c3, %c0_27, %c0_28] : memref<64x8x128xf32, #tpu.memory_space<vmem>>, vector<1x8x128xf32>
    %37 = vector.shape_cast %36 : vector<1x8x128xf32> to vector<8x128xf32>
    %38 = vector.shape_cast %35 : vector<8x128xf32> to vector<1x8x128xf32>
    tpu.vector_store %arg7[%c3, %c0_27, %c0_28], %38 {strides = array<i32>} : memref<64x8x128xf32, #tpu.memory_space<vmem>>, vector<1x8x128xf32>,
    %39 = vector.extract_strided_slice %22 {offsets = [8, 0], sizes = [8, 128], strides = [1, 1]} : vector<128x512xf32> to vector<8x128xf32>
    %c4 = arith.constant 4 : index
    %c0_29 = arith.constant 0 : index
    %c0_30 = arith.constant 0 : index
    %40 = vector.load %arg7[%c4, %c0_29, %c0_30] : memref<64x8x128xf32, #tpu.memory_space<vmem>>, vector<1x8x128xf32>
    %41 = vector.shape_cast %40 : vector<1x8x128xf32> to vector<8x128xf32>
    %42 = vector.shape_cast %39 : vector<8x128xf32> to vector<1x8x128xf32>
    tpu.vector_store %arg7[%c4, %c0_29, %c0_30], %42 {strides = array<i32>} : memref<64x8x128xf32, #tpu.memory_space<vmem>>, vector<1x8x128xf32>,
    %43 = vector.extract_strided_slice %22 {offsets = [8, 128], sizes = [8, 128], strides = [1, 1]} : vector<128x512xf32> to vector<8x128xf32>
    %c5 = arith.constant 5 : index
    %c0_31 = arith.constant 0 : index
    %c0_32 = arith.constant 0 : index
    %44 = vector.load %arg7[%c5, %c0_31, %c0_32] : memref<64x8x128xf32, #tpu.memory_space<vmem>>, vector<1x8x128xf32>
    %45 = vector.shape_cast %44 : vector<1x8x128xf32> to vector<8x128xf32>
    %46 = vector.shape_cast %43 : vector<8x128xf32> to vector<1x8x128xf32>
    tpu.vector_store %arg7[%c5, %c0_31, %c0_32], %46 {strides = array<i32>} : memref<64x8x128xf32, #tpu.memory_space<vmem>>, vector<1x8x128xf32>,
    %47 = vector.extract_strided_slice %22 {offsets = [8, 256], sizes = [8, 128], strides = [1, 1]} : vector<128x512xf32> to vector<8x128xf32>
    %c6 = arith.constant 6 : index
    %c0_33 = arith.constant 0 : index
    %c0_34 = arith.constant 0 : index
    %48 = vector.load %arg7[%c6, %c0_33, %c0_34] : memref<64x8x128xf32, #tpu.memory_space<vmem>>, vector<1x8x128xf32>
    %49 = vector.shape_cast %48 : vector<1x8x128xf32> to vector<8x128xf32>
    %50 = vector.shape_cast %47 : vector<8x128xf32> to vector<1x8x128xf32>
    tpu.vector_store %arg7[%c6, %c0_33, %c0_34], %50 {strides = array<i32>} : memref<64x8x128xf32, #tpu.memory_space<vmem>>, vector<1x8x128xf32>,
    %51 = vector.extract_strided_slice %22 {offsets = [8, 384], sizes = [8, 128], strides = [1, 1]} : vector<128x512xf32> to vector<8x128xf32>
    %c7 = arith.constant 7 : index
    %c0_35 = arith.constant 0 : index
    %c0_36 = arith.constant 0 : index
    %52 = vector.load %arg7[%c7, %c0_35, %c0_36] : memref<64x8x128xf32, #tpu.memory_space<vmem>>, vector<1x8x128xf32>
    %53 = vector.shape_cast %52 : vector<1x8x128xf32> to vector<8x128xf32>
    %54 = vector.shape_cast %51 : vector<8x128xf32> to vector<1x8x128xf32>
    tpu.vector_store %arg7[%c7, %c0_35, %c0_36], %54 {strides = array<i32>} : memref<64x8x128xf32, #tpu.memory_space<vmem>>, vector<1x8x128xf32>,
    %55 = vector.extract_strided_slice %22 {offsets = [16, 0], sizes = [8, 128], strides = [1, 1]} : vector<128x512xf32> to vector<8x128xf32>
    %c8 = arith.constant 8 : index
    %c0_37 = arith.constant 0 : index
    %c0_38 = arith.constant 0 : index
    %56 = vector.load %arg7[%c8, %c0_37, %c0_38] : memref<64x8x128xf32, #tpu.memory_space<vmem>>, vector<1x8x128xf32>
    %57 = vector.shape_cast %56 : vector<1x8x128xf32> to vector<8x128xf32>
    %58 = vector.shape_cast %55 : vector<8x128xf32> to vector<1x8x128xf32>
    tpu.vector_store %arg7[%c8, %c0_37, %c0_38], %58 {strides = array<i32>} : memref<64x8x128xf32, #tpu.memory_space<vmem>>, vector<1x8x128xf32>,
    %59 = vector.extract_strided_slice %22 {offsets = [16, 128], sizes = [8, 128], strides = [1, 1]} : vector<128x512xf32> to vector<8x128xf32>
    %c9 = arith.constant 9 : index
    %c0_39 = arith.constant 0 : index
    %c0_40 = arith.constant 0 : index
    %60 = vector.load %arg7[%c9, %c0_39, %c0_40] : memref<64x8x128xf32, #tpu.memory_space<vmem>>, vector<1x8x128xf32>
    %61 = vector.shape_cast %60 : vector<1x8x128xf32> to vector<8x128xf32>
    %62 = vector.shape_cast %59 : vector<8x128xf32> to vector<1x8x128xf32>
    tpu.vector_store %arg7[%c9, %c0_39, %c0_40], %62 {strides = array<i32>} : memref<64x8x128xf32, #tpu.memory_space<vmem>>, vector<1x8x128xf32>,
    %63 = vector.extract_strided_slice %22 {offsets = [16, 256], sizes = [8, 128], strides = [1, 1]} : vector<128x512xf32> to vector<8x128xf32>
    %c10 = arith.constant 10 : index
    %c0_41 = arith.constant 0 : index
    %c0_42 = arith.constant 0 : index
    %64 = vector.load %arg7[%c10, %c0_41, %c0_42] : memref<64x8x128xf32, #tpu.memory_space<vmem>>, vector<1x8x128xf32>
    %65 = vector.shape_cast %64 : vector<1x8x128xf32> to vector<8x128xf32>
    %66 = vector.shape_cast %63 : vector<8x128xf32> to vector<1x8x128xf32>
    tpu.vector_store %arg7[%c10, %c0_41, %c0_42], %66 {strides = array<i32>} : memref<64x8x128xf32, #tpu.memory_space<vmem>>, vector<1x8x128xf32>,
    %67 = vector.extract_strided_slice %22 {offsets = [16, 384], sizes = [8, 128], strides = [1, 1]} : vector<128x512xf32> to vector<8x128xf32>
    %c11 = arith.constant 11 : index
    %c0_43 = arith.constant 0 : index
    %c0_44 = arith.constant 0 : index
    %68 = vector.load %arg7[%c11, %c0_43, %c0_44] : memref<64x8x128xf32, #tpu.memory_space<vmem>>, vector<1x8x128xf32>
    %69 = vector.shape_cast %68 : vector<1x8x128xf32> to vector<8x128xf32>
    %70 = vector.shape_cast %67 : vector<8x128xf32> to vector<1x8x128xf32>
    tpu.vector_store %arg7[%c11, %c0_43, %c0_44], %70 {strides = array<i32>} : memref<64x8x128xf32, #tpu.memory_space<vmem>>, vector<1x8x128xf32>,
    %71 = vector.extract_strided_slice %22 {offsets = [24, 0], sizes = [8, 128], strides = [1, 1]} : vector<128x512xf32> to vector<8x128xf32>
    %c12 = arith.constant 12 : index
    %c0_45 = arith.constant 0 : index
    %c0_46 = arith.constant 0 : index
    %72 = vector.load %arg7[%c12, %c0_45, %c0_46] : memref<64x8x128xf32, #tpu.memory_space<vmem>>, vector<1x8x128xf32>
    %73 = vector.shape_cast %72 : vector<1x8x128xf32> to vector<8x128xf32>
    %74 = vector.shape_cast %71 : vector<8x128xf32> to vector<1x8x128xf32>
    tpu.vector_store %arg7[%c12, %c0_45, %c0_46], %74 {strides = array<i32>} : memref<64x8x128xf32, #tpu.memory_space<vmem>>, vector<1x8x128xf32>,
    %75 = vector.extract_strided_slice %22 {offsets = [24, 128], sizes = [8, 128], strides = [1, 1]} : vector<128x512xf32> to vector<8x128xf32>
    %c13 = arith.constant 13 : index
    %c0_47 = arith.constant 0 : index
    %c0_48 = arith.constant 0 : index
    %76 = vector.load %arg7[%c13, %c0_47, %c0_48] : memref<64x8x128xf32, #tpu.memory_space<vmem>>, vector<1x8x128xf32>
    %77 = vector.shape_cast %76 : vector<1x8x128xf32> to vector<8x128xf32>
    %78 = vector.shape_cast %75 : vector<8x128xf32> to vector<1x8x128xf32>
    tpu.vector_store %arg7[%c13, %c0_47, %c0_48], %78 {strides = array<i32>} : memref<64x8x128xf32, #tpu.memory_space<vmem>>, vector<1x8x128xf32>,
    %79 = vector.extract_strided_slice %22 {offsets = [24, 256], sizes = [8, 128], strides = [1, 1]} : vector<128x512xf32> to vector<8x128xf32>
    %c14 = arith.constant 14 : index
    %c0_49 = arith.constant 0 : index
    %c0_50 = arith.constant 0 : index
    %80 = vector.load %arg7[%c14, %c0_49, %c0_50] : memref<64x8x128xf32, #tpu.memory_space<vmem>>, vector<1x8x128xf32>
    %81 = vector.shape_cast %80 : vector<1x8x128xf32> to vector<8x128xf32>
    %82 = vector.shape_cast %79 : vector<8x128xf32> to vector<1x8x128xf32>
    tpu.vector_store %arg7[%c14, %c0_49, %c0_50], %82 {strides = array<i32>} : memref<64x8x128xf32, #tpu.memory_space<vmem>>, vector<1x8x128xf32>,
    %83 = vector.extract_strided_slice %22 {offsets = [24, 384], sizes = [8, 128], strides = [1, 1]} : vector<128x512xf32> to vector<8x128xf32>
    %c15 = arith.constant 15 : index
    %c0_51 = arith.constant 0 : index
    %c0_52 = arith.constant 0 : index
    %84 = vector.load %arg7[%c15, %c0_51, %c0_52] : memref<64x8x128xf32, #tpu.memory_space<vmem>>, vector<1x8x128xf32>
    %85 = vector.shape_cast %84 : vector<1x8x128xf32> to vector<8x128xf32>
    %86 = vector.shape_cast %83 : vector<8x128xf32> to vector<1x8x128xf32>
    tpu.vector_store %arg7[%c15, %c0_51, %c0_52], %86 {strides = array<i32>} : memref<64x8x128xf32, #tpu.memory_space<vmem>>, vector<1x8x128xf32>,
    %87 = vector.extract_strided_slice %22 {offsets = [32, 0], sizes = [8, 128], strides = [1, 1]} : vector<128x512xf32> to vector<8x128xf32>
    %c16 = arith.constant 16 : index
    %c0_53 = arith.constant 0 : index
    %c0_54 = arith.constant 0 : index
    %88 = vector.load %arg7[%c16, %c0_53, %c0_54] : memref<64x8x128xf32, #tpu.memory_space<vmem>>, vector<1x8x128xf32>
    %89 = vector.shape_cast %88 : vector<1x8x128xf32> to vector<8x128xf32>
    %90 = vector.shape_cast %87 : vector<8x128xf32> to vector<1x8x128xf32>
    tpu.vector_store %arg7[%c16, %c0_53, %c0_54], %90 {strides = array<i32>} : memref<64x8x128xf32, #tpu.memory_space<vmem>>, vector<1x8x128xf32>,
    %91 = vector.extract_strided_slice %22 {offsets = [32, 128], sizes = [8, 128], strides = [1, 1]} : vector<128x512xf32> to vector<8x128xf32>
    %c17 = arith.constant 17 : index
    %c0_55 = arith.constant 0 : index
    %c0_56 = arith.constant 0 : index
    %92 = vector.load %arg7[%c17, %c0_55, %c0_56] : memref<64x8x128xf32, #tpu.memory_space<vmem>>, vector<1x8x128xf32>
    %93 = vector.shape_cast %92 : vector<1x8x128xf32> to vector<8x128xf32>
    %94 = vector.shape_cast %91 : vector<8x128xf32> to vector<1x8x128xf32>
    tpu.vector_store %arg7[%c17, %c0_55, %c0_56], %94 {strides = array<i32>} : memref<64x8x128xf32, #tpu.memory_space<vmem>>, vector<1x8x128xf32>,
    %95 = vector.extract_strided_slice %22 {offsets = [32, 256], sizes = [8, 128], strides = [1, 1]} : vector<128x512xf32> to vector<8x128xf32>
    %c18 = arith.constant 18 : index
    %c0_57 = arith.constant 0 : index
    %c0_58 = arith.constant 0 : index
    %96 = vector.load %arg7[%c18, %c0_57, %c0_58] : memref<64x8x128xf32, #tpu.memory_space<vmem>>, vector<1x8x128xf32>
    %97 = vector.shape_cast %96 : vector<1x8x128xf32> to vector<8x128xf32>
    %98 = vector.shape_cast %95 : vector<8x128xf32> to vector<1x8x128xf32>
    tpu.vector_store %arg7[%c18, %c0_57, %c0_58], %98 {strides = array<i32>} : memref<64x8x128xf32, #tpu.memory_space<vmem>>, vector<1x8x128xf32>,
    %99 = vector.extract_strided_slice %22 {offsets = [32, 384], sizes = [8, 128], strides = [1, 1]} : vector<128x512xf32> to vector<8x128xf32>
    %c19 = arith.constant 19 : index
    %c0_59 = arith.constant 0 : index
    %c0_60 = arith.constant 0 : index
    %100 = vector.load %arg7[%c19, %c0_59, %c0_60] : memref<64x8x128xf32, #tpu.memory_space<vmem>>, vector<1x8x128xf32>
    %101 = vector.shape_cast %100 : vector<1x8x128xf32> to vector<8x128xf32>
    %102 = vector.shape_cast %99 : vector<8x128xf32> to vector<1x8x128xf32>
    tpu.vector_store %arg7[%c19, %c0_59, %c0_60], %102 {strides = array<i32>} : memref<64x8x128xf32, #tpu.memory_space<vmem>>, vector<1x8x128xf32>,
    %103 = vector.extract_strided_slice %22 {offsets = [40, 0], sizes = [8, 128], strides = [1, 1]} : vector<128x512xf32> to vector<8x128xf32>
    %c20 = arith.constant 20 : index
    %c0_61 = arith.constant 0 : index
    %c0_62 = arith.constant 0 : index
    %104 = vector.load %arg7[%c20, %c0_61, %c0_62] : memref<64x8x128xf32, #tpu.memory_space<vmem>>, vector<1x8x128xf32>
    %105 = vector.shape_cast %104 : vector<1x8x128xf32> to vector<8x128xf32>
    %106 = vector.shape_cast %103 : vector<8x128xf32> to vector<1x8x128xf32>
    tpu.vector_store %arg7[%c20, %c0_61, %c0_62], %106 {strides = array<i32>} : memref<64x8x128xf32, #tpu.memory_space<vmem>>, vector<1x8x128xf32>,
    %107 = vector.extract_strided_slice %22 {offsets = [40, 128], sizes = [8, 128], strides = [1, 1]} : vector<128x512xf32> to vector<8x128xf32>
    %c21 = arith.constant 21 : index
    %c0_63 = arith.constant 0 : index
    %c0_64 = arith.constant 0 : index
    %108 = vector.load %arg7[%c21, %c0_63, %c0_64] : memref<64x8x128xf32, #tpu.memory_space<vmem>>, vector<1x8x128xf32>
    %109 = vector.shape_cast %108 : vector<1x8x128xf32> to vector<8x128xf32>
    %110 = vector.shape_cast %107 : vector<8x128xf32> to vector<1x8x128xf32>
    tpu.vector_store %arg7[%c21, %c0_63, %c0_64], %110 {strides = array<i32>} : memref<64x8x128xf32, #tpu.memory_space<vmem>>, vector<1x8x128xf32>,
    %111 = vector.extract_strided_slice %22 {offsets = [40, 256], sizes = [8, 128], strides = [1, 1]} : vector<128x512xf32> to vector<8x128xf32>
    %c22 = arith.constant 22 : index
    %c0_65 = arith.constant 0 : index
    %c0_66 = arith.constant 0 : index
    %112 = vector.load %arg7[%c22, %c0_65, %c0_66] : memref<64x8x128xf32, #tpu.memory_space<vmem>>, vector<1x8x128xf32>
    %113 = vector.shape_cast %112 : vector<1x8x128xf32> to vector<8x128xf32>
    %114 = vector.shape_cast %111 : vector<8x128xf32> to vector<1x8x128xf32>
    tpu.vector_store %arg7[%c22, %c0_65, %c0_66], %114 {strides = array<i32>} : memref<64x8x128xf32, #tpu.memory_space<vmem>>, vector<1x8x128xf32>,
    %115 = vector.extract_strided_slice %22 {offsets = [40, 384], sizes = [8, 128], strides = [1, 1]} : vector<128x512xf32> to vector<8x128xf32>
    %c23 = arith.constant 23 : index
    %c0_67 = arith.constant 0 : index
    %c0_68 = arith.constant 0 : index
    %116 = vector.load %arg7[%c23, %c0_67, %c0_68] : memref<64x8x128xf32, #tpu.memory_space<vmem>>, vector<1x8x128xf32>
    %117 = vector.shape_cast %116 : vector<1x8x128xf32> to vector<8x128xf32>
    %118 = vector.shape_cast %115 : vector<8x128xf32> to vector<1x8x128xf32>
    tpu.vector_store %arg7[%c23, %c0_67, %c0_68], %118 {strides = array<i32>} : memref<64x8x128xf32, #tpu.memory_space<vmem>>, vector<1x8x128xf32>,
    %119 = vector.extract_strided_slice %22 {offsets = [48, 0], sizes = [8, 128], strides = [1, 1]} : vector<128x512xf32> to vector<8x128xf32>
    %c24 = arith.constant 24 : index
    %c0_69 = arith.constant 0 : index
    %c0_70 = arith.constant 0 : index
    %120 = vector.load %arg7[%c24, %c0_69, %c0_70] : memref<64x8x128xf32, #tpu.memory_space<vmem>>, vector<1x8x128xf32>
    %121 = vector.shape_cast %120 : vector<1x8x128xf32> to vector<8x128xf32>
    %122 = vector.shape_cast %119 : vector<8x128xf32> to vector<1x8x128xf32>
    tpu.vector_store %arg7[%c24, %c0_69, %c0_70], %122 {strides = array<i32>} : memref<64x8x128xf32, #tpu.memory_space<vmem>>, vector<1x8x128xf32>,
    %123 = vector.extract_strided_slice %22 {offsets = [48, 128], sizes = [8, 128], strides = [1, 1]} : vector<128x512xf32> to vector<8x128xf32>
    %c25 = arith.constant 25 : index
    %c0_71 = arith.constant 0 : index
    %c0_72 = arith.constant 0 : index
    %124 = vector.load %arg7[%c25, %c0_71, %c0_72] : memref<64x8x128xf32, #tpu.memory_space<vmem>>, vector<1x8x128xf32>
    %125 = vector.shape_cast %124 : vector<1x8x128xf32> to vector<8x128xf32>
    %126 = vector.shape_cast %123 : vector<8x128xf32> to vector<1x8x128xf32>
    tpu.vector_store %arg7[%c25, %c0_71, %c0_72], %126 {strides = array<i32>} : memref<64x8x128xf32, #tpu.memory_space<vmem>>, vector<1x8x128xf32>,
    %127 = vector.extract_strided_slice %22 {offsets = [48, 256], sizes = [8, 128], strides = [1, 1]} : vector<128x512xf32> to vector<8x128xf32>
    %c26 = arith.constant 26 : index
    %c0_73 = arith.constant 0 : index
    %c0_74 = arith.constant 0 : index
    %128 = vector.load %arg7[%c26, %c0_73, %c0_74] : memref<64x8x128xf32, #tpu.memory_space<vmem>>, vector<1x8x128xf32>
    %129 = vector.shape_cast %128 : vector<1x8x128xf32> to vector<8x128xf32>
    %130 = vector.shape_cast %127 : vector<8x128xf32> to vector<1x8x128xf32>
    tpu.vector_store %arg7[%c26, %c0_73, %c0_74], %130 {strides = array<i32>} : memref<64x8x128xf32, #tpu.memory_space<vmem>>, vector<1x8x128xf32>,
    %131 = vector.extract_strided_slice %22 {offsets = [48, 384], sizes = [8, 128], strides = [1, 1]} : vector<128x512xf32> to vector<8x128xf32>
    %c27 = arith.constant 27 : index
    %c0_75 = arith.constant 0 : index
    %c0_76 = arith.constant 0 : index
    %132 = vector.load %arg7[%c27, %c0_75, %c0_76] : memref<64x8x128xf32, #tpu.memory_space<vmem>>, vector<1x8x128xf32>
    %133 = vector.shape_cast %132 : vector<1x8x128xf32> to vector<8x128xf32>
    %134 = vector.shape_cast %131 : vector<8x128xf32> to vector<1x8x128xf32>
    tpu.vector_store %arg7[%c27, %c0_75, %c0_76], %134 {strides = array<i32>} : memref<64x8x128xf32, #tpu.memory_space<vmem>>, vector<1x8x128xf32>,
    %135 = vector.extract_strided_slice %22 {offsets = [56, 0], sizes = [8, 128], strides = [1, 1]} : vector<128x512xf32> to vector<8x128xf32>
    %c28 = arith.constant 28 : index
    %c0_77 = arith.constant 0 : index
    %c0_78 = arith.constant 0 : index
    %136 = vector.load %arg7[%c28, %c0_77, %c0_78] : memref<64x8x128xf32, #tpu.memory_space<vmem>>, vector<1x8x128xf32>
    %137 = vector.shape_cast %136 : vector<1x8x128xf32> to vector<8x128xf32>
    %138 = vector.shape_cast %135 : vector<8x128xf32> to vector<1x8x128xf32>
    tpu.vector_store %arg7[%c28, %c0_77, %c0_78], %138 {strides = array<i32>} : memref<64x8x128xf32, #tpu.memory_space<vmem>>, vector<1x8x128xf32>,
    %139 = vector.extract_strided_slice %22 {offsets = [56, 128], sizes = [8, 128], strides = [1, 1]} : vector<128x512xf32> to vector<8x128xf32>
    %c29 = arith.constant 29 : index
    %c0_79 = arith.constant 0 : index
    %c0_80 = arith.constant 0 : index
    %140 = vector.load %arg7[%c29, %c0_79, %c0_80] : memref<64x8x128xf32, #tpu.memory_space<vmem>>, vector<1x8x128xf32>
    %141 = vector.shape_cast %140 : vector<1x8x128xf32> to vector<8x128xf32>
    %142 = vector.shape_cast %139 : vector<8x128xf32> to vector<1x8x128xf32>
    tpu.vector_store %arg7[%c29, %c0_79, %c0_80], %142 {strides = array<i32>} : memref<64x8x128xf32, #tpu.memory_space<vmem>>, vector<1x8x128xf32>,
    %143 = vector.extract_strided_slice %22 {offsets = [56, 256], sizes = [8, 128], strides = [1, 1]} : vector<128x512xf32> to vector<8x128xf32>
    %c30 = arith.constant 30 : index
    %c0_81 = arith.constant 0 : index
    %c0_82 = arith.constant 0 : index
    %144 = vector.load %arg7[%c30, %c0_81, %c0_82] : memref<64x8x128xf32, #tpu.memory_space<vmem>>, vector<1x8x128xf32>
    %145 = vector.shape_cast %144 : vector<1x8x128xf32> to vector<8x128xf32>
    %146 = vector.shape_cast %143 : vector<8x128xf32> to vector<1x8x128xf32>
    tpu.vector_store %arg7[%c30, %c0_81, %c0_82], %146 {strides = array<i32>} : memref<64x8x128xf32, #tpu.memory_space<vmem>>, vector<1x8x128xf32>,
    %147 = vector.extract_strided_slice %22 {offsets = [56, 384], sizes = [8, 128], strides = [1, 1]} : vector<128x512xf32> to vector<8x128xf32>
    %c31 = arith.constant 31 : index
    %c0_83 = arith.constant 0 : index
    %c0_84 = arith.constant 0 : index
    %148 = vector.load %arg7[%c31, %c0_83, %c0_84] : memref<64x8x128xf32, #tpu.memory_space<vmem>>, vector<1x8x128xf32>
    %149 = vector.shape_cast %148 : vector<1x8x128xf32> to vector<8x128xf32>
    %150 = vector.shape_cast %147 : vector<8x128xf32> to vector<1x8x128xf32>
    tpu.vector_store %arg7[%c31, %c0_83, %c0_84], %150 {strides = array<i32>} : memref<64x8x128xf32, #tpu.memory_space<vmem>>, vector<1x8x128xf32>,
    %151 = vector.extract_strided_slice %22 {offsets = [64, 0], sizes = [8, 128], strides = [1, 1]} : vector<128x512xf32> to vector<8x128xf32>
    %c32 = arith.constant 32 : index
    %c0_85 = arith.constant 0 : index
    %c0_86 = arith.constant 0 : index
    %152 = vector.load %arg7[%c32, %c0_85, %c0_86] : memref<64x8x128xf32, #tpu.memory_space<vmem>>, vector<1x8x128xf32>
    %153 = vector.shape_cast %152 : vector<1x8x128xf32> to vector<8x128xf32>
    %154 = vector.shape_cast %151 : vector<8x128xf32> to vector<1x8x128xf32>
    tpu.vector_store %arg7[%c32, %c0_85, %c0_86], %154 {strides = array<i32>} : memref<64x8x128xf32, #tpu.memory_space<vmem>>, vector<1x8x128xf32>,
    %155 = vector.extract_strided_slice %22 {offsets = [64, 128], sizes = [8, 128], strides = [1, 1]} : vector<128x512xf32> to vector<8x128xf32>
    %c33 = arith.constant 33 : index
    %c0_87 = arith.constant 0 : index
    %c0_88 = arith.constant 0 : index
    %156 = vector.load %arg7[%c33, %c0_87, %c0_88] : memref<64x8x128xf32, #tpu.memory_space<vmem>>, vector<1x8x128xf32>
    %157 = vector.shape_cast %156 : vector<1x8x128xf32> to vector<8x128xf32>
    %158 = vector.shape_cast %155 : vector<8x128xf32> to vector<1x8x128xf32>
    tpu.vector_store %arg7[%c33, %c0_87, %c0_88], %158 {strides = array<i32>} : memref<64x8x128xf32, #tpu.memory_space<vmem>>, vector<1x8x128xf32>,
    %159 = vector.extract_strided_slice %22 {offsets = [64, 256], sizes = [8, 128], strides = [1, 1]} : vector<128x512xf32> to vector<8x128xf32>
    %c34 = arith.constant 34 : index
    %c0_89 = arith.constant 0 : index
    %c0_90 = arith.constant 0 : index
    %160 = vector.load %arg7[%c34, %c0_89, %c0_90] : memref<64x8x128xf32, #tpu.memory_space<vmem>>, vector<1x8x128xf32>
    %161 = vector.shape_cast %160 : vector<1x8x128xf32> to vector<8x128xf32>
    %162 = vector.shape_cast %159 : vector<8x128xf32> to vector<1x8x128xf32>
    tpu.vector_store %arg7[%c34, %c0_89, %c0_90], %162 {strides = array<i32>} : memref<64x8x128xf32, #tpu.memory_space<vmem>>, vector<1x8x128xf32>,
    %163 = vector.extract_strided_slice %22 {offsets = [64, 384], sizes = [8, 128], strides = [1, 1]} : vector<128x512xf32> to vector<8x128xf32>
    %c35 = arith.constant 35 : index
    %c0_91 = arith.constant 0 : index
    %c0_92 = arith.constant 0 : index
    %164 = vector.load %arg7[%c35, %c0_91, %c0_92] : memref<64x8x128xf32, #tpu.memory_space<vmem>>, vector<1x8x128xf32>
    %165 = vector.shape_cast %164 : vector<1x8x128xf32> to vector<8x128xf32>
    %166 = vector.shape_cast %163 : vector<8x128xf32> to vector<1x8x128xf32>
    tpu.vector_store %arg7[%c35, %c0_91, %c0_92], %166 {strides = array<i32>} : memref<64x8x128xf32, #tpu.memory_space<vmem>>, vector<1x8x128xf32>,
    %167 = vector.extract_strided_slice %22 {offsets = [72, 0], sizes = [8, 128], strides = [1, 1]} : vector<128x512xf32> to vector<8x128xf32>
    %c36 = arith.constant 36 : index
    %c0_93 = arith.constant 0 : index
    %c0_94 = arith.constant 0 : index
    %168 = vector.load %arg7[%c36, %c0_93, %c0_94] : memref<64x8x128xf32, #tpu.memory_space<vmem>>, vector<1x8x128xf32>
    %169 = vector.shape_cast %168 : vector<1x8x128xf32> to vector<8x128xf32>
    %170 = vector.shape_cast %167 : vector<8x128xf32> to vector<1x8x128xf32>
    tpu.vector_store %arg7[%c36, %c0_93, %c0_94], %170 {strides = array<i32>} : memref<64x8x128xf32, #tpu.memory_space<vmem>>, vector<1x8x128xf32>,
    %171 = vector.extract_strided_slice %22 {offsets = [72, 128], sizes = [8, 128], strides = [1, 1]} : vector<128x512xf32> to vector<8x128xf32>
    %c37 = arith.constant 37 : index
    %c0_95 = arith.constant 0 : index
    %c0_96 = arith.constant 0 : index
    %172 = vector.load %arg7[%c37, %c0_95, %c0_96] : memref<64x8x128xf32, #tpu.memory_space<vmem>>, vector<1x8x128xf32>
    %173 = vector.shape_cast %172 : vector<1x8x128xf32> to vector<8x128xf32>
    %174 = vector.shape_cast %171 : vector<8x128xf32> to vector<1x8x128xf32>
    tpu.vector_store %arg7[%c37, %c0_95, %c0_96], %174 {strides = array<i32>} : memref<64x8x128xf32, #tpu.memory_space<vmem>>, vector<1x8x128xf32>,
    %175 = vector.extract_strided_slice %22 {offsets = [72, 256], sizes = [8, 128], strides = [1, 1]} : vector<128x512xf32> to vector<8x128xf32>
    %c38 = arith.constant 38 : index
    %c0_97 = arith.constant 0 : index
    %c0_98 = arith.constant 0 : index
    %176 = vector.load %arg7[%c38, %c0_97, %c0_98] : memref<64x8x128xf32, #tpu.memory_space<vmem>>, vector<1x8x128xf32>
    %177 = vector.shape_cast %176 : vector<1x8x128xf32> to vector<8x128xf32>
    %178 = vector.shape_cast %175 : vector<8x128xf32> to vector<1x8x128xf32>
    tpu.vector_store %arg7[%c38, %c0_97, %c0_98], %178 {strides = array<i32>} : memref<64x8x128xf32, #tpu.memory_space<vmem>>, vector<1x8x128xf32>,
    %179 = vector.extract_strided_slice %22 {offsets = [72, 384], sizes = [8, 128], strides = [1, 1]} : vector<128x512xf32> to vector<8x128xf32>
    %c39 = arith.constant 39 : index
    %c0_99 = arith.constant 0 : index
    %c0_100 = arith.constant 0 : index
    %180 = vector.load %arg7[%c39, %c0_99, %c0_100] : memref<64x8x128xf32, #tpu.memory_space<vmem>>, vector<1x8x128xf32>
    %181 = vector.shape_cast %180 : vector<1x8x128xf32> to vector<8x128xf32>
    %182 = vector.shape_cast %179 : vector<8x128xf32> to vector<1x8x128xf32>
    tpu.vector_store %arg7[%c39, %c0_99, %c0_100], %182 {strides = array<i32>} : memref<64x8x128xf32, #tpu.memory_space<vmem>>, vector<1x8x128xf32>,
    %183 = vector.extract_strided_slice %22 {offsets = [80, 0], sizes = [8, 128], strides = [1, 1]} : vector<128x512xf32> to vector<8x128xf32>
    %c40 = arith.constant 40 : index
    %c0_101 = arith.constant 0 : index
    %c0_102 = arith.constant 0 : index
    %184 = vector.load %arg7[%c40, %c0_101, %c0_102] : memref<64x8x128xf32, #tpu.memory_space<vmem>>, vector<1x8x128xf32>
    %185 = vector.shape_cast %184 : vector<1x8x128xf32> to vector<8x128xf32>
    %186 = vector.shape_cast %183 : vector<8x128xf32> to vector<1x8x128xf32>
    tpu.vector_store %arg7[%c40, %c0_101, %c0_102], %186 {strides = array<i32>} : memref<64x8x128xf32, #tpu.memory_space<vmem>>, vector<1x8x128xf32>,
    %187 = vector.extract_strided_slice %22 {offsets = [80, 128], sizes = [8, 128], strides = [1, 1]} : vector<128x512xf32> to vector<8x128xf32>
    %c41 = arith.constant 41 : index
    %c0_103 = arith.constant 0 : index
    %c0_104 = arith.constant 0 : index
    %188 = vector.load %arg7[%c41, %c0_103, %c0_104] : memref<64x8x128xf32, #tpu.memory_space<vmem>>, vector<1x8x128xf32>
    %189 = vector.shape_cast %188 : vector<1x8x128xf32> to vector<8x128xf32>
    %190 = vector.shape_cast %187 : vector<8x128xf32> to vector<1x8x128xf32>
    tpu.vector_store %arg7[%c41, %c0_103, %c0_104], %190 {strides = array<i32>} : memref<64x8x128xf32, #tpu.memory_space<vmem>>, vector<1x8x128xf32>,
    %191 = vector.extract_strided_slice %22 {offsets = [80, 256], sizes = [8, 128], strides = [1, 1]} : vector<128x512xf32> to vector<8x128xf32>
    %c42 = arith.constant 42 : index
    %c0_105 = arith.constant 0 : index
    %c0_106 = arith.constant 0 : index
    %192 = vector.load %arg7[%c42, %c0_105, %c0_106] : memref<64x8x128xf32, #tpu.memory_space<vmem>>, vector<1x8x128xf32>
    %193 = vector.shape_cast %192 : vector<1x8x128xf32> to vector<8x128xf32>
    %194 = vector.shape_cast %191 : vector<8x128xf32> to vector<1x8x128xf32>
    tpu.vector_store %arg7[%c42, %c0_105, %c0_106], %194 {strides = array<i32>} : memref<64x8x128xf32, #tpu.memory_space<vmem>>, vector<1x8x128xf32>,
    %195 = vector.extract_strided_slice %22 {offsets = [80, 384], sizes = [8, 128], strides = [1, 1]} : vector<128x512xf32> to vector<8x128xf32>
    %c43 = arith.constant 43 : index
    %c0_107 = arith.constant 0 : index
    %c0_108 = arith.constant 0 : index
    %196 = vector.load %arg7[%c43, %c0_107, %c0_108] : memref<64x8x128xf32, #tpu.memory_space<vmem>>, vector<1x8x128xf32>
    %197 = vector.shape_cast %196 : vector<1x8x128xf32> to vector<8x128xf32>
    %198 = vector.shape_cast %195 : vector<8x128xf32> to vector<1x8x128xf32>
    tpu.vector_store %arg7[%c43, %c0_107, %c0_108], %198 {strides = array<i32>} : memref<64x8x128xf32, #tpu.memory_space<vmem>>, vector<1x8x128xf32>,
    %199 = vector.extract_strided_slice %22 {offsets = [88, 0], sizes = [8, 128], strides = [1, 1]} : vector<128x512xf32> to vector<8x128xf32>
    %c44 = arith.constant 44 : index
    %c0_109 = arith.constant 0 : index
    %c0_110 = arith.constant 0 : index
    %200 = vector.load %arg7[%c44, %c0_109, %c0_110] : memref<64x8x128xf32, #tpu.memory_space<vmem>>, vector<1x8x128xf32>
    %201 = vector.shape_cast %200 : vector<1x8x128xf32> to vector<8x128xf32>
    %202 = vector.shape_cast %199 : vector<8x128xf32> to vector<1x8x128xf32>
    tpu.vector_store %arg7[%c44, %c0_109, %c0_110], %202 {strides = array<i32>} : memref<64x8x128xf32, #tpu.memory_space<vmem>>, vector<1x8x128xf32>,
    %203 = vector.extract_strided_slice %22 {offsets = [88, 128], sizes = [8, 128], strides = [1, 1]} : vector<128x512xf32> to vector<8x128xf32>
    %c45 = arith.constant 45 : index
    %c0_111 = arith.constant 0 : index
    %c0_112 = arith.constant 0 : index
    %204 = vector.load %arg7[%c45, %c0_111, %c0_112] : memref<64x8x128xf32, #tpu.memory_space<vmem>>, vector<1x8x128xf32>
    %205 = vector.shape_cast %204 : vector<1x8x128xf32> to vector<8x128xf32>
    %206 = vector.shape_cast %203 : vector<8x128xf32> to vector<1x8x128xf32>
    tpu.vector_store %arg7[%c45, %c0_111, %c0_112], %206 {strides = array<i32>} : memref<64x8x128xf32, #tpu.memory_space<vmem>>, vector<1x8x128xf32>,
    %207 = vector.extract_strided_slice %22 {offsets = [88, 256], sizes = [8, 128], strides = [1, 1]} : vector<128x512xf32> to vector<8x128xf32>
    %c46 = arith.constant 46 : index
    %c0_113 = arith.constant 0 : index
    %c0_114 = arith.constant 0 : index
    %208 = vector.load %arg7[%c46, %c0_113, %c0_114] : memref<64x8x128xf32, #tpu.memory_space<vmem>>, vector<1x8x128xf32>
    %209 = vector.shape_cast %208 : vector<1x8x128xf32> to vector<8x128xf32>
    %210 = vector.shape_cast %207 : vector<8x128xf32> to vector<1x8x128xf32>
    tpu.vector_store %arg7[%c46, %c0_113, %c0_114], %210 {strides = array<i32>} : memref<64x8x128xf32, #tpu.memory_space<vmem>>, vector<1x8x128xf32>,
    %211 = vector.extract_strided_slice %22 {offsets = [88, 384], sizes = [8, 128], strides = [1, 1]} : vector<128x512xf32> to vector<8x128xf32>
    %c47 = arith.constant 47 : index
    %c0_115 = arith.constant 0 : index
    %c0_116 = arith.constant 0 : index
    %212 = vector.load %arg7[%c47, %c0_115, %c0_116] : memref<64x8x128xf32, #tpu.memory_space<vmem>>, vector<1x8x128xf32>
    %213 = vector.shape_cast %212 : vector<1x8x128xf32> to vector<8x128xf32>
    %214 = vector.shape_cast %211 : vector<8x128xf32> to vector<1x8x128xf32>
    tpu.vector_store %arg7[%c47, %c0_115, %c0_116], %214 {strides = array<i32>} : memref<64x8x128xf32, #tpu.memory_space<vmem>>, vector<1x8x128xf32>,
    %215 = vector.extract_strided_slice %22 {offsets = [96, 0], sizes = [8, 128], strides = [1, 1]} : vector<128x512xf32> to vector<8x128xf32>
    %c48 = arith.constant 48 : index
    %c0_117 = arith.constant 0 : index
    %c0_118 = arith.constant 0 : index
    %216 = vector.load %arg7[%c48, %c0_117, %c0_118] : memref<64x8x128xf32, #tpu.memory_space<vmem>>, vector<1x8x128xf32>
    %217 = vector.shape_cast %216 : vector<1x8x128xf32> to vector<8x128xf32>
    %218 = vector.shape_cast %215 : vector<8x128xf32> to vector<1x8x128xf32>
    tpu.vector_store %arg7[%c48, %c0_117, %c0_118], %218 {strides = array<i32>} : memref<64x8x128xf32, #tpu.memory_space<vmem>>, vector<1x8x128xf32>,
    %219 = vector.extract_strided_slice %22 {offsets = [96, 128], sizes = [8, 128], strides = [1, 1]} : vector<128x512xf32> to vector<8x128xf32>
    %c49 = arith.constant 49 : index
    %c0_119 = arith.constant 0 : index
    %c0_120 = arith.constant 0 : index
    %220 = vector.load %arg7[%c49, %c0_119, %c0_120] : memref<64x8x128xf32, #tpu.memory_space<vmem>>, vector<1x8x128xf32>
    %221 = vector.shape_cast %220 : vector<1x8x128xf32> to vector<8x128xf32>
    %222 = vector.shape_cast %219 : vector<8x128xf32> to vector<1x8x128xf32>
    tpu.vector_store %arg7[%c49, %c0_119, %c0_120], %222 {strides = array<i32>} : memref<64x8x128xf32, #tpu.memory_space<vmem>>, vector<1x8x128xf32>,
    %223 = vector.extract_strided_slice %22 {offsets = [96, 256], sizes = [8, 128], strides = [1, 1]} : vector<128x512xf32> to vector<8x128xf32>
    %c50 = arith.constant 50 : index
    %c0_121 = arith.constant 0 : index
    %c0_122 = arith.constant 0 : index
    %224 = vector.load %arg7[%c50, %c0_121, %c0_122] : memref<64x8x128xf32, #tpu.memory_space<vmem>>, vector<1x8x128xf32>
    %225 = vector.shape_cast %224 : vector<1x8x128xf32> to vector<8x128xf32>
    %226 = vector.shape_cast %223 : vector<8x128xf32> to vector<1x8x128xf32>
    tpu.vector_store %arg7[%c50, %c0_121, %c0_122], %226 {strides = array<i32>} : memref<64x8x128xf32, #tpu.memory_space<vmem>>, vector<1x8x128xf32>,
    %227 = vector.extract_strided_slice %22 {offsets = [96, 384], sizes = [8, 128], strides = [1, 1]} : vector<128x512xf32> to vector<8x128xf32>
    %c51 = arith.constant 51 : index
    %c0_123 = arith.constant 0 : index
    %c0_124 = arith.constant 0 : index
    %228 = vector.load %arg7[%c51, %c0_123, %c0_124] : memref<64x8x128xf32, #tpu.memory_space<vmem>>, vector<1x8x128xf32>
    %229 = vector.shape_cast %228 : vector<1x8x128xf32> to vector<8x128xf32>
    %230 = vector.shape_cast %227 : vector<8x128xf32> to vector<1x8x128xf32>
    tpu.vector_store %arg7[%c51, %c0_123, %c0_124], %230 {strides = array<i32>} : memref<64x8x128xf32, #tpu.memory_space<vmem>>, vector<1x8x128xf32>,
    %231 = vector.extract_strided_slice %22 {offsets = [104, 0], sizes = [8, 128], strides = [1, 1]} : vector<128x512xf32> to vector<8x128xf32>
    %c52 = arith.constant 52 : index
    %c0_125 = arith.constant 0 : index
    %c0_126 = arith.constant 0 : index
    %232 = vector.load %arg7[%c52, %c0_125, %c0_126] : memref<64x8x128xf32, #tpu.memory_space<vmem>>, vector<1x8x128xf32>
    %233 = vector.shape_cast %232 : vector<1x8x128xf32> to vector<8x128xf32>
    %234 = vector.shape_cast %231 : vector<8x128xf32> to vector<1x8x128xf32>
    tpu.vector_store %arg7[%c52, %c0_125, %c0_126], %234 {strides = array<i32>} : memref<64x8x128xf32, #tpu.memory_space<vmem>>, vector<1x8x128xf32>,
    %235 = vector.extract_strided_slice %22 {offsets = [104, 128], sizes = [8, 128], strides = [1, 1]} : vector<128x512xf32> to vector<8x128xf32>
    %c53 = arith.constant 53 : index
    %c0_127 = arith.constant 0 : index
    %c0_128 = arith.constant 0 : index
    %236 = vector.load %arg7[%c53, %c0_127, %c0_128] : memref<64x8x128xf32, #tpu.memory_space<vmem>>, vector<1x8x128xf32>
    %237 = vector.shape_cast %236 : vector<1x8x128xf32> to vector<8x128xf32>
    %238 = vector.shape_cast %235 : vector<8x128xf32> to vector<1x8x128xf32>
    tpu.vector_store %arg7[%c53, %c0_127, %c0_128], %238 {strides = array<i32>} : memref<64x8x128xf32, #tpu.memory_space<vmem>>, vector<1x8x128xf32>,
    %239 = vector.extract_strided_slice %22 {offsets = [104, 256], sizes = [8, 128], strides = [1, 1]} : vector<128x512xf32> to vector<8x128xf32>
    %c54 = arith.constant 54 : index
    %c0_129 = arith.constant 0 : index
    %c0_130 = arith.constant 0 : index
    %240 = vector.load %arg7[%c54, %c0_129, %c0_130] : memref<64x8x128xf32, #tpu.memory_space<vmem>>, vector<1x8x128xf32>
    %241 = vector.shape_cast %240 : vector<1x8x128xf32> to vector<8x128xf32>
    %242 = vector.shape_cast %239 : vector<8x128xf32> to vector<1x8x128xf32>
    tpu.vector_store %arg7[%c54, %c0_129, %c0_130], %242 {strides = array<i32>} : memref<64x8x128xf32, #tpu.memory_space<vmem>>, vector<1x8x128xf32>,
    %243 = vector.extract_strided_slice %22 {offsets = [104, 384], sizes = [8, 128], strides = [1, 1]} : vector<128x512xf32> to vector<8x128xf32>
    %c55 = arith.constant 55 : index
    %c0_131 = arith.constant 0 : index
    %c0_132 = arith.constant 0 : index
    %244 = vector.load %arg7[%c55, %c0_131, %c0_132] : memref<64x8x128xf32, #tpu.memory_space<vmem>>, vector<1x8x128xf32>
    %245 = vector.shape_cast %244 : vector<1x8x128xf32> to vector<8x128xf32>
    %246 = vector.shape_cast %243 : vector<8x128xf32> to vector<1x8x128xf32>
    tpu.vector_store %arg7[%c55, %c0_131, %c0_132], %246 {strides = array<i32>} : memref<64x8x128xf32, #tpu.memory_space<vmem>>, vector<1x8x128xf32>,
    %247 = vector.extract_strided_slice %22 {offsets = [112, 0], sizes = [8, 128], strides = [1, 1]} : vector<128x512xf32> to vector<8x128xf32>
    %c56 = arith.constant 56 : index
    %c0_133 = arith.constant 0 : index
    %c0_134 = arith.constant 0 : index
    %248 = vector.load %arg7[%c56, %c0_133, %c0_134] : memref<64x8x128xf32, #tpu.memory_space<vmem>>, vector<1x8x128xf32>
    %249 = vector.shape_cast %248 : vector<1x8x128xf32> to vector<8x128xf32>
    %250 = vector.shape_cast %247 : vector<8x128xf32> to vector<1x8x128xf32>
    tpu.vector_store %arg7[%c56, %c0_133, %c0_134], %250 {strides = array<i32>} : memref<64x8x128xf32, #tpu.memory_space<vmem>>, vector<1x8x128xf32>,
    %251 = vector.extract_strided_slice %22 {offsets = [112, 128], sizes = [8, 128], strides = [1, 1]} : vector<128x512xf32> to vector<8x128xf32>
    %c57 = arith.constant 57 : index
    %c0_135 = arith.constant 0 : index
    %c0_136 = arith.constant 0 : index
    %252 = vector.load %arg7[%c57, %c0_135, %c0_136] : memref<64x8x128xf32, #tpu.memory_space<vmem>>, vector<1x8x128xf32>
    %253 = vector.shape_cast %252 : vector<1x8x128xf32> to vector<8x128xf32>
    %254 = vector.shape_cast %251 : vector<8x128xf32> to vector<1x8x128xf32>
    tpu.vector_store %arg7[%c57, %c0_135, %c0_136], %254 {strides = array<i32>} : memref<64x8x128xf32, #tpu.memory_space<vmem>>, vector<1x8x128xf32>,
    %255 = vector.extract_strided_slice %22 {offsets = [112, 256], sizes = [8, 128], strides = [1, 1]} : vector<128x512xf32> to vector<8x128xf32>
    %c58 = arith.constant 58 : index
    %c0_137 = arith.constant 0 : index
    %c0_138 = arith.constant 0 : index
    %256 = vector.load %arg7[%c58, %c0_137, %c0_138] : memref<64x8x128xf32, #tpu.memory_space<vmem>>, vector<1x8x128xf32>
    %257 = vector.shape_cast %256 : vector<1x8x128xf32> to vector<8x128xf32>
    %258 = vector.shape_cast %255 : vector<8x128xf32> to vector<1x8x128xf32>
    tpu.vector_store %arg7[%c58, %c0_137, %c0_138], %258 {strides = array<i32>} : memref<64x8x128xf32, #tpu.memory_space<vmem>>, vector<1x8x128xf32>,
    %259 = vector.extract_strided_slice %22 {offsets = [112, 384], sizes = [8, 128], strides = [1, 1]} : vector<128x512xf32> to vector<8x128xf32>
    %c59 = arith.constant 59 : index
    %c0_139 = arith.constant 0 : index
    %c0_140 = arith.constant 0 : index
    %260 = vector.load %arg7[%c59, %c0_139, %c0_140] : memref<64x8x128xf32, #tpu.memory_space<vmem>>, vector<1x8x128xf32>
    %261 = vector.shape_cast %260 : vector<1x8x128xf32> to vector<8x128xf32>
    %262 = vector.shape_cast %259 : vector<8x128xf32> to vector<1x8x128xf32>
    tpu.vector_store %arg7[%c59, %c0_139, %c0_140], %262 {strides = array<i32>} : memref<64x8x128xf32, #tpu.memory_space<vmem>>, vector<1x8x128xf32>,
    %263 = vector.extract_strided_slice %22 {offsets = [120, 0], sizes = [8, 128], strides = [1, 1]} : vector<128x512xf32> to vector<8x128xf32>
    %c60 = arith.constant 60 : index
    %c0_141 = arith.constant 0 : index
    %c0_142 = arith.constant 0 : index
    %264 = vector.load %arg7[%c60, %c0_141, %c0_142] : memref<64x8x128xf32, #tpu.memory_space<vmem>>, vector<1x8x128xf32>
    %265 = vector.shape_cast %264 : vector<1x8x128xf32> to vector<8x128xf32>
    %266 = vector.shape_cast %263 : vector<8x128xf32> to vector<1x8x128xf32>
    tpu.vector_store %arg7[%c60, %c0_141, %c0_142], %266 {strides = array<i32>} : memref<64x8x128xf32, #tpu.memory_space<vmem>>, vector<1x8x128xf32>,
    %267 = vector.extract_strided_slice %22 {offsets = [120, 128], sizes = [8, 128], strides = [1, 1]} : vector<128x512xf32> to vector<8x128xf32>
    %c61 = arith.constant 61 : index
    %c0_143 = arith.constant 0 : index
    %c0_144 = arith.constant 0 : index
    %268 = vector.load %arg7[%c61, %c0_143, %c0_144] : memref<64x8x128xf32, #tpu.memory_space<vmem>>, vector<1x8x128xf32>
    %269 = vector.shape_cast %268 : vector<1x8x128xf32> to vector<8x128xf32>
    %270 = vector.shape_cast %267 : vector<8x128xf32> to vector<1x8x128xf32>
    tpu.vector_store %arg7[%c61, %c0_143, %c0_144], %270 {strides = array<i32>} : memref<64x8x128xf32, #tpu.memory_space<vmem>>, vector<1x8x128xf32>,
    %271 = vector.extract_strided_slice %22 {offsets = [120, 256], sizes = [8, 128], strides = [1, 1]} : vector<128x512xf32> to vector<8x128xf32>
    %c62 = arith.constant 62 : index
    %c0_145 = arith.constant 0 : index
    %c0_146 = arith.constant 0 : index
    %272 = vector.load %arg7[%c62, %c0_145, %c0_146] : memref<64x8x128xf32, #tpu.memory_space<vmem>>, vector<1x8x128xf32>
    %273 = vector.shape_cast %272 : vector<1x8x128xf32> to vector<8x128xf32>
    %274 = vector.shape_cast %271 : vector<8x128xf32> to vector<1x8x128xf32>
    tpu.vector_store %arg7[%c62, %c0_145, %c0_146], %274 {strides = array<i32>} : memref<64x8x128xf32, #tpu.memory_space<vmem>>, vector<1x8x128xf32>,
    %275 = vector.extract_strided_slice %22 {offsets = [120, 384], sizes = [8, 128], strides = [1, 1]} : vector<128x512xf32> to vector<8x128xf32>
    %c63 = arith.constant 63 : index
    %c0_147 = arith.constant 0 : index
    %c0_148 = arith.constant 0 : index
    %276 = vector.load %arg7[%c63, %c0_147, %c0_148] : memref<64x8x128xf32, #tpu.memory_space<vmem>>, vector<1x8x128xf32>
    %277 = vector.shape_cast %276 : vector<1x8x128xf32> to vector<8x128xf32>
    %278 = vector.shape_cast %275 : vector<8x128xf32> to vector<1x8x128xf32>
    tpu.vector_store %arg7[%c63, %c0_147, %c0_148], %278 {strides = array<i32>} : memref<64x8x128xf32, #tpu.memory_space<vmem>>, vector<1x8x128xf32>,
    return
  }
  func.func @transform_0(%arg0: i32) -> (i32, i32) {
    %c0_i32 = arith.constant 0 : i32
    %c0_i32_0 = arith.constant 0 : i32
    return %arg0, %c0_i32 : i32, i32
  }
  func.func @transform_1(%arg0: i32) -> (i32, i32) {
    %c0_i32 = arith.constant 0 : i32
    %c0_i32_0 = arith.constant 0 : i32
    %c0_i32_1 = arith.constant 0 : i32
    return %c0_i32, %c0_i32_0 : i32, i32
  }
  func.func @transform_2(%arg0: i32) -> (i32, i32) {
    %c0_i32 = arith.constant 0 : i32
    %c0_i32_0 = arith.constant 0 : i32
    %c0_i32_1 = arith.constant 0 : i32
    return %c0_i32, %c0_i32_0 : i32, i32
  }
  func.func @transform_3(%arg0: i32) -> (i32, i32) {
    %c0_i32 = arith.constant 0 : i32
    %c0_i32_0 = arith.constant 0 : i32
    %c0_i32_1 = arith.constant 0 : i32
    return %c0_i32, %c0_i32_0 : i32, i32
  }
  func.func @transform_4(%arg0: i32) -> (i32, i32) {
    %c0_i32 = arith.constant 0 : i32
    %c0_i32_0 = arith.constant 0 : i32
    %c0_i32_1 = arith.constant 0 : i32
    return %c0_i32, %c0_i32_0 : i32, i32
  }
  func.func @transform_5(%arg0: i32) -> (i32, i32) {
    %c0_i32 = arith.constant 0 : i32
    %c0_i32_0 = arith.constant 0 : i32
    %c0_i32_1 = arith.constant 0 : i32
    return %c0_i32, %c0_i32_0 : i32, i32
  }
  func.func @transform_6(%arg0: i32) -> (i32, i32, i32) {
    %c0_i32 = arith.constant 0 : i32
    %c0_i32_0 = arith.constant 0 : i32
    %c0_i32_1 = arith.constant 0 : i32
    return %arg0, %c0_i32, %c0_i32_0 : i32, i32, i32
  }
}

</mosaic_0001>

<bundles_post_ra>
// kernel: final_patch_expand_x4.1
= control target key start
LH: loop header
LB: loop body
LE: loop exit
PB: predicated region body
PF: predicated region fallthrough
CT: control target
= control target key end

     0   :  { %11 = vsyncpa [#allocation3], 0  ;;  %s3433_s21 = smov 0   ;;  %s5070_s0 = inlined_call_operand.vmem [shape: f32[256,32], index: 0, kind: input, shape index: {}]   ;;  %s5071_s1 = inlined_call_operand.hbm [shape: f32[32,512], index: 1, kind: input, shape index: {}]   ;;  %s5072_s2 = inlined_call_operand.vmem [shape: f32[512,128], index: 2, kind: input, shape index: {}]   ;;  %s5073_s3 = inlined_call_operand.vmem [shape: f32[128,512], index: 3, kind: input, shape index: {}]   ;;  %s5074_s4 = inlined_call_operand.vmem [shape: f32[1,512], index: 4, kind: input, shape index: {}]   ;;  %s5075_s5 = inlined_call_operand.vmem [shape: f32[1,512], index: 5, kind: input, shape index: {}]   ;;  %s5076_s6 = inlined_call_operand.vmem [shape: f32[128,8,128], index: 6, kind: output, shape index: {}]  }
   0x1 LB: > { %s3439_s22 = sadd.s32 4294967295, %s3392_s21   ;;  %p2602_p0 = scmp.ge.s32.totalorder %s3392_s21, 1  ;;  %s3392_s21 = sphi %s3433_s21, %s17_s21  }
   0x2   : > { %p179_p1 = scmp.lt.s32.totalorder %s3392_s21, 3  ;;  %s3394_s23 = smov [#allocation2]  }
   0x3   : > { %s191_s24 = sshll.u32 %s3394_s23, 4  ;;  %p5077_p3 = scmp.eq.s32.totalorder %s3439_s22, 0  ;;  %s192_s24 = int_to_ptr.vmem [resolvable:$true] %s191_s24 }
   0x4   : > { %p3443_p2 = pnand %p2602_p0, %p179_p1  ;;  %s3354_s29 = scalar_lea.hbm %s5071_s1, 2048 }
   0x5   : > { %p3355_p6 = scmp.ne.s32.totalorder %s5071_s1, %s3354_s29  ;;  %p3361_p10 = scmp.lt.u32.totalorder %s3354_s29, %s5071_s1 }
   0x6   : > { %s5186_s25 = scalar_select %p3443_p2, 1, 0 }
   0x7   : > { %p3304_p4 = pneg %p3443_p2 }
   0x9   : > { %p3452_p5 = pnand %p5077_p3, %p3304_p4 }
   0xb   : > { %p3356_p7 = pneg %p3452_p5 }
   0xd   : > { %p3357_p8 = pnand %p3356_p7, %p3355_p6 }
   0xf   : > { %p3358_p9 = pneg %p3357_p8 }
  0x11   : > { %p3363_p11 = pnand %p3361_p10, %p3358_p9 }
  0x13   : > { %3366 = shalt.err (!%p3363_p11)
}
  0x14   : > { %s3367_s10 = scalar_lea.vmem %s192_s24, 2048  ;;  %p3375_p1 = scmp.lt.s32.totalorder %s192_s24, %s192_s24 }
  0x15   : > { %p3368_p12 = scmp.ne.s32.totalorder %s192_s24, %s3367_s10  ;;  %p3376_p4 = scmp.lt.s32.totalorder %s3367_s10, %s3367_s10 }
  0x17   : > { %p3370_p13 = pnand %p3368_p12, %p3356_p7  ;;  %p3377_p3 = por %p3376_p4, %p3375_p1 }
  0x19   : > { %p3371_p0 = pneg %p3370_p13 }
  0x1b   : > { %p3378_p2 = pnand %p3377_p3, %p3371_p0 }
  0x1d   : > { %3381 = shalt.err (!%p3378_p2)
}
  0x1e   : > { %s3395_s11 = smov 512   ;;  %s3396_s12 = smov 32  }
  0x1f   : > { %3307 = dma.hbm_to_vmem [thread:$0]  (!%p3452_p5), %s5071_s1, 2048, %s192_s24, [#allocation3], %s3395_s11, %s3395_s11, %s3396_s12  }
  0x20   : > { %p5188_p6 = scmp.ne.s32.totalorder %s5186_s25, 0 }
  0x22   : > { %228 = sbr.rel (%p5188_p6) target bundleno = 1216 (0x4c0), region = 44 }
  0x29   : > { %p5189_p8 = scmp.eq.s32.totalorder %s3439_s22, 0 }
  0x2b   : > { %3387 = dma.done.wait (%p5189_p8), [#allocation3], 2048   ;;  %p5190_p7 = pmov %p5189_p8 }
  0x2c   : > { %s2607_s15 = sshll.u32 %s3439_s22, 4  ;;  %v5079_v0 = vmov 0.0   ;;  %v287_v1 = vld [vmem:[#allocation2 + $0x8] sm:$0xff]  ;;  %v289_v3 = vld [vmem:[#allocation2 + $0x18] sm:$0xff]  ;;  %v286_v6 = vld [vmem:[#allocation2] sm:$0xff]  ;;  %vm302_vm0 = vcmask 261120  }
  0x2d   : > { %3389 = vsyncadd (%p5190_p7), [#allocation3], 4294965248  ;;  %415 = vmatprep.mubr.f32.mxu0 %v5079_v0  ;;  %576 = vmatprep.mubr.f32.mxu1 %v5079_v0  ;;  %p259_p2 = scmp.lt.s32.totalorder %s2607_s15, 31  ;;  %v291_v2 = vld [vmem:[#allocation2 + $0x28] sm:$0xff]  ;;  %v293_v5 = vld [vmem:[#allocation2 + $0x38] sm:$0xff]  ;;  %s2609_s17 = sshll.u32 %s3439_s22, 6 }
  0x2e   : > { %v3028_v4 = vpack.c.bf16 %v291_v2, %v287_v1  ;;  %v290_v7 = vld [vmem:[#allocation2 + $0x20] sm:$0xff]  ;;  %v3036_v8 = vpack.c.bf16 %v293_v5, %v289_v3  ;;  %v288_v10 = vld [vmem:[#allocation2 + $0x10] sm:$0xff]  ;;  %v295_v12 = vld [vmem:[#allocation2 + $0x48] sm:$0xff]  ;;  %p265_p3 = scmp.lt.s32.totalorder %s2609_s17, 127 }
  0x2f   : > { %s5403_s15 = smov (!%p259_p2, %s2607_s15), 31  ;;  %v3030_v9 = vpack.c.bf16 %v290_v7, %v286_v6  ;;  %v292_v11 = vld [vmem:[#allocation2 + $0x30] sm:$0xff]  ;;  %v299_v14 = vld [vmem:[#allocation2 + $0x68] sm:$0xff]  ;;  %v297_v15 = vld [vmem:[#allocation2 + $0x58] sm:$0xff] }
  0x30   : > { %s2608_s16 = sshll.u32 %s5403_s15, 3  ;;  %3029 = vmatprep.subr.bf16.mxu0 %v3028_v4  ;;  %v3038_v13 = vpack.c.bf16 %v292_v11, %v288_v10  ;;  %v301_v16 = vld [vmem:[#allocation2 + $0x78] sm:$0xff]  ;;  %3037 = vmatprep.subr.bf16.mxu1 %v3036_v8  ;;  %v3032_v17 = vpack.c.bf16 %v299_v14, %v295_v12  ;;  %v294_v19 = vld [vmem:[#allocation2 + $0x40] sm:$0xff]  ;;  %v296_v21 = vld [vmem:[#allocation2 + $0x50] sm:$0xff]  ;;  %s5405_s17 = smov (!%p265_p3, %s2609_s17), 127 }
  0x31   : > { %3031 = vmatpush1.bf16.msra.mxu0 %v3030_v9  ;;  %v3040_v18 = vpack.c.bf16 %v301_v16, %v297_v15  ;;  %v298_v20 = vld [vmem:[#allocation2 + $0x60] sm:$0xff]  ;;  %v300_v23 = vld [vmem:[#allocation2 + $0x70] sm:$0xff]  ;;  %s3487_s19 = scalar_lea.vmem %s5070_s0, %s2608_s16  ;;  %v690_v28 = vld [vmem:[%s5072_s2 + $0x88] sm:$0xff]  ;;  %s2610_s22 = sshll.u32 %s5405_s17, 3 }
  0x32   : > { %3039 = vmatpush1.bf16.msra.mxu1 %v3038_v13  ;;  %v3034_v22 = vpack.c.bf16 %v298_v20, %v294_v19  ;;  %3033 = vmatprep.subr.bf16.mxu0 %v3032_v17  ;;  %v3042_v24 = vpack.c.bf16 %v300_v23, %v296_v21  ;;  %v270_v25 = vld [vmem:[%s3487_s19] sm:$0xff]  ;;  %v271_v26 = vld [vmem:[%s3487_s19 + $0x8] sm:$0xff]  ;;  %v691_v38 = vld [vmem:[%s5072_s2 + $0x90] sm:$0xff]  ;;  %s4815_s27 = scalar_lea.vmem %s5076_s6, %s2610_s22 }
  0x33   : > { %3041 = vmatprep.subr.bf16.mxu1 %v3040_v18  ;;  %v689_v27 = vld [vmem:[%s5072_s2 + $0x80] sm:$0xff]  ;;  %v722_v30 = vld [vmem:[%s5072_s2 + $0x188] sm:$0xff]  ;;  %v692_v39 = vld [vmem:[%s5072_s2 + $0x98] sm:$0xff] }
  0x34   : > { %v721_v29 = vld [vmem:[%s5072_s2 + $0x180] sm:$0xff]  ;;  %v3506_v31 = vpack.c.bf16 %v690_v28, %v689_v27  ;;  %v674_v34 = vld [vmem:[%s5072_s2 + $0x8] sm:$0xff]  ;;  %v272_v40 = vld [vmem:[%s3487_s19 + $0x10] sm:$0xff]  ;;  %v3536_v42 = vpack.c.bf16 %v692_v39, %v691_v38 }
  0x35   : > { %3035 = vmatpush1.bf16.msra.mxu0 %v3034_v22  ;;  %v3508_v32 = vpack.c.bf16 %v722_v30, %v721_v29  ;;  %v673_v33 = vld [vmem:[%s5072_s2] sm:$0xff]  ;;  %v706_v37 = vld [vmem:[%s5072_s2 + $0x108] sm:$0xff]  ;;  %v723_v43 = vld [vmem:[%s5072_s2 + $0x190] sm:$0xff] }
  0x36   : > { %3043 = vmatpush1.bf16.msra.mxu1 %v3042_v24  ;;  %v705_v35 = vld [vmem:[%s5072_s2 + $0x100] sm:$0xff]  ;;  %v3520_v36 = vpack.c.bf16 %v674_v34, %v673_v33  ;;  %3045 = vmatprep.subr.bf16.mxu0 %v3506_v31  ;;  %v724_v44 = vld [vmem:[%s5072_s2 + $0x198] sm:$0xff]  ;;  %v675_v45 = vld [vmem:[%s5072_s2 + $0x10] sm:$0xff] }
  0x37   : > { %3077 = vmatprep.subr.bf16.mxu1 %v3508_v32  ;;  %v3534_v41 = vpack.c.bf16 %v706_v37, %v705_v35  ;;  %v3548_v46 = vpack.c.bf16 %v724_v44, %v723_v43  ;;  %v676_v47 = vld [vmem:[%s5072_s2 + $0x18] sm:$0xff]  ;;  %v707_v48 = vld [vmem:[%s5072_s2 + $0x110] sm:$0xff]  ;;  %v693_v50 = vld [vmem:[%s5072_s2 + $0xa0] sm:$0xff] }
  0x38   : > { %2611 = vmatmul.mubr.msk.f32.vlgmr.msra.gmra.mrb[0].mxu0 %vm302_vm0, %v270_v25  ;;  %v708_v49 = vld [vmem:[%s5072_s2 + $0x118] sm:$0xff]  ;;  %v694_v51 = vld [vmem:[%s5072_s2 + $0xa8] sm:$0xff]  ;;  %v725_v52 = vld [vmem:[%s5072_s2 + $0x1a0] sm:$0xff]  ;;  %v3572_v53 = vpack.c.bf16 %v676_v47, %v675_v45 }
  0x39   : > { %2627 = vmatmul.mubr.msk.f32.vlgmr.msra.gmra.mrb[0].mxu1 %vm302_vm0, %v270_v25  ;;  %421 = vmatprep.mubr.f32.mxu0 %v5079_v0  ;;  %v726_v54 = vld [vmem:[%s5072_s2 + $0x1a8] sm:$0xff]  ;;  %v3579_v55 = vpack.c.bf16 %v708_v49, %v707_v48  ;;  %v3581_v56 = vpack.c.bf16 %v694_v51, %v693_v50  ;;  %v677_v57 = vld [vmem:[%s5072_s2 + $0x20] sm:$0xff]  ;;  %v695_v62 = vld [vmem:[%s5072_s2 + $0xb0] sm:$0xff] }
  0x3a   : > { %582 = vmatprep.mubr.f32.mxu1 %v5079_v0  ;;  %3047 = vmatpush3.bf16.msra.mxu0 %v3520_v36  ;;  %v678_v58 = vld [vmem:[%s5072_s2 + $0x28] sm:$0xff]  ;;  %v709_v59 = vld [vmem:[%s5072_s2 + $0x120] sm:$0xff]  ;;  %v3594_v60 = vpack.c.bf16 %v726_v54, %v725_v52  ;;  %v696_v63 = vld [vmem:[%s5072_s2 + $0xb8] sm:$0xff] }
  0x3b   : > { %3079 = vmatpush3.bf16.msra.mxu1 %v3534_v41  ;;  %3049 = vmatprep.subr.bf16.mxu0 %v3536_v42  ;;  %v710_v61 = vld [vmem:[%s5072_s2 + $0x128] sm:$0xff]  ;;  %v273_v1 = vld [vmem:[%s3487_s19 + $0x18] sm:$0xff]  ;;  %v727_v2 = vld [vmem:[%s5072_s2 + $0x1b0] sm:$0xff]  ;;  %v3616_v4 = vpack.c.bf16 %v678_v58, %v677_v57  ;;  %v3622_v6 = vpack.c.bf16 %v696_v63, %v695_v62 }
  0x3c   : > { %2612 = vmatmul.mubr.msk.f32.gmra.mrb[2].mxu0 %vm302_vm0, %v271_v26  ;;  %3081 = vmatprep.subr.bf16.mxu1 %v3548_v46  ;;  %v728_v3 = vld [vmem:[%s5072_s2 + $0x1b8] sm:$0xff]  ;;  %v3620_v5 = vpack.c.bf16 %v710_v61, %v709_v59  ;;  %v679_v7 = vld [vmem:[%s5072_s2 + $0x30] sm:$0xff]  ;;  %v697_v12 = vld [vmem:[%s5072_s2 + $0xc0] sm:$0xff] }
  0x3d   : > { %2628 = vmatmul.mubr.msk.f32.gmra.mrb[2].mxu1 %vm302_vm0, %v271_v26  ;;  %427 = vmatprep.mubr.f32.mxu0 %v5079_v0  ;;  %v680_v8 = vld [vmem:[%s5072_s2 + $0x38] sm:$0xff]  ;;  %v711_v9 = vld [vmem:[%s5072_s2 + $0x130] sm:$0xff]  ;;  %v3635_v10 = vpack.c.bf16 %v728_v3, %v727_v2  ;;  %v698_v13 = vld [vmem:[%s5072_s2 + $0xc8] sm:$0xff] }
  0x3e   : > { %588 = vmatprep.mubr.f32.mxu1 %v5079_v0  ;;  %3051 = vmatpush3.bf16.msra.mxu0 %v3572_v53  ;;  %v712_v11 = vld [vmem:[%s5072_s2 + $0x138] sm:$0xff]  ;;  %v274_v14 = vld [vmem:[%s3487_s19 + $0x20] sm:$0xff]  ;;  %v730_v16 = vld [vmem:[%s5072_s2 + $0x1c8] sm:$0xff]  ;;  %v3657_v17 = vpack.c.bf16 %v680_v8, %v679_v7  ;;  %v3663_v19 = vpack.c.bf16 %v698_v13, %v697_v12 }
  0x3f   : > { %3083 = vmatpush3.bf16.msra.mxu1 %v3579_v55  ;;  %3053 = vmatprep.subr.bf16.mxu0 %v3581_v56  ;;  %v729_v15 = vld [vmem:[%s5072_s2 + $0x1c0] sm:$0xff]  ;;  %v3661_v18 = vpack.c.bf16 %v712_v11, %v711_v9  ;;  %v682_v21 = vld [vmem:[%s5072_s2 + $0x48] sm:$0xff]  ;;  %v699_v25 = vld [vmem:[%s5072_s2 + $0xd0] sm:$0xff] }
  0x40   : > { %2613 = vmatmul.mubr.msk.f32.gmra.mrb[4].mxu0 %vm302_vm0, %v272_v40  ;;  %3085 = vmatprep.subr.bf16.mxu1 %v3594_v60  ;;  %v681_v20 = vld [vmem:[%s5072_s2 + $0x40] sm:$0xff]  ;;  %v3676_v23 = vpack.c.bf16 %v730_v16, %v729_v15  ;;  %v714_v24 = vld [vmem:[%s5072_s2 + $0x148] sm:$0xff]  ;;  %v700_v26 = vld [vmem:[%s5072_s2 + $0xd8] sm:$0xff] }
  0x41   : > { %2629 = vmatmul.mubr.msk.f32.gmra.mrb[4].mxu1 %vm302_vm0, %v272_v40  ;;  %433 = vmatprep.mubr.f32.mxu0 %v5079_v0  ;;  %v713_v22 = vld [vmem:[%s5072_s2 + $0x140] sm:$0xff]  ;;  %v275_v27 = vld [vmem:[%s3487_s19 + $0x28] sm:$0xff]  ;;  %v731_v28 = vld [vmem:[%s5072_s2 + $0x1d0] sm:$0xff]  ;;  %v3698_v30 = vpack.c.bf16 %v682_v21, %v681_v20  ;;  %v3704_v34 = vpack.c.bf16 %v700_v26, %v699_v25 }
  0x42   : > { %594 = vmatprep.mubr.f32.mxu1 %v5079_v0  ;;  %3055 = vmatpush3.bf16.msra.mxu0 %v3616_v4  ;;  %v732_v29 = vld [vmem:[%s5072_s2 + $0x1d8] sm:$0xff]  ;;  %v3702_v33 = vpack.c.bf16 %v714_v24, %v713_v22  ;;  %v683_v35 = vld [vmem:[%s5072_s2 + $0x50] sm:$0xff]  ;;  %v701_v43 = vld [vmem:[%s5072_s2 + $0xe0] sm:$0xff] }
  0x43   : > { %3087 = vmatpush3.bf16.msra.mxu1 %v3620_v5  ;;  %3057 = vmatprep.subr.bf16.mxu0 %v3622_v6  ;;  %v684_v37 = vld [vmem:[%s5072_s2 + $0x58] sm:$0xff]  ;;  %v715_v38 = vld [vmem:[%s5072_s2 + $0x150] sm:$0xff]  ;;  %v3717_v39 = vpack.c.bf16 %v732_v29, %v731_v28  ;;  %v702_v44 = vld [vmem:[%s5072_s2 + $0xe8] sm:$0xff] }
  0x44   : > { %2614 = vmatmul.mubr.msk.f32.gmra.mrb[6].mxu0 %vm302_vm0, %v273_v1  ;;  %3089 = vmatprep.subr.bf16.mxu1 %v3635_v10  ;;  %v716_v40 = vld [vmem:[%s5072_s2 + $0x158] sm:$0xff]  ;;  %v276_v45 = vld [vmem:[%s3487_s19 + $0x30] sm:$0xff]  ;;  %v733_v47 = vld [vmem:[%s5072_s2 + $0x1e0] sm:$0xff]  ;;  %v3739_v49 = vpack.c.bf16 %v684_v37, %v683_v35  ;;  %v3745_v51 = vpack.c.bf16 %v702_v44, %v701_v43 }
  0x45   : > { %2630 = vmatmul.mubr.msk.f32.gmra.mrb[6].mxu1 %vm302_vm0, %v273_v1  ;;  %439 = vmatprep.mubr.f32.mxu0 %v5079_v0  ;;  %v734_v48 = vld [vmem:[%s5072_s2 + $0x1e8] sm:$0xff]  ;;  %v3743_v50 = vpack.c.bf16 %v716_v40, %v715_v38  ;;  %v685_v52 = vld [vmem:[%s5072_s2 + $0x60] sm:$0xff]  ;;  %v703_v61 = vld [vmem:[%s5072_s2 + $0xf0] sm:$0xff] }
  0x46   : > { %600 = vmatprep.mubr.f32.mxu1 %v5079_v0  ;;  %3059 = vmatpush3.bf16.msra.mxu0 %v3657_v17  ;;  %v686_v54 = vld [vmem:[%s5072_s2 + $0x68] sm:$0xff]  ;;  %v717_v57 = vld [vmem:[%s5072_s2 + $0x160] sm:$0xff]  ;;  %v3758_v58 = vpack.c.bf16 %v734_v48, %v733_v47  ;;  %v704_v62 = vld [vmem:[%s5072_s2 + $0xf8] sm:$0xff] }
  0x47   : > { %3091 = vmatpush3.bf16.msra.mxu1 %v3661_v18  ;;  %3061 = vmatprep.subr.bf16.mxu0 %v3663_v19  ;;  %v718_v59 = vld [vmem:[%s5072_s2 + $0x168] sm:$0xff]  ;;  %v277_v63 = vld [vmem:[%s3487_s19 + $0x38] sm:$0xff]  ;;  %v735_v1 = vld [vmem:[%s5072_s2 + $0x1f0] sm:$0xff]  ;;  %v3780_v3 = vpack.c.bf16 %v686_v54, %v685_v52  ;;  %v3786_v8 = vpack.c.bf16 %v704_v62, %v703_v61 }
  0x48   : > { %2615 = vmatmul.mubr.msk.f32.gmra.mrb[8].mxu0 %vm302_vm0, %v274_v14  ;;  %3093 = vmatprep.subr.bf16.mxu1 %v3676_v23  ;;  %v736_v2 = vld [vmem:[%s5072_s2 + $0x1f8] sm:$0xff]  ;;  %v3784_v7 = vpack.c.bf16 %v718_v59, %v717_v57  ;;  %v687_v9 = vld [vmem:[%s5072_s2 + $0x70] sm:$0xff]  ;;  %v278_v15 = vld [vmem:[%s3487_s19 + $0x40] sm:$0xff] }
  0x49   : > { %2631 = vmatmul.mubr.msk.f32.gmra.mrb[8].mxu1 %vm302_vm0, %v274_v14  ;;  %445 = vmatprep.mubr.f32.mxu0 %v5079_v0  ;;  %v688_v11 = vld [vmem:[%s5072_s2 + $0x78] sm:$0xff]  ;;  %v3796_v12 = vpack.c.bf16 %v736_v2, %v735_v1  ;;  %v719_v13 = vld [vmem:[%s5072_s2 + $0x170] sm:$0xff]  ;;  %v279_v21 = vld [vmem:[%s3487_s19 + $0x48] sm:$0xff] }
  0x4a   : > { %606 = vmatprep.mubr.f32.mxu1 %v5079_v0  ;;  %3063 = vmatpush3.bf16.msra.mxu0 %v3698_v30  ;;  %v720_v14 = vld [vmem:[%s5072_s2 + $0x178] sm:$0xff]  ;;  %v3809_v16 = vpack.c.bf16 %v688_v11, %v687_v9  ;;  %v280_v22 = vld [vmem:[%s3487_s19 + $0x50] sm:$0xff]  ;;  %v282_v25 = vld [vmem:[%s3487_s19 + $0x60] sm:$0xff] }
  0x4b   : > { %3095 = vmatpush3.bf16.msra.mxu1 %v3702_v33  ;;  %3065 = vmatprep.subr.bf16.mxu0 %v3704_v34  ;;  %v3813_v20 = vpack.c.bf16 %v720_v14, %v719_v13  ;;  %v281_v24 = vld [vmem:[%s3487_s19 + $0x58] sm:$0xff]  ;;  %v283_v26 = vld [vmem:[%s3487_s19 + $0x68] sm:$0xff]  ;;  %v1027_v44 = vld [vmem:[%s5073_s3] sm:$0xff] }
  0x4c   : > { %2616 = vmatmul.mubr.msk.f32.gmra.mrb[10].mxu0 %vm302_vm0, %v275_v27  ;;  %3097 = vmatprep.subr.bf16.mxu1 %v3717_v39  ;;  %v285_v28 = vld [vmem:[%s3487_s19 + $0x78] sm:$0xff]  ;;  %v1028_v29 = vld [vmem:[%s5073_s3 + $0x8] sm:$0xff]  ;;  %v1029_v47 = vld [vmem:[%s5073_s3 + $0x10] sm:$0xff] }
  0x4d   : > { %2632 = vmatmul.mubr.msk.f32.gmra.mrb[10].mxu1 %vm302_vm0, %v275_v27  ;;  %451 = vmatprep.mubr.f32.mxu0 %v5079_v0  ;;  %v284_v27 = vld [vmem:[%s3487_s19 + $0x70] sm:$0xff]  ;;  %v1032_v35 = vld [vmem:[%s5073_s3 + $0x28] sm:$0xff]  ;;  %v1030_v38 = vld [vmem:[%s5073_s3 + $0x18] sm:$0xff] }
  0x4e   : > { %612 = vmatprep.mubr.f32.mxu1 %v5079_v0  ;;  %3067 = vmatpush3.bf16.msra.mxu0 %v3739_v49  ;;  %v3861_v37 = vpack.c.bf16 %v1032_v35, %v1028_v29  ;;  %v1034_v40 = vld [vmem:[%s5073_s3 + $0x38] sm:$0xff]  ;;  %v1033_v48 = vld [vmem:[%s5073_s3 + $0x30] sm:$0xff]  ;;  %v1036_v52 = vld [vmem:[%s5073_s3 + $0x48] sm:$0xff] }
  0x4f   : > { %3099 = vmatpush3.bf16.msra.mxu1 %v3743_v50  ;;  %3069 = vmatprep.subr.bf16.mxu0 %v3745_v51  ;;  %v3869_v43 = vpack.c.bf16 %v1034_v40, %v1030_v38  ;;  %v1040_v54 = vld [vmem:[%s5073_s3 + $0x68] sm:$0xff]  ;;  %v1038_v57 = vld [vmem:[%s5073_s3 + $0x58] sm:$0xff]  ;;  %v3905_v2 = vpack.c.bf16 %v1033_v48, %v1029_v47  ;;  %v1035_v11 = vld [vmem:[%s5073_s3 + $0x40] sm:$0xff] }
  0x50   : > { %2617 = vmatmul.mubr.msk.f32.gmra.mrb[12].mxu0 %vm302_vm0, %v276_v45  ;;  %3101 = vmatprep.subr.bf16.mxu1 %v3758_v58  ;;  %v1042_v59 = vld [vmem:[%s5073_s3 + $0x78] sm:$0xff]  ;;  %v3907_v9 = vpack.c.bf16 %v1040_v54, %v1036_v52  ;;  %v1039_v13 = vld [vmem:[%s5073_s3 + $0x60] sm:$0xff]  ;;  %v1037_v14 = vld [vmem:[%s5073_s3 + $0x50] sm:$0xff] }
  0x51   : > { %2633 = vmatmul.mubr.msk.f32.gmra.mrb[12].mxu1 %vm302_vm0, %v276_v45  ;;  %457 = vmatprep.mubr.f32.mxu0 %v5079_v0  ;;  %v1031_v45 = vld [vmem:[%s5073_s3 + $0x20] sm:$0xff]  ;;  %v3944_v29 = vpack.c.bf16 %v1039_v13, %v1035_v11  ;;  %v1045_v48 = vld [vmem:[%s5073_s3 + $0x90] sm:$0xff]  ;;  %v1056_v11 = vld [vmem:[%s5073_s3 + $0xe8] sm:$0xff] }
  0x52   : > { %618 = vmatprep.mubr.f32.mxu1 %v5079_v0  ;;  %3071 = vmatpush3.bf16.msra.mxu0 %v3780_v3  ;;  %v3899_v62 = vpack.c.bf16 %v1031_v45, %v1027_v44  ;;  %5191 = vst [vmem:[#allocation5_spill] sm:$0xff] %v3907_v9  ;;  %v1043_v45 = vld [vmem:[%s5073_s3 + $0x80] sm:$0xff]  ;;  %v1054_v13 = vld [vmem:[%s5073_s3 + $0xd8] sm:$0xff] }
  0x53   : > { %3103 = vmatpush3.bf16.msra.mxu1 %v3784_v7  ;;  %3073 = vmatprep.subr.bf16.mxu0 %v3786_v8  ;;  %5193 = vst [vmem:[#allocation7_spill] sm:$0xff] %v3944_v29  ;;  %v1047_v47 = vld [vmem:[%s5073_s3 + $0xa0] sm:$0xff] }
  0x54   : > { %2618 = vmatmul.mubr.msk.f32.gmra.mrb[14].mxu0 %vm302_vm0, %v277_v63  ;;  %3105 = vmatprep.subr.bf16.mxu1 %v3796_v12 }
  0x55   : > { %2634 = vmatmul.mubr.msk.f32.gmra.mrb[14].mxu1 %vm302_vm0, %v277_v63  ;;  %463 = vmatprep.mubr.f32.mxu0 %v5079_v0 }
  0x56   : > { %624 = vmatprep.mubr.f32.mxu1 %v5079_v0  ;;  %3075 = vmatpush3.bf16.msra.mxu0 %v3809_v16 }
  0x57   : > { %3107 = vmatpush3.bf16.msra.mxu1 %v3813_v20  ;;  %3109 = vmatprep.subr.bf16.mxu0 %v3861_v37 }
  0x58   : > { %2619 = vmatmul.mubr.msk.f32.gmra.mrb[16].mxu0 %vm302_vm0, %v278_v15  ;;  %3141 = vmatprep.subr.bf16.mxu1 %v3869_v43 }
  0x59   : > { %2635 = vmatmul.mubr.msk.f32.gmra.mrb[16].mxu1 %vm302_vm0, %v278_v15  ;;  %469 = vmatprep.mubr.f32.mxu0 %v5079_v0 }
  0x5a   : > { %630 = vmatprep.mubr.f32.mxu1 %v5079_v0 }
  0x5c   : > { %2620 = vmatmul.mubr.msk.f32.gmra.mrb[18].mxu0 %vm302_vm0, %v279_v21 }
  0x5d   : > { %2636 = vmatmul.mubr.msk.f32.gmra.mrb[18].mxu1 %vm302_vm0, %v279_v21  ;;  %475 = vmatprep.mubr.f32.mxu0 %v5079_v0  ;;  %v3921_v21 = vpack.c.bf16 %v1042_v59, %v1038_v57  ;;  %v1049_v57 = vld [vmem:[%s5073_s3 + $0xb0] sm:$0xff]  ;;  %v1052_v59 = vld [vmem:[%s5073_s3 + $0xc8] sm:$0xff] }
  0x5e   : > { %636 = vmatprep.mubr.f32.mxu1 %v5079_v0 }
  0x5f   : > { %5192 = vst [vmem:[#allocation6_spill] sm:$0xff] %v3921_v21 }
  0x60   : > { %2621 = vmatmul.mubr.msk.f32.gmra.mrb[20].mxu0 %vm302_vm0, %v280_v22 }
  0x61   : > { %2637 = vmatmul.mubr.msk.f32.gmra.mrb[20].mxu1 %vm302_vm0, %v280_v22  ;;  %481 = vmatprep.mubr.f32.mxu0 %v5079_v0  ;;  %v1041_v22 = vld [vmem:[%s5073_s3 + $0x70] sm:$0xff] }
  0x62   : > { %642 = vmatprep.mubr.f32.mxu1 %v5079_v0  ;;  %v3952_v40 = vpack.c.bf16 %v1041_v22, %v1037_v14  ;;  %v1058_v14 = vld [vmem:[%s5073_s3 + $0xf8] sm:$0xff] }
  0x64   : > { %2622 = vmatmul.mubr.msk.f32.gmra.mrb[22].mxu0 %vm302_vm0, %v281_v24  ;;  %5194 = vst [vmem:[#allocation8_spill] sm:$0xff] %v3952_v40 }
  0x65   : > { %2638 = vmatmul.mubr.msk.f32.gmra.mrb[22].mxu1 %vm302_vm0, %v281_v24  ;;  %487 = vmatprep.mubr.f32.mxu0 %v5079_v0  ;;  %v1044_v24 = vld [vmem:[%s5073_s3 + $0x88] sm:$0xff] }
  0x66   : > { %648 = vmatprep.mubr.f32.mxu1 %v5079_v0 }
  0x68   : > { %2623 = vmatmul.mubr.msk.f32.gmra.mrb[24].mxu0 %vm302_vm0, %v282_v25 }
  0x69   : > { %2639 = vmatmul.mubr.msk.f32.gmra.mrb[24].mxu1 %vm302_vm0, %v282_v25  ;;  %493 = vmatprep.mubr.f32.mxu0 %v5079_v0  ;;  %v1048_v25 = vld [vmem:[%s5073_s3 + $0xa8] sm:$0xff] }
  0x6a   : > { %654 = vmatprep.mubr.f32.mxu1 %v5079_v0  ;;  %v3954_v44 = vpack.c.bf16 %v1048_v25, %v1044_v24  ;;  %v3992_v24 = vpack.c.bf16 %v1047_v47, %v1043_v45  ;;  %v1055_v45 = vld [vmem:[%s5073_s3 + $0xe0] sm:$0xff]  ;;  %v1053_v47 = vld [vmem:[%s5073_s3 + $0xd0] sm:$0xff] }
  0x6c   : > { %2624 = vmatmul.mubr.msk.f32.gmra.mrb[26].mxu0 %vm302_vm0, %v283_v26  ;;  %5195 = vst [vmem:[#allocation9_spill] sm:$0xff] %v3954_v44  ;;  %5197 = vst [vmem:[#allocation11_spill] sm:$0xff] %v3992_v24 }
  0x6d   : > { %2640 = vmatmul.mubr.msk.f32.gmra.mrb[26].mxu1 %vm302_vm0, %v283_v26  ;;  %499 = vmatprep.mubr.f32.mxu0 %v5079_v0  ;;  %v1046_v26 = vld [vmem:[%s5073_s3 + $0x98] sm:$0xff] }
  0x6e   : > { %660 = vmatprep.mubr.f32.mxu1 %v5079_v0 }
  0x70   : > { %2625 = vmatmul.mubr.msk.f32.gmra.mrb[28].mxu0 %vm302_vm0, %v284_v27 }
  0x71   : > { %2641 = vmatmul.mubr.msk.f32.gmra.mrb[28].mxu1 %vm302_vm0, %v284_v27  ;;  %505 = vmatprep.mubr.f32.mxu0 %v5079_v0  ;;  %v1050_v27 = vld [vmem:[%s5073_s3 + $0xb8] sm:$0xff] }
  0x72   : > { %666 = vmatprep.mubr.f32.mxu1 %v5079_v0  ;;  %v3969_v54 = vpack.c.bf16 %v1050_v27, %v1046_v26  ;;  %v4000_v27 = vpack.c.bf16 %v1049_v57, %v1045_v48  ;;  %v4002_v0 = vpack.c.bf16 %v1056_v11, %v1052_v59  ;;  %v4017_v48 = vpack.c.bf16 %v1058_v14, %v1054_v13  ;;  %v1057_v57 = vld [vmem:[%s5073_s3 + $0xf0] sm:$0xff]  ;;  %v1060_v59 = vld [vmem:[%s5073_s3 + $0x108] sm:$0xff]  ;;  %v1062_v13 = vld [vmem:[%s5073_s3 + $0x118] sm:$0xff] }
  0x73   : > { %v1064_v11 = vld [vmem:[%s5073_s3 + $0x128] sm:$0xff]  ;;  %v1066_v14 = vld [vmem:[%s5073_s3 + $0x138] sm:$0xff] }
  0x74   : > { %2626 = vmatmul.mubr.msk.f32.gmra.mrb[30].mxu0 %vm302_vm0, %v285_v28  ;;  %5196 = vst [vmem:[#allocation10_spill] sm:$0xff] %v3969_v54  ;;  %5200 = vst [vmem:[#allocation14_spill] sm:$0xff] %v4000_v27 }
  0x75   : > { %2642 = vmatmul.mubr.msk.f32.gmra.mrb[30].mxu1 %vm302_vm0, %v285_v28  ;;  %5201 = vst [vmem:[#allocation15_spill] sm:$0xff] %v4002_v0  ;;  %5203 = vst [vmem:[#allocation17_spill] sm:$0xff] %v4017_v48 }
 0x10b   : > { %v3897_v61 = vpop.f32.mrb[0].mxu0 }
 0x10c   : > { %v3901_v63 = vpop.f32.mrb[0].mxu1  ;;  %v3903_v1 = vpop.f32.mrb[1].mxu0 }
 0x10d   : > { %v3918_v15 = vpop.f32.mrb[1].mxu1  ;;  %801 = vmatprep.mubr.f32.mxu0 %v3903_v1 }
 0x10e   : > { %946 = vmatprep.mubr.f32.mxu1 %v3918_v15  ;;  %802 = vmatmul.mubr.f32.vlgmr.msra.gmra.mrb[32].mxu0 %v3897_v61 }
 0x10f   : > { %947 = vmatmul.mubr.f32.vlgmr.msra.gmra.mrb[32].mxu1 %v3901_v63  ;;  %v3941_v28 = vpop.f32.mrb[2].mxu0  ;;  %3111 = vmatpush1.bf16.msra.mxu0 %v3899_v62 }
 0x110   : > { %v3946_v35 = vpop.f32.mrb[2].mxu1  ;;  %v3948_v38 = vpop.f32.mrb[3].mxu0  ;;  %3143 = vmatpush1.bf16.msra.mxu1 %v3905_v2  ;;  %3113 = vmatprep.subr.bf16.mxu0 %v3907_v9  ;;  %v4050_v9 = vpack.c.bf16 %v1064_v11, %v1060_v59  ;;  %v1068_v59 = vld [vmem:[%s5073_s3 + $0x148] sm:$0xff] }
 0x111   : > { %v3965_v52 = vpop.f32.mrb[3].mxu1  ;;  %806 = vmatprep.mubr.f32.mxu0 %v3948_v38  ;;  %3145 = vmatprep.subr.bf16.mxu1 %v3921_v21  ;;  %v1051_v21 = vld [vmem:[%s5073_s3 + $0xc0] sm:$0xff]  ;;  %v1072_v11 = vld [vmem:[%s5073_s3 + $0x168] sm:$0xff] }
 0x112   : > { %951 = vmatprep.mubr.f32.mxu1 %v3965_v52  ;;  %807 = vmatmul.mubr.f32.gmra.mrb[34].mxu0 %v3941_v28  ;;  %5209 = vst [vmem:[#allocation23_spill] sm:$0xff] %v4050_v9 }
 0x113   : > { %952 = vmatmul.mubr.f32.gmra.mrb[34].mxu1 %v3946_v35  ;;  %v3989_v22 = vpop.f32.mrb[4].mxu0  ;;  %3115 = vmatpush1.bf16.msra.mxu0 %v3944_v29 }
 0x114   : > { %v3994_v25 = vpop.f32.mrb[4].mxu1  ;;  %v3996_v26 = vpop.f32.mrb[5].mxu0  ;;  %3147 = vmatpush1.bf16.msra.mxu1 %v3952_v40  ;;  %3117 = vmatprep.subr.bf16.mxu0 %v3954_v44  ;;  %v4040_v44 = vpack.c.bf16 %v1055_v45, %v1051_v21  ;;  %v1063_v21 = vld [vmem:[%s5073_s3 + $0x120] sm:$0xff]  ;;  %v1061_v45 = vld [vmem:[%s5073_s3 + $0x110] sm:$0xff] }
 0x115   : > { %5198 = vst [vmem:[#allocation12_spill] sm:$0xff] %v3994_v25  ;;  %5199 = vst [vmem:[#allocation13_spill] sm:$0xff] %v3996_v26  ;;  %v4013_v29 = vpop.f32.mrb[5].mxu1  ;;  %811 = vmatprep.mubr.f32.mxu0 %v3996_v26  ;;  %3149 = vmatprep.subr.bf16.mxu1 %v3969_v54  ;;  %v4048_v26 = vpack.c.bf16 %v1057_v57, %v1053_v47  ;;  %v4065_v47 = vpack.c.bf16 %v1066_v14, %v1062_v13  ;;  %v1065_v57 = vld [vmem:[%s5073_s3 + $0x130] sm:$0xff]  ;;  %v1070_v13 = vld [vmem:[%s5073_s3 + $0x158] sm:$0xff] }
 0x116   : > { %5202 = vst [vmem:[#allocation16_spill] sm:$0xff] %v4013_v29  ;;  %956 = vmatprep.mubr.f32.mxu1 %v4013_v29  ;;  %812 = vmatmul.mubr.f32.gmra.mrb[36].mxu0 %v3989_v22  ;;  %5205 = vst [vmem:[#allocation19_spill] sm:$0xff] %v4040_v44  ;;  %v1074_v14 = vld [vmem:[%s5073_s3 + $0x178] sm:$0xff] }
 0x117   : > { %957 = vmatmul.mubr.f32.gmra.mrb[36].mxu1 %v3994_v25  ;;  %v4037_v54 = vpop.f32.mrb[6].mxu0  ;;  %3119 = vmatpush1.bf16.msra.mxu0 %v3992_v24  ;;  %5208 = vst [vmem:[#allocation22_spill] sm:$0xff] %v4048_v26  ;;  %v1059_v25 = vld [vmem:[%s5073_s3 + $0x100] sm:$0xff]  ;;  %5211 = vst [vmem:[#allocation25_spill] sm:$0xff] %v4065_v47 }
 0x118   : > { %5204 = vst [vmem:[#allocation18_spill] sm:$0xff] %v4037_v54  ;;  %v4042_v40 = vpop.f32.mrb[6].mxu1  ;;  %v4044_v29 = vpop.f32.mrb[7].mxu0  ;;  %3151 = vmatpush1.bf16.msra.mxu1 %v4000_v27  ;;  %3121 = vmatprep.subr.bf16.mxu0 %v4002_v0  ;;  %v4088_v0 = vpack.c.bf16 %v1063_v21, %v1059_v25  ;;  %v1071_v25 = vld [vmem:[%s5073_s3 + $0x160] sm:$0xff]  ;;  %v1069_v21 = vld [vmem:[%s5073_s3 + $0x150] sm:$0xff] }
 0x119   : > { %5206 = vst [vmem:[#allocation20_spill] sm:$0xff] %v4042_v40  ;;  %5207 = vst [vmem:[#allocation21_spill] sm:$0xff] %v4044_v29  ;;  %v4061_v24 = vpop.f32.mrb[7].mxu1  ;;  %816 = vmatprep.mubr.f32.mxu0 %v4044_v29  ;;  %3153 = vmatprep.subr.bf16.mxu1 %v4017_v48  ;;  %v4096_v29 = vpack.c.bf16 %v1065_v57, %v1061_v45  ;;  %v4113_v45 = vpack.c.bf16 %v1074_v14, %v1070_v13  ;;  %v1073_v57 = vld [vmem:[%s5073_s3 + $0x170] sm:$0xff]  ;;  %v1078_v13 = vld [vmem:[%s5073_s3 + $0x198] sm:$0xff] }
 0x11a   : > { %5210 = vst [vmem:[#allocation24_spill] sm:$0xff] %v4061_v24  ;;  %961 = vmatprep.mubr.f32.mxu1 %v4061_v24  ;;  %817 = vmatmul.mubr.f32.gmra.mrb[38].mxu0 %v4037_v54  ;;  %5213 = vst [vmem:[#allocation27_spill] sm:$0xff] %v4088_v0  ;;  %v4098_v54 = vpack.c.bf16 %v1072_v11, %v1068_v59  ;;  %v1076_v59 = vld [vmem:[%s5073_s3 + $0x188] sm:$0xff]  ;;  %v1082_v14 = vld [vmem:[%s5073_s3 + $0x1b8] sm:$0xff] }
 0x11b   : > { %962 = vmatmul.mubr.f32.gmra.mrb[38].mxu1 %v4042_v40  ;;  %v4085_v48 = vpop.f32.mrb[8].mxu0  ;;  %3123 = vmatpush1.bf16.msra.mxu0 %v4040_v44  ;;  %5216 = vst [vmem:[#allocation30_spill] sm:$0xff] %v4096_v29  ;;  %v1067_v40 = vld [vmem:[%s5073_s3 + $0x140] sm:$0xff]  ;;  %5219 = vst [vmem:[#allocation33_spill] sm:$0xff] %v4113_v45  ;;  %v1080_v11 = vld [vmem:[%s5073_s3 + $0x1a8] sm:$0xff] }
 0x11c   : > { %5212 = vst [vmem:[#allocation26_spill] sm:$0xff] %v4085_v48  ;;  %v4090_v27 = vpop.f32.mrb[8].mxu1  ;;  %v4092_v24 = vpop.f32.mrb[9].mxu0  ;;  %3155 = vmatpush1.bf16.msra.mxu1 %v4048_v26  ;;  %3125 = vmatprep.subr.bf16.mxu0 %v4050_v9  ;;  %5217 = vst [vmem:[#allocation31_spill] sm:$0xff] %v4098_v54  ;;  %v4136_v9 = vpack.c.bf16 %v1071_v25, %v1067_v40  ;;  %v1079_v40 = vld [vmem:[%s5073_s3 + $0x1a0] sm:$0xff]  ;;  %v1077_v25 = vld [vmem:[%s5073_s3 + $0x190] sm:$0xff] }
 0x11d   : > { %5214 = vst [vmem:[#allocation28_spill] sm:$0xff] %v4090_v27  ;;  %5215 = vst [vmem:[#allocation29_spill] sm:$0xff] %v4092_v24  ;;  %v4109_v44 = vpop.f32.mrb[9].mxu1  ;;  %821 = vmatprep.mubr.f32.mxu0 %v4092_v24  ;;  %3157 = vmatprep.subr.bf16.mxu1 %v4065_v47  ;;  %v4144_v24 = vpack.c.bf16 %v1073_v57, %v1069_v21  ;;  %v4161_v21 = vpack.c.bf16 %v1082_v14, %v1078_v13  ;;  %v1081_v57 = vld [vmem:[%s5073_s3 + $0x1b0] sm:$0xff]  ;;  %v1086_v13 = vld [vmem:[%s5073_s3 + $0x1d8] sm:$0xff] }
 0x11e   : > { %5218 = vst [vmem:[#allocation32_spill] sm:$0xff] %v4109_v44  ;;  %966 = vmatprep.mubr.f32.mxu1 %v4109_v44  ;;  %822 = vmatmul.mubr.f32.gmra.mrb[40].mxu0 %v4085_v48  ;;  %5221 = vst [vmem:[#allocation35_spill] sm:$0xff] %v4136_v9  ;;  %v4146_v48 = vpack.c.bf16 %v1080_v11, %v1076_v59  ;;  %v1084_v59 = vld [vmem:[%s5073_s3 + $0x1c8] sm:$0xff]  ;;  %v1090_v14 = vld [vmem:[%s5073_s3 + $0x1f8] sm:$0xff] }
 0x11f   : > { %967 = vmatmul.mubr.f32.gmra.mrb[40].mxu1 %v4090_v27  ;;  %v4133_v47 = vpop.f32.mrb[10].mxu0  ;;  %3127 = vmatpush1.bf16.msra.mxu0 %v4088_v0  ;;  %5224 = vst [vmem:[#allocation38_spill] sm:$0xff] %v4144_v24  ;;  %v1075_v27 = vld [vmem:[%s5073_s3 + $0x180] sm:$0xff]  ;;  %5227 = vst [vmem:[#allocation41_spill] sm:$0xff] %v4161_v21  ;;  %v1088_v11 = vld [vmem:[%s5073_s3 + $0x1e8] sm:$0xff] }
 0x120   : > { %5220 = vst [vmem:[#allocation34_spill] sm:$0xff] %v4133_v47  ;;  %v4138_v26 = vpop.f32.mrb[10].mxu1  ;;  %v4140_v44 = vpop.f32.mrb[11].mxu0  ;;  %3159 = vmatpush1.bf16.msra.mxu1 %v4096_v29  ;;  %3129 = vmatprep.subr.bf16.mxu0 %v4098_v54  ;;  %5225 = vst [vmem:[#allocation39_spill] sm:$0xff] %v4146_v48  ;;  %v4184_v54 = vpack.c.bf16 %v1079_v40, %v1075_v27  ;;  %v1087_v27 = vld [vmem:[%s5073_s3 + $0x1e0] sm:$0xff] }
 0x121   : > { %5222 = vst [vmem:[#allocation36_spill] sm:$0xff] %v4138_v26  ;;  %5223 = vst [vmem:[#allocation37_spill] sm:$0xff] %v4140_v44  ;;  %v4157_v0 = vpop.f32.mrb[11].mxu1  ;;  %826 = vmatprep.mubr.f32.mxu0 %v4140_v44  ;;  %3161 = vmatprep.subr.bf16.mxu1 %v4113_v45  ;;  %v4192_v44 = vpack.c.bf16 %v1081_v57, %v1077_v25 }
 0x122   : > { %5226 = vst [vmem:[#allocation40_spill] sm:$0xff] %v4157_v0  ;;  %971 = vmatprep.mubr.f32.mxu1 %v4157_v0  ;;  %827 = vmatmul.mubr.f32.gmra.mrb[42].mxu0 %v4133_v47  ;;  %5228 = vst [vmem:[#allocation42_spill] sm:$0xff] %v4184_v54  ;;  %v4194_v47 = vpack.c.bf16 %v1088_v11, %v1084_v59 }
 0x123   : > { %972 = vmatmul.mubr.f32.gmra.mrb[42].mxu1 %v4138_v26  ;;  %v4181_v45 = vpop.f32.mrb[12].mxu0  ;;  %3131 = vmatpush1.bf16.msra.mxu0 %v4136_v9  ;;  %5229 = vst [vmem:[#allocation43_spill] sm:$0xff] %v4192_v44  ;;  %v1083_v26 = vld [vmem:[%s5073_s3 + $0x1c0] sm:$0xff] }
 0x124   : > { %v4186_v29 = vpop.f32.mrb[12].mxu1  ;;  %v4188_v0 = vpop.f32.mrb[13].mxu0  ;;  %3163 = vmatpush1.bf16.msra.mxu1 %v4144_v24  ;;  %3133 = vmatprep.subr.bf16.mxu0 %v4146_v48  ;;  %5230 = vst [vmem:[#allocation44_spill] sm:$0xff] %v4194_v47  ;;  %v4206_v24 = vpack.c.bf16 %v1090_v14, %v1086_v13  ;;  %v4214_v57 = vpack.c.bf16 %v1087_v27, %v1083_v26 }
 0x125   : > { %v4202_v40 = vpop.f32.mrb[13].mxu1  ;;  %831 = vmatprep.mubr.f32.mxu0 %v4188_v0  ;;  %3165 = vmatprep.subr.bf16.mxu1 %v4161_v21 }
 0x126   : > { %5231 = vst [vmem:[#allocation45_spill] sm:$0xff] %v4202_v40  ;;  %5232 = vst [vmem:[#allocation46_spill] sm:$0xff] %v4206_v24  ;;  %976 = vmatprep.mubr.f32.mxu1 %v4202_v40  ;;  %832 = vmatmul.mubr.f32.gmra.mrb[44].mxu0 %v4181_v45 }
 0x127   : > { %977 = vmatmul.mubr.f32.gmra.mrb[44].mxu1 %v4186_v29  ;;  %v4211_v25 = vpop.f32.mrb[14].mxu0  ;;  %3135 = vmatpush1.bf16.msra.mxu0 %v4184_v54  ;;  %5234 = vst [vmem:[#allocation48_spill] sm:$0xff] %v4214_v57 }
 0x128   : > { %5233 = vst [vmem:[#allocation47_spill] sm:$0xff] %v4211_v25  ;;  %v4216_v59 = vpop.f32.mrb[14].mxu1  ;;  %v4218_v11 = vpop.f32.mrb[15].mxu0  ;;  %3167 = vmatpush1.bf16.msra.mxu1 %v4192_v44  ;;  %3137 = vmatprep.subr.bf16.mxu0 %v4194_v47 }
 0x129   : > { %5235 = vst [vmem:[#allocation49_spill] sm:$0xff] %v4216_v59  ;;  %5236 = vst [vmem:[#allocation50_spill] sm:$0xff] %v4218_v11  ;;  %v4222_v13 = vpop.f32.mrb[15].mxu1  ;;  %836 = vmatprep.mubr.f32.mxu0 %v4218_v11  ;;  %3169 = vmatprep.subr.bf16.mxu1 %v4206_v24 }
 0x12a   : > { %5237 = vst [vmem:[#allocation51_spill] sm:$0xff] %v4222_v13  ;;  %981 = vmatprep.mubr.f32.mxu1 %v4222_v13  ;;  %837 = vmatmul.mubr.f32.gmra.mrb[46].mxu0 %v4211_v25 }
 0x12b   : > { %982 = vmatmul.mubr.f32.gmra.mrb[46].mxu1 %v4216_v59  ;;  %v4229_v26 = vpop.f32.mrb[16].mxu0  ;;  %3139 = vmatpush1.bf16.msra.mxu0 %v4214_v57 }
 0x12c   : > { %5238 = vst [vmem:[#allocation52_spill] sm:$0xff] %v4229_v26  ;;  %v4232_v14 = vpop.f32.mrb[16].mxu1  ;;  %v4234_v27 = vpop.f32.mrb[17].mxu0  ;;  %3173 = vmatprep.subr.bf16.mxu0 %v3506_v31 }
 0x12d   : > { %5239 = vst [vmem:[#allocation53_spill] sm:$0xff] %v4232_v14  ;;  %5240 = vst [vmem:[#allocation54_spill] sm:$0xff] %v4234_v27  ;;  %v4237_v47 = vpop.f32.mrb[17].mxu1  ;;  %841 = vmatprep.mubr.f32.mxu0 %v4234_v27 }
 0x12e   : > { %5241 = vst [vmem:[#allocation55_spill] sm:$0xff] %v4237_v47  ;;  %986 = vmatprep.mubr.f32.mxu1 %v4237_v47  ;;  %842 = vmatmul.mubr.f32.gmra.mrb[48].mxu0 %v4229_v26 }
 0x12f   : > { %987 = vmatmul.mubr.f32.gmra.mrb[48].mxu1 %v4232_v14  ;;  %v4243_v24 = vpop.f32.mrb[18].mxu0 }
 0x130   : > { %5242 = vst [vmem:[#allocation56_spill] sm:$0xff] %v4243_v24  ;;  %v4245_v44 = vpop.f32.mrb[18].mxu1  ;;  %v4247_v57 = vpop.f32.mrb[19].mxu0 }
 0x131   : > { %5243 = vst [vmem:[#allocation57_spill] sm:$0xff] %v4245_v44  ;;  %5244 = vst [vmem:[#allocation58_spill] sm:$0xff] %v4247_v57  ;;  %v4249_v54 = vpop.f32.mrb[19].mxu1  ;;  %846 = vmatprep.mubr.f32.mxu0 %v4247_v57 }
 0x132   : > { %5245 = vst [vmem:[#allocation59_spill] sm:$0xff] %v4249_v54  ;;  %991 = vmatprep.mubr.f32.mxu1 %v4249_v54  ;;  %847 = vmatmul.mubr.f32.gmra.mrb[50].mxu0 %v4243_v24 }
 0x133   : > { %992 = vmatmul.mubr.f32.gmra.mrb[50].mxu1 %v4245_v44  ;;  %v4255_v31 = vpop.f32.mrb[20].mxu0 }
 0x134   : > { %5246 = vst [vmem:[#allocation60_spill] sm:$0xff] %v4255_v31  ;;  %v4257_v47 = vpop.f32.mrb[20].mxu1  ;;  %v4259_v27 = vpop.f32.mrb[21].mxu0 }
 0x135   : > { %5247 = vst [vmem:[#allocation61_spill] sm:$0xff] %v4257_v47  ;;  %5248 = vst [vmem:[#allocation62_spill] sm:$0xff] %v4259_v27  ;;  %v4261_v14 = vpop.f32.mrb[21].mxu1  ;;  %851 = vmatprep.mubr.f32.mxu0 %v4259_v27 }
 0x136   : > { %5249 = vst [vmem:[#allocation63_spill] sm:$0xff] %v4261_v14  ;;  %996 = vmatprep.mubr.f32.mxu1 %v4261_v14  ;;  %852 = vmatmul.mubr.f32.gmra.mrb[52].mxu0 %v4255_v31 }
 0x137   : > { %997 = vmatmul.mubr.f32.gmra.mrb[52].mxu1 %v4257_v47  ;;  %v4267_v54 = vpop.f32.mrb[22].mxu0 }
 0x138   : > { %5250 = vst [vmem:[#allocation64_spill] sm:$0xff] %v4267_v54  ;;  %v4269_v57 = vpop.f32.mrb[22].mxu1  ;;  %v4271_v44 = vpop.f32.mrb[23].mxu0 }
 0x139   : > { %5251 = vst [vmem:[#allocation65_spill] sm:$0xff] %v4269_v57  ;;  %5252 = vst [vmem:[#allocation66_spill] sm:$0xff] %v4271_v44  ;;  %v4273_v24 = vpop.f32.mrb[23].mxu1  ;;  %856 = vmatprep.mubr.f32.mxu0 %v4271_v44 }
 0x13a   : > { %5253 = vst [vmem:[#allocation67_spill] sm:$0xff] %v4273_v24  ;;  %1001 = vmatprep.mubr.f32.mxu1 %v4273_v24  ;;  %857 = vmatmul.mubr.f32.gmra.mrb[54].mxu0 %v4267_v54 }
 0x13b   : > { %1002 = vmatmul.mubr.f32.gmra.mrb[54].mxu1 %v4269_v57  ;;  %v4279_v14 = vpop.f32.mrb[24].mxu0 }
 0x13c   : > { %5254 = vst [vmem:[#allocation68_spill] sm:$0xff] %v4279_v14  ;;  %v4281_v27 = vpop.f32.mrb[24].mxu1  ;;  %v4283_v47 = vpop.f32.mrb[25].mxu0 }
 0x13d   : > { %5255 = vst [vmem:[#allocation69_spill] sm:$0xff] %v4281_v27  ;;  %5256 = vst [vmem:[#allocation70_spill] sm:$0xff] %v4283_v47  ;;  %v4285_v31 = vpop.f32.mrb[25].mxu1  ;;  %861 = vmatprep.mubr.f32.mxu0 %v4283_v47 }
 0x13e   : > { %5257 = vst [vmem:[#allocation71_spill] sm:$0xff] %v4285_v31  ;;  %1006 = vmatprep.mubr.f32.mxu1 %v4285_v31  ;;  %862 = vmatmul.mubr.f32.gmra.mrb[56].mxu0 %v4279_v14 }
 0x13f   : > { %1007 = vmatmul.mubr.f32.gmra.mrb[56].mxu1 %v4281_v27  ;;  %v4291_v24 = vpop.f32.mrb[26].mxu0 }
 0x140   : > { %5258 = vst [vmem:[#allocation72_spill] sm:$0xff] %v4291_v24  ;;  %v4293_v44 = vpop.f32.mrb[26].mxu1  ;;  %v4295_v57 = vpop.f32.mrb[27].mxu0 }
 0x141   : > { %5259 = vst [vmem:[#allocation73_spill] sm:$0xff] %v4293_v44  ;;  %5260 = vst [vmem:[#allocation74_spill] sm:$0xff] %v4295_v57  ;;  %v4297_v54 = vpop.f32.mrb[27].mxu1  ;;  %866 = vmatprep.mubr.f32.mxu0 %v4295_v57 }
 0x142   : > { %5261 = vst [vmem:[#allocation75_spill] sm:$0xff] %v4297_v54  ;;  %1011 = vmatprep.mubr.f32.mxu1 %v4297_v54  ;;  %867 = vmatmul.mubr.f32.gmra.mrb[58].mxu0 %v4291_v24 }
 0x143   : > { %1012 = vmatmul.mubr.f32.gmra.mrb[58].mxu1 %v4293_v44  ;;  %v4303_v31 = vpop.f32.mrb[28].mxu0 }
 0x144   : > { %5262 = vst [vmem:[#allocation76_spill] sm:$0xff] %v4303_v31  ;;  %v4305_v47 = vpop.f32.mrb[28].mxu1  ;;  %v4307_v27 = vpop.f32.mrb[29].mxu0 }
 0x145   : > { %5263 = vst [vmem:[#allocation77_spill] sm:$0xff] %v4305_v47  ;;  %5264 = vst [vmem:[#allocation78_spill] sm:$0xff] %v4307_v27  ;;  %v4309_v14 = vpop.f32.mrb[29].mxu1  ;;  %871 = vmatprep.mubr.f32.mxu0 %v4307_v27  ;;  %v1085_v27 = vld [vmem:[%s5073_s3 + $0x1d0] sm:$0xff] }
 0x146   : > { %5265 = vst [vmem:[#allocation79_spill] sm:$0xff] %v4309_v14  ;;  %1016 = vmatprep.mubr.f32.mxu1 %v4309_v14  ;;  %872 = vmatmul.mubr.f32.gmra.mrb[60].mxu0 %v4303_v31  ;;  %v5270_v14 = vmov 0.0  }
 0x147   : > { %1017 = vmatmul.mubr.f32.gmra.mrb[60].mxu1 %v4305_v47  ;;  %v4315_v54 = vpop.f32.mrb[30].mxu0  ;;  %v1089_v47 = vld [vmem:[%s5073_s3 + $0x1f0] sm:$0xff] }
 0x148   : > { %5266 = vst [vmem:[#allocation80_spill] sm:$0xff] %v4315_v54  ;;  %v4317_v57 = vpop.f32.mrb[30].mxu1  ;;  %v4319_v44 = vpop.f32.mrb[31].mxu0  ;;  %v4335_v31 = vpack.c.bf16 %v1089_v47, %v1085_v27 }
 0x149   : > { %5267 = vst [vmem:[#allocation81_spill] sm:$0xff] %v4317_v57  ;;  %5268 = vst [vmem:[#allocation82_spill] sm:$0xff] %v4319_v44  ;;  %v4321_v24 = vpop.f32.mrb[31].mxu1  ;;  %876 = vmatprep.mubr.f32.mxu0 %v4319_v44 }
 0x14a   : > { %5269 = vst [vmem:[#allocation83_spill] sm:$0xff] %v4321_v24  ;;  %1021 = vmatprep.mubr.f32.mxu1 %v4321_v24  ;;  %877 = vmatmul.mubr.f32.gmra.mrb[62].mxu0 %v4315_v54  ;;  %5271 = vst [vmem:[#allocation84_spill] sm:$0xff] %v4335_v31 }
 0x14b   : > { %1022 = vmatmul.mubr.f32.gmra.mrb[62].mxu1 %v4317_v57  ;;  %1155 = vmatprep.mubr.f32.mxu0 %v5270_v14 }
 0x14c   : > { %1316 = vmatprep.mubr.f32.mxu1 %v5270_v14  ;;  %3171 = vmatpush1.bf16.msra.mxu1 %v4335_v31 }
 0x14d   : > { %3205 = vmatprep.subr.bf16.mxu1 %v3508_v32 }
 0x1e1   : > { %v2740_v24 = vpop.f32.mrb[32].mxu0 }
 0x1e2   : > { %v2820_v44 = vpop.f32.mrb[32].mxu1  ;;  %v2741_v57 = vpop.f32.mrb[33].mxu0 }
 0x1e3   : > { %v2742_v54 = vadd.f32 %v2741_v57, %v2740_v24  ;;  %v2821_v26 = vpop.f32.mrb[33].mxu1 }
 0x1e4   : > { %v2822_v13 = vadd.f32 %v2821_v26, %v2820_v44 }
 0x1e5   : > { %v2743_v11 = vpop.f32.mrb[34].mxu0 }
 0x1e6   : > { %v949_v21 = vadd.f32 %v2822_v13, %v2742_v54  ;;  %v2823_v48 = vpop.f32.mrb[34].mxu1  ;;  %v2744_v59 = vpop.f32.mrb[35].mxu0 }
 0x1e7   : > { %v2745_v25 = vadd.f32 %v2744_v59, %v2743_v11  ;;  %v2824_v9 = vpop.f32.mrb[35].mxu1 }
 0x1e8   : > { %v2825_v40 = vadd.f32 %v2824_v9, %v2823_v48  ;;  %1156 = vmatmul.mubr.f32.vlgmr.msra.gmra.mrb[64].mxu0 %v949_v21  ;;  %1317 = vmatmul.mubr.f32.vlgmr.msra.gmra.mrb[64].mxu1 %v949_v21 }
 0x1e9   : > { %v2746_v47 = vpop.f32.mrb[36].mxu0  ;;  %1161 = vmatprep.mubr.f32.mxu0 %v5270_v14  ;;  %1322 = vmatprep.mubr.f32.mxu1 %v5270_v14 }
 0x1ea   : > { %v954_v32 = vadd.f32 %v2825_v40, %v2745_v25  ;;  %v2826_v27 = vpop.f32.mrb[36].mxu1  ;;  %v2747_v31 = vpop.f32.mrb[37].mxu0  ;;  %3175 = vmatpush3.bf16.msra.mxu0 %v3520_v36  ;;  %3207 = vmatpush3.bf16.msra.mxu1 %v3534_v41 }
 0x1eb   : > { %v2748_v44 = vadd.f32 %v2747_v31, %v2746_v47  ;;  %v2827_v54 = vpop.f32.mrb[37].mxu1  ;;  %3177 = vmatprep.subr.bf16.mxu0 %v3536_v42  ;;  %3209 = vmatprep.subr.bf16.mxu1 %v3548_v46 }
 0x1ec   : > { %v2828_v9 = vadd.f32 %v2827_v54, %v2826_v27  ;;  %1162 = vmatmul.mubr.f32.gmra.mrb[66].mxu0 %v954_v32  ;;  %1323 = vmatmul.mubr.f32.gmra.mrb[66].mxu1 %v954_v32 }
 0x1ed   : > { %v2749_v24 = vpop.f32.mrb[38].mxu0  ;;  %1167 = vmatprep.mubr.f32.mxu0 %v5270_v14  ;;  %1328 = vmatprep.mubr.f32.mxu1 %v5270_v14 }
 0x1ee   : > { %v959_v48 = vadd.f32 %v2828_v9, %v2748_v44  ;;  %v2829_v21 = vpop.f32.mrb[38].mxu1  ;;  %v2750_v40 = vpop.f32.mrb[39].mxu0  ;;  %3179 = vmatpush3.bf16.msra.mxu0 %v3572_v53  ;;  %3211 = vmatpush3.bf16.msra.mxu1 %v3579_v55 }
 0x1ef   : > { %v2751_v36 = vadd.f32 %v2750_v40, %v2749_v24  ;;  %v2830_v41 = vpop.f32.mrb[39].mxu1  ;;  %3181 = vmatprep.subr.bf16.mxu0 %v3581_v56  ;;  %3213 = vmatprep.subr.bf16.mxu1 %v3594_v60 }
 0x1f0   : > { %v2831_v42 = vadd.f32 %v2830_v41, %v2829_v21  ;;  %1168 = vmatmul.mubr.f32.gmra.mrb[68].mxu0 %v959_v48  ;;  %1329 = vmatmul.mubr.f32.gmra.mrb[68].mxu1 %v959_v48 }
 0x1f1   : > { %v2752_v46 = vpop.f32.mrb[40].mxu0  ;;  %1173 = vmatprep.mubr.f32.mxu0 %v5270_v14  ;;  %1334 = vmatprep.mubr.f32.mxu1 %v5270_v14 }
 0x1f2   : > { %v964_v25 = vadd.f32 %v2831_v42, %v2751_v36  ;;  %v2832_v57 = vpop.f32.mrb[40].mxu1  ;;  %v2753_v59 = vpop.f32.mrb[41].mxu0  ;;  %3183 = vmatpush3.bf16.msra.mxu0 %v3616_v4  ;;  %3215 = vmatpush3.bf16.msra.mxu1 %v3620_v5 }
 0x1f3   : > { %v2754_v53 = vadd.f32 %v2753_v59, %v2752_v46  ;;  %v2833_v55 = vpop.f32.mrb[41].mxu1  ;;  %3185 = vmatprep.subr.bf16.mxu0 %v3622_v6  ;;  %3217 = vmatprep.subr.bf16.mxu1 %v3635_v10 }
 0x1f4   : > { %v2834_v56 = vadd.f32 %v2833_v55, %v2832_v57  ;;  %1174 = vmatmul.mubr.f32.gmra.mrb[70].mxu0 %v964_v25  ;;  %1335 = vmatmul.mubr.f32.gmra.mrb[70].mxu1 %v964_v25 }
 0x1f5   : > { %v2755_v60 = vpop.f32.mrb[42].mxu0  ;;  %1179 = vmatprep.mubr.f32.mxu0 %v5270_v14  ;;  %1340 = vmatprep.mubr.f32.mxu1 %v5270_v14 }
 0x1f6   : > { %v969_v11 = vadd.f32 %v2834_v56, %v2754_v53  ;;  %v2835_v13 = vpop.f32.mrb[42].mxu1  ;;  %v2756_v26 = vpop.f32.mrb[43].mxu0  ;;  %3187 = vmatpush3.bf16.msra.mxu0 %v3657_v17  ;;  %3219 = vmatpush3.bf16.msra.mxu1 %v3661_v18 }
 0x1f7   : > { %v2757_v4 = vadd.f32 %v2756_v26, %v2755_v60  ;;  %v2836_v5 = vpop.f32.mrb[43].mxu1  ;;  %3189 = vmatprep.subr.bf16.mxu0 %v3663_v19  ;;  %3221 = vmatprep.subr.bf16.mxu1 %v3676_v23 }
 0x1f8   : > { %v2837_v6 = vadd.f32 %v2836_v5, %v2835_v13  ;;  %1180 = vmatmul.mubr.f32.gmra.mrb[72].mxu0 %v969_v11  ;;  %1341 = vmatmul.mubr.f32.gmra.mrb[72].mxu1 %v969_v11 }
 0x1f9   : > { %v2758_v10 = vpop.f32.mrb[44].mxu0  ;;  %1185 = vmatprep.mubr.f32.mxu0 %v5270_v14  ;;  %1346 = vmatprep.mubr.f32.mxu1 %v5270_v14 }
 0x1fa   : > { %v974_v31 = vadd.f32 %v2837_v6, %v2757_v4  ;;  %v2838_v47 = vpop.f32.mrb[44].mxu1  ;;  %v2759_v32 = vpop.f32.mrb[45].mxu0  ;;  %3191 = vmatpush3.bf16.msra.mxu0 %v3698_v30  ;;  %3223 = vmatpush3.bf16.msra.mxu1 %v3702_v33 }
 0x1fb   : > { %v2760_v17 = vadd.f32 %v2759_v32, %v2758_v10  ;;  %v2839_v18 = vpop.f32.mrb[45].mxu1  ;;  %3193 = vmatprep.subr.bf16.mxu0 %v3704_v34  ;;  %3225 = vmatprep.subr.bf16.mxu1 %v3717_v39 }
 0x1fc   : > { %v2840_v19 = vadd.f32 %v2839_v18, %v2838_v47  ;;  %1186 = vmatmul.mubr.f32.gmra.mrb[74].mxu0 %v974_v31  ;;  %1347 = vmatmul.mubr.f32.gmra.mrb[74].mxu1 %v974_v31 }
 0x1fd   : > { %v2761_v23 = vpop.f32.mrb[46].mxu0  ;;  %1191 = vmatprep.mubr.f32.mxu0 %v5270_v14  ;;  %1352 = vmatprep.mubr.f32.mxu1 %v5270_v14 }
 0x1fe   : > { %v979_v27 = vadd.f32 %v2840_v19, %v2760_v17  ;;  %v2841_v44 = vpop.f32.mrb[46].mxu1  ;;  %v2762_v54 = vpop.f32.mrb[47].mxu0  ;;  %3195 = vmatpush3.bf16.msra.mxu0 %v3739_v49  ;;  %3227 = vmatpush3.bf16.msra.mxu1 %v3743_v50 }
 0x1ff   : > { %v2763_v30 = vadd.f32 %v2762_v54, %v2761_v23  ;;  %v2842_v33 = vpop.f32.mrb[47].mxu1  ;;  %3197 = vmatprep.subr.bf16.mxu0 %v3745_v51  ;;  %3229 = vmatprep.subr.bf16.mxu1 %v3758_v58 }
 0x200   : > { %v2843_v34 = vadd.f32 %v2842_v33, %v2841_v44  ;;  %1192 = vmatmul.mubr.f32.gmra.mrb[76].mxu0 %v979_v27  ;;  %1353 = vmatmul.mubr.f32.gmra.mrb[76].mxu1 %v979_v27 }
 0x201   : > { %v2764_v39 = vpop.f32.mrb[48].mxu0  ;;  %1197 = vmatprep.mubr.f32.mxu0 %v5270_v14  ;;  %1358 = vmatprep.mubr.f32.mxu1 %v5270_v14 }
 0x202   : > { %v984_v9 = vadd.f32 %v2843_v34, %v2763_v30  ;;  %v2844_v24 = vpop.f32.mrb[48].mxu1  ;;  %v2765_v48 = vpop.f32.mrb[49].mxu0  ;;  %3199 = vmatpush3.bf16.msra.mxu0 %v3780_v3  ;;  %3231 = vmatpush3.bf16.msra.mxu1 %v3784_v7 }
 0x203   : > { %v2766_v49 = vadd.f32 %v2765_v48, %v2764_v39  ;;  %v2845_v50 = vpop.f32.mrb[49].mxu1  ;;  %3201 = vmatprep.subr.bf16.mxu0 %v3786_v8  ;;  %3233 = vmatprep.subr.bf16.mxu1 %v3796_v12 }
 0x204   : > { %v2846_v51 = vadd.f32 %v2845_v50, %v2844_v24  ;;  %1198 = vmatmul.mubr.f32.gmra.mrb[78].mxu0 %v984_v9  ;;  %1359 = vmatmul.mubr.f32.gmra.mrb[78].mxu1 %v984_v9 }
 0x205   : > { %v2767_v58 = vpop.f32.mrb[50].mxu0  ;;  %1203 = vmatprep.mubr.f32.mxu0 %v5270_v14  ;;  %1364 = vmatprep.mubr.f32.mxu1 %v5270_v14 }
 0x206   : > { %v989_v21 = vadd.f32 %v2846_v51, %v2766_v49  ;;  %v2847_v40 = vpop.f32.mrb[50].mxu1  ;;  %v2768_v36 = vpop.f32.mrb[51].mxu0  ;;  %3203 = vmatpush3.bf16.msra.mxu0 %v3809_v16  ;;  %3235 = vmatpush3.bf16.msra.mxu1 %v3813_v20 }
 0x207   : > { %v2769_v3 = vadd.f32 %v2768_v36, %v2767_v58  ;;  %v2848_v7 = vpop.f32.mrb[51].mxu1  ;;  %3237 = vmatprep.subr.bf16.mxu0 %v3861_v37  ;;  %3269 = vmatprep.subr.bf16.mxu1 %v3869_v43 }
 0x208   : > { %v2849_v8 = vadd.f32 %v2848_v7, %v2847_v40  ;;  %1204 = vmatmul.mubr.f32.gmra.mrb[80].mxu0 %v989_v21  ;;  %1365 = vmatmul.mubr.f32.gmra.mrb[80].mxu1 %v989_v21 }
 0x209   : > { %v2770_v12 = vpop.f32.mrb[52].mxu0  ;;  %1209 = vmatprep.mubr.f32.mxu0 %v5270_v14  ;;  %1370 = vmatprep.mubr.f32.mxu1 %v5270_v14 }
 0x20a   : > { %v994_v41 = vadd.f32 %v2849_v8, %v2769_v3  ;;  %v2850_v42 = vpop.f32.mrb[52].mxu1  ;;  %v2771_v46 = vpop.f32.mrb[53].mxu0 }
 0x20b   : > { %v2772_v16 = vadd.f32 %v2771_v46, %v2770_v12  ;;  %v2851_v25 = vpop.f32.mrb[53].mxu1 }
 0x20c   : > { %v2852_v20 = vadd.f32 %v2851_v25, %v2850_v42  ;;  %1210 = vmatmul.mubr.f32.gmra.mrb[82].mxu0 %v994_v41  ;;  %1371 = vmatmul.mubr.f32.gmra.mrb[82].mxu1 %v994_v41 }
 0x20d   : > { %v2773_v57 = vpop.f32.mrb[54].mxu0  ;;  %1215 = vmatprep.mubr.f32.mxu0 %v5270_v14  ;;  %1376 = vmatprep.mubr.f32.mxu1 %v5270_v14 }
 0x20e   : > { %v999_v37 = vadd.f32 %v2852_v20, %v2772_v16  ;;  %v2853_v43 = vpop.f32.mrb[54].mxu1  ;;  %v2774_v59 = vpop.f32.mrb[55].mxu0 }
 0x20f   : > { %v2775_v53 = vadd.f32 %v2774_v59, %v2773_v57  ;;  %v2854_v55 = vpop.f32.mrb[55].mxu1 }
 0x210   : > { %v2855_v56 = vadd.f32 %v2854_v55, %v2853_v43  ;;  %1216 = vmatmul.mubr.f32.gmra.mrb[84].mxu0 %v999_v37  ;;  %1377 = vmatmul.mubr.f32.gmra.mrb[84].mxu1 %v999_v37 }
 0x211   : > { %v2776_v60 = vpop.f32.mrb[56].mxu0  ;;  %1221 = vmatprep.mubr.f32.mxu0 %v5270_v14  ;;  %1382 = vmatprep.mubr.f32.mxu1 %v5270_v14 }
 0x212   : > { %v1004_v11 = vadd.f32 %v2855_v56, %v2775_v53  ;;  %v2856_v13 = vpop.f32.mrb[56].mxu1  ;;  %v2777_v26 = vpop.f32.mrb[57].mxu0  ;;  %v5272_v56 = vld [vmem:[#allocation12_spill] sm:$0xff] }
 0x213   : > { %v2778_v4 = vadd.f32 %v2777_v26, %v2776_v60  ;;  %v2857_v5 = vpop.f32.mrb[57].mxu1  ;;  %v5273_v26 = vld [vmem:[#allocation5_spill] sm:$0xff] }
 0x214   : > { %v2858_v6 = vadd.f32 %v2857_v5, %v2856_v13  ;;  %1222 = vmatmul.mubr.f32.gmra.mrb[86].mxu0 %v1004_v11  ;;  %1383 = vmatmul.mubr.f32.gmra.mrb[86].mxu1 %v1004_v11  ;;  %v5275_v5 = vld [vmem:[#allocation13_spill] sm:$0xff] }
 0x215   : > { %v2779_v10 = vpop.f32.mrb[58].mxu0  ;;  %1227 = vmatprep.mubr.f32.mxu0 %v5270_v14  ;;  %1388 = vmatprep.mubr.f32.mxu1 %v5270_v14 }
 0x216   : > { %v1009_v31 = vadd.f32 %v2858_v6, %v2778_v4  ;;  %v2859_v47 = vpop.f32.mrb[58].mxu1  ;;  %v2780_v32 = vpop.f32.mrb[59].mxu0  ;;  %v5274_v4 = vld [vmem:[#allocation6_spill] sm:$0xff] }
 0x217   : > { %v2781_v17 = vadd.f32 %v2780_v32, %v2779_v10  ;;  %v2860_v18 = vpop.f32.mrb[59].mxu1 }
 0x218   : > { %v2861_v19 = vadd.f32 %v2860_v18, %v2859_v47  ;;  %1228 = vmatmul.mubr.f32.gmra.mrb[88].mxu0 %v1009_v31  ;;  %1389 = vmatmul.mubr.f32.gmra.mrb[88].mxu1 %v1009_v31  ;;  %v5278_v18 = vld [vmem:[#allocation8_spill] sm:$0xff] }
 0x219   : > { %v2782_v23 = vpop.f32.mrb[60].mxu0  ;;  %1233 = vmatprep.mubr.f32.mxu0 %v5270_v14  ;;  %1394 = vmatprep.mubr.f32.mxu1 %v5270_v14 }
 0x21a   : > { %v1014_v27 = vadd.f32 %v2861_v19, %v2781_v17  ;;  %v2862_v44 = vpop.f32.mrb[60].mxu1  ;;  %v2783_v54 = vpop.f32.mrb[61].mxu0  ;;  %v5277_v17 = vld [vmem:[#allocation7_spill] sm:$0xff] }
 0x21b   : > { %v2784_v30 = vadd.f32 %v2783_v54, %v2782_v23  ;;  %v2863_v33 = vpop.f32.mrb[61].mxu1  ;;  %v5279_v23 = vld [vmem:[#allocation18_spill] sm:$0xff] }
 0x21c   : > { %v2864_v34 = vadd.f32 %v2863_v33, %v2862_v44  ;;  %1234 = vmatmul.mubr.f32.gmra.mrb[90].mxu0 %v1014_v27  ;;  %1395 = vmatmul.mubr.f32.gmra.mrb[90].mxu1 %v1014_v27  ;;  %v5280_v44 = vld [vmem:[#allocation20_spill] sm:$0xff] }
 0x21d   : > { %v2785_v39 = vpop.f32.mrb[62].mxu0  ;;  %1239 = vmatprep.mubr.f32.mxu0 %v5270_v14  ;;  %1400 = vmatprep.mubr.f32.mxu1 %v5270_v14 }
 0x21e   : > { %v1019_v9 = vadd.f32 %v2864_v34, %v2784_v30  ;;  %v2865_v24 = vpop.f32.mrb[62].mxu1  ;;  %v2786_v48 = vpop.f32.mrb[63].mxu0  ;;  %v5281_v34 = vld [vmem:[#allocation9_spill] sm:$0xff] }
 0x21f   : > { %v2787_v49 = vadd.f32 %v2786_v48, %v2785_v39  ;;  %v2866_v50 = vpop.f32.mrb[63].mxu1  ;;  %v5282_v39 = vld [vmem:[#allocation10_spill] sm:$0xff]  ;;  %v5284_v48 = vld [vmem:[#allocation24_spill] sm:$0xff] }
 0x220   : > { %v2867_v51 = vadd.f32 %v2866_v50, %v2865_v24  ;;  %1240 = vmatmul.mubr.f32.gmra.mrb[92].mxu0 %v1019_v9  ;;  %1401 = vmatmul.mubr.f32.gmra.mrb[92].mxu1 %v1019_v9  ;;  %v5283_v9 = vld [vmem:[#allocation21_spill] sm:$0xff] }
 0x221   : > { %1245 = vmatprep.mubr.f32.mxu0 %v5270_v14  ;;  %1406 = vmatprep.mubr.f32.mxu1 %v5270_v14 }
 0x222   : > { %v1024_v58 = vadd.f32 %v2867_v51, %v2787_v49 }
 0x224   : > { %1246 = vmatmul.mubr.f32.gmra.mrb[94].mxu0 %v1024_v58  ;;  %1407 = vmatmul.mubr.f32.gmra.mrb[94].mxu1 %v1024_v58 }
 0x2bb   : > { %v1157_v21 = vpop.f32.mrb[64].mxu0  ;;  %v1318_v40 = vpop.f32.mrb[64].mxu1 }
 0x2bc   : > { %v4402_v36 = vsub.f32 %v3897_v61, %v1157_v21  ;;  %v4405_v3 = vsub.f32 %v3901_v63, %v1318_v40  ;;  %v1159_v7 = vpop.f32.mrb[65].mxu0  ;;  %v1320_v8 = vpop.f32.mrb[65].mxu1 }
 0x2bd   : > { %v4408_v12 = vsub.f32 %v3903_v1, %v1159_v7  ;;  %v4411_v41 = vsub.f32 %v3918_v15, %v1320_v8  ;;  %v5285_v7 = vld [vmem:[#allocation11_spill] sm:$0xff]  ;;  %v5286_v8 = vld [vmem:[#allocation14_spill] sm:$0xff] }
 0x2be   : > { %v1477_v63 = vmul.f32 %v4402_v36, %v4402_v36  ;;  %v1479_v25 = vmul.f32 %v4405_v3, %v4405_v3 }
 0x2bf   : > { %v1478_v42 = vmul.f32 %v4408_v12, %v4408_v12  ;;  %v1480_v46 = vmul.f32 %v4411_v41, %v4411_v41  ;;  %v1163_v16 = vpop.f32.mrb[66].mxu0  ;;  %v1324_v61 = vpop.f32.mrb[66].mxu1 }
 0x2c0   : > { %v4422_v1 = vsub.f32 %v3941_v28, %v1163_v16  ;;  %v4425_v15 = vsub.f32 %v3946_v35, %v1324_v61  ;;  %v1165_v20 = vpop.f32.mrb[67].mxu0  ;;  %v1326_v57 = vpop.f32.mrb[67].mxu1  ;;  %v5288_v61 = vld [vmem:[#allocation28_spill] sm:$0xff] }
 0x2c1   : > { %v4428_v37 = vsub.f32 %v3948_v38, %v1165_v20  ;;  %v4431_v43 = vsub.f32 %v3965_v52, %v1326_v57  ;;  %1605 = vmatprep.mubr.f32.mxu0 %v1478_v42  ;;  %1750 = vmatprep.mubr.f32.mxu1 %v1480_v46  ;;  %v5287_v46 = vld [vmem:[#allocation26_spill] sm:$0xff]  ;;  %v5289_v57 = vld [vmem:[#allocation15_spill] sm:$0xff] }
 0x2c2   : > { %1606 = vmatmul.mubr.f32.vlgmr.msra.gmra.mrb[96].mxu0 %v1477_v63  ;;  %1751 = vmatmul.mubr.f32.vlgmr.msra.gmra.mrb[96].mxu1 %v1479_v25  ;;  %v1481_v59 = vmul.f32 %v4422_v1, %v4422_v1  ;;  %v1483_v38 = vmul.f32 %v4425_v15, %v4425_v15 }
 0x2c3   : > { %v1482_v28 = vmul.f32 %v4428_v37, %v4428_v37  ;;  %v1484_v35 = vmul.f32 %v4431_v43, %v4431_v43  ;;  %v1169_v53 = vpop.f32.mrb[68].mxu0  ;;  %v1330_v55 = vpop.f32.mrb[68].mxu1  ;;  %3239 = vmatpush1.bf16.msra.mxu0 %v3899_v62  ;;  %3271 = vmatpush1.bf16.msra.mxu1 %v3905_v2  ;;  %v5276_v62 = vld [vmem:[#allocation16_spill] sm:$0xff] }
 0x2c4   : > { %v4444_v52 = vsub.f32 %v3989_v22, %v1169_v53  ;;  %v4447_v60 = vsub.f32 %v5272_v56, %v1330_v55  ;;  %v1171_v11 = vpop.f32.mrb[69].mxu0  ;;  %v1332_v13 = vpop.f32.mrb[69].mxu1  ;;  %3241 = vmatprep.subr.bf16.mxu0 %v5273_v26  ;;  %3273 = vmatprep.subr.bf16.mxu1 %v5274_v4  ;;  %v5292_v53 = vld [vmem:[#allocation32_spill] sm:$0xff]  ;;  %v5293_v4 = vld [vmem:[#allocation19_spill] sm:$0xff] }
 0x2c5   : > { %v4452_v6 = vsub.f32 %v5275_v5, %v1171_v11  ;;  %v4455_v2 = vsub.f32 %v5276_v62, %v1332_v13  ;;  %1610 = vmatprep.mubr.f32.mxu0 %v1482_v28  ;;  %1755 = vmatprep.mubr.f32.mxu1 %v1484_v35  ;;  %v5291_v28 = vld [vmem:[#allocation29_spill] sm:$0xff]  ;;  %v5294_v5 = vld [vmem:[#allocation22_spill] sm:$0xff] }
 0x2c6   : > { %1611 = vmatmul.mubr.f32.gmra.mrb[98].mxu0 %v1481_v59  ;;  %1756 = vmatmul.mubr.f32.gmra.mrb[98].mxu1 %v1483_v38  ;;  %v1485_v22 = vmul.f32 %v4444_v52, %v4444_v52  ;;  %v1487_v19 = vmul.f32 %v4447_v60, %v4447_v60  ;;  %v5290_v59 = vld [vmem:[#allocation17_spill] sm:$0xff] }
 0x2c7   : > { %v1486_v10 = vmul.f32 %v4452_v6, %v4452_v6  ;;  %v1488_v31 = vmul.f32 %v4455_v2, %v4455_v2  ;;  %v1175_v47 = vpop.f32.mrb[70].mxu0  ;;  %v1336_v32 = vpop.f32.mrb[70].mxu1  ;;  %3243 = vmatpush1.bf16.msra.mxu0 %v5277_v17  ;;  %3275 = vmatpush1.bf16.msra.mxu1 %v5278_v18  ;;  %v5297_v18 = vld [vmem:[#allocation23_spill] sm:$0xff] }
 0x2c8   : > { %v4468_v27 = vsub.f32 %v5279_v23, %v1175_v47  ;;  %v4471_v54 = vsub.f32 %v5280_v44, %v1336_v32  ;;  %v1177_v30 = vpop.f32.mrb[71].mxu0  ;;  %v1338_v33 = vpop.f32.mrb[71].mxu1  ;;  %3245 = vmatprep.subr.bf16.mxu0 %v5281_v34  ;;  %3277 = vmatprep.subr.bf16.mxu1 %v5282_v39  ;;  %v5299_v23 = vld [vmem:[#allocation37_spill] sm:$0xff] }
 0x2c9   : > { %v4476_v24 = vsub.f32 %v5283_v9, %v1177_v30  ;;  %v4479_v49 = vsub.f32 %v5284_v48, %v1338_v33  ;;  %1615 = vmatprep.mubr.f32.mxu0 %v1486_v10  ;;  %1760 = vmatprep.mubr.f32.mxu1 %v1488_v31  ;;  %v5296_v31 = vld [vmem:[#allocation36_spill] sm:$0xff] }
 0x2ca   : > { %1616 = vmatmul.mubr.f32.gmra.mrb[100].mxu0 %v1485_v22  ;;  %1761 = vmatmul.mubr.f32.gmra.mrb[100].mxu1 %v1487_v19  ;;  %v1489_v50 = vmul.f32 %v4468_v27, %v4468_v27  ;;  %v1491_v42 = vmul.f32 %v4471_v54, %v4471_v54  ;;  %v5295_v22 = vld [vmem:[#allocation34_spill] sm:$0xff]  ;;  %v5298_v19 = vld [vmem:[#allocation25_spill] sm:$0xff]  ;;  %v5300_v30 = vld [vmem:[#allocation40_spill] sm:$0xff] }
 0x2cb   : > { %v1490_v51 = vmul.f32 %v4476_v24, %v4476_v24  ;;  %v1492_v58 = vmul.f32 %v4479_v49, %v4479_v49  ;;  %v1181_v21 = vpop.f32.mrb[72].mxu0  ;;  %v1342_v40 = vpop.f32.mrb[72].mxu1  ;;  %3247 = vmatpush1.bf16.msra.mxu0 %v5285_v7  ;;  %3279 = vmatpush1.bf16.msra.mxu1 %v5286_v8 }
 0x2cc   : > { %v4492_v16 = vsub.f32 %v5287_v46, %v1181_v21  ;;  %v4495_v63 = vsub.f32 %v5288_v61, %v1342_v40  ;;  %v1183_v25 = vpop.f32.mrb[73].mxu0  ;;  %v1344_v20 = vpop.f32.mrb[73].mxu1  ;;  %3249 = vmatprep.subr.bf16.mxu0 %v5289_v57  ;;  %3281 = vmatprep.subr.bf16.mxu1 %v5290_v59  ;;  %v5303_v46 = vld [vmem:[#allocation31_spill] sm:$0xff]  ;;  %v5304_v61 = vld [vmem:[#allocation33_spill] sm:$0xff] }
 0x2cd   : > { %v4500_v35 = vsub.f32 %v5291_v28, %v1183_v25  ;;  %v4503_v55 = vsub.f32 %v5292_v53, %v1344_v20  ;;  %1620 = vmatprep.mubr.f32.mxu0 %v1490_v51  ;;  %1765 = vmatprep.mubr.f32.mxu1 %v1492_v58  ;;  %v5301_v51 = vld [vmem:[#allocation27_spill] sm:$0xff]  ;;  %v5302_v58 = vld [vmem:[#allocation30_spill] sm:$0xff]  ;;  %v5305_v20 = vld [vmem:[#allocation45_spill] sm:$0xff] }
 0x2ce   : > { %1621 = vmatmul.mubr.f32.gmra.mrb[102].mxu0 %v1489_v50  ;;  %1766 = vmatmul.mubr.f32.gmra.mrb[102].mxu1 %v1491_v42  ;;  %v1493_v38 = vmul.f32 %v4492_v16, %v4492_v16  ;;  %v1495_v62 = vmul.f32 %v4495_v63, %v4495_v63 }
 0x2cf   : > { %v1494_v56 = vmul.f32 %v4500_v35, %v4500_v35  ;;  %v1496_v11 = vmul.f32 %v4503_v55, %v4503_v55  ;;  %v1187_v13 = vpop.f32.mrb[74].mxu0  ;;  %v1348_v26 = vpop.f32.mrb[74].mxu1  ;;  %3251 = vmatpush1.bf16.msra.mxu0 %v5293_v4  ;;  %3283 = vmatpush1.bf16.msra.mxu1 %v5294_v5 }
 0x2d0   : > { %v4516_v10 = vsub.f32 %v5295_v22, %v1187_v13  ;;  %v4519_v47 = vsub.f32 %v5296_v31, %v1348_v26  ;;  %v1189_v32 = vpop.f32.mrb[75].mxu0  ;;  %v1350_v17 = vpop.f32.mrb[75].mxu1  ;;  %3253 = vmatprep.subr.bf16.mxu0 %v5297_v18  ;;  %3285 = vmatprep.subr.bf16.mxu1 %v5298_v19  ;;  %v5309_v26 = vld [vmem:[#allocation49_spill] sm:$0xff]  ;;  %v5310_v22 = vld [vmem:[#allocation39_spill] sm:$0xff] }
 0x2d1   : > { %v4524_v44 = vsub.f32 %v5299_v23, %v1189_v32  ;;  %v4527_v33 = vsub.f32 %v5300_v30, %v1350_v17  ;;  %1625 = vmatprep.mubr.f32.mxu0 %v1494_v56  ;;  %1770 = vmatprep.mubr.f32.mxu1 %v1496_v11  ;;  %v5308_v11 = vld [vmem:[#allocation47_spill] sm:$0xff]  ;;  %v5311_v31 = vld [vmem:[#allocation41_spill] sm:$0xff]  ;;  %v5312_v32 = vld [vmem:[#allocation50_spill] sm:$0xff] }
 0x2d2   : > { %1626 = vmatmul.mubr.f32.gmra.mrb[104].mxu0 %v1493_v38  ;;  %1771 = vmatmul.mubr.f32.gmra.mrb[104].mxu1 %v1495_v62  ;;  %v1497_v34 = vmul.f32 %v4516_v10, %v4516_v10  ;;  %v1499_v21 = vmul.f32 %v4519_v47, %v4519_v47  ;;  %v5307_v38 = vld [vmem:[#allocation38_spill] sm:$0xff]  ;;  %v5313_v18 = vld [vmem:[#allocation51_spill] sm:$0xff] }
 0x2d3   : > { %v1498_v39 = vmul.f32 %v4524_v44, %v4524_v44  ;;  %v1500_v9 = vmul.f32 %v4527_v33, %v4527_v33  ;;  %v1193_v48 = vpop.f32.mrb[76].mxu0  ;;  %v1354_v50 = vpop.f32.mrb[76].mxu1  ;;  %3255 = vmatpush1.bf16.msra.mxu0 %v5301_v51  ;;  %3287 = vmatpush1.bf16.msra.mxu1 %v5302_v58  ;;  %v5316_v58 = vld [vmem:[#allocation52_spill] sm:$0xff] }
 0x2d4   : > { %v4540_v40 = vsub.f32 %v4181_v45, %v1193_v48  ;;  %v4543_v7 = vsub.f32 %v4186_v29, %v1354_v50  ;;  %v1195_v8 = vpop.f32.mrb[77].mxu0  ;;  %v1356_v42 = vpop.f32.mrb[77].mxu1  ;;  %3257 = vmatprep.subr.bf16.mxu0 %v5303_v46  ;;  %3289 = vmatprep.subr.bf16.mxu1 %v5304_v61  ;;  %v5314_v48 = vld [vmem:[#allocation42_spill] sm:$0xff]  ;;  %v5315_v50 = vld [vmem:[#allocation43_spill] sm:$0xff] }
 0x2d5   : > { %v4548_v25 = vsub.f32 %v4188_v0, %v1195_v8  ;;  %v4551_v57 = vsub.f32 %v5305_v20, %v1356_v42  ;;  %1630 = vmatprep.mubr.f32.mxu0 %v1498_v39  ;;  %1775 = vmatprep.mubr.f32.mxu1 %v1500_v9  ;;  %v5306_v0 = vld [vmem:[#allocation35_spill] sm:$0xff]  ;;  %v5317_v8 = vld [vmem:[#allocation53_spill] sm:$0xff]  ;;  %v5318_v20 = vld [vmem:[#allocation44_spill] sm:$0xff] }
 0x2d6   : > { %1631 = vmatmul.mubr.f32.gmra.mrb[106].mxu0 %v1497_v34  ;;  %1776 = vmatmul.mubr.f32.gmra.mrb[106].mxu1 %v1499_v21  ;;  %v1501_v29 = vmul.f32 %v4540_v40, %v4540_v40  ;;  %v1503_v56 = vmul.f32 %v4543_v7, %v4543_v7 }
 0x2d7   : > { %v1502_v45 = vmul.f32 %v4548_v25, %v4548_v25  ;;  %v1504_v59 = vmul.f32 %v4551_v57, %v4551_v57  ;;  %v1199_v28 = vpop.f32.mrb[78].mxu0  ;;  %v1360_v53 = vpop.f32.mrb[78].mxu1  ;;  %3259 = vmatpush1.bf16.msra.mxu0 %v5306_v0  ;;  %3291 = vmatpush1.bf16.msra.mxu1 %v5307_v38 }
 0x2d8   : > { %v4564_v13 = vsub.f32 %v5308_v11, %v1199_v28  ;;  %v4567_v4 = vsub.f32 %v5309_v26, %v1360_v53  ;;  %v1201_v5 = vpop.f32.mrb[79].mxu0  ;;  %v1362_v62 = vpop.f32.mrb[79].mxu1  ;;  %3261 = vmatprep.subr.bf16.mxu0 %v5310_v22  ;;  %3293 = vmatprep.subr.bf16.mxu1 %v5311_v31  ;;  %v5321_v28 = vld [vmem:[#allocation55_spill] sm:$0xff]  ;;  %v5322_v26 = vld [vmem:[#allocation48_spill] sm:$0xff] }
 0x2d9   : > { %v4572_v17 = vsub.f32 %v5312_v32, %v1201_v5  ;;  %v4575_v19 = vsub.f32 %v5313_v18, %v1362_v62  ;;  %1635 = vmatprep.mubr.f32.mxu0 %v1502_v45  ;;  %1780 = vmatprep.mubr.f32.mxu1 %v1504_v59  ;;  %v5320_v45 = vld [vmem:[#allocation54_spill] sm:$0xff]  ;;  %v5323_v5 = vld [vmem:[#allocation84_spill] sm:$0xff]  ;;  %v5325_v18 = vld [vmem:[#allocation57_spill] sm:$0xff] }
 0x2da   : > { %1636 = vmatmul.mubr.f32.gmra.mrb[108].mxu0 %v1501_v29  ;;  %1781 = vmatmul.mubr.f32.gmra.mrb[108].mxu1 %v1503_v56  ;;  %v1505_v23 = vmul.f32 %v4564_v13, %v4564_v13  ;;  %v1507_v51 = vmul.f32 %v4567_v4, %v4567_v4  ;;  %v5319_v29 = vld [vmem:[#allocation46_spill] sm:$0xff]  ;;  %v5324_v31 = vld [vmem:[#allocation56_spill] sm:$0xff] }
 0x2db   : > { %v1506_v30 = vmul.f32 %v4572_v17, %v4572_v17  ;;  %v1508_v34 = vmul.f32 %v4575_v19, %v4575_v19  ;;  %v1205_v39 = vpop.f32.mrb[80].mxu0  ;;  %v1366_v9 = vpop.f32.mrb[80].mxu1  ;;  %3263 = vmatpush1.bf16.msra.mxu0 %v5314_v48  ;;  %3295 = vmatpush1.bf16.msra.mxu1 %v5315_v50  ;;  %v5327_v48 = vld [vmem:[#allocation59_spill] sm:$0xff] }
 0x2dc   : > { %v4588_v21 = vsub.f32 %v5316_v58, %v1205_v39  ;;  %v4591_v42 = vsub.f32 %v5317_v8, %v1366_v9  ;;  %v1207_v46 = vpop.f32.mrb[81].mxu0  ;;  %v1368_v61 = vpop.f32.mrb[81].mxu1  ;;  %3265 = vmatprep.subr.bf16.mxu0 %v5318_v20  ;;  %3297 = vmatprep.subr.bf16.mxu1 %v5319_v29  ;;  %v5326_v39 = vld [vmem:[#allocation58_spill] sm:$0xff]  ;;  %v5329_v29 = vld [vmem:[#allocation60_spill] sm:$0xff] }
 0x2dd   : > { %v4596_v59 = vsub.f32 %v5320_v45, %v1207_v46  ;;  %v4599_v53 = vsub.f32 %v5321_v28, %v1368_v61  ;;  %1640 = vmatprep.mubr.f32.mxu0 %v1506_v30  ;;  %1785 = vmatprep.mubr.f32.mxu1 %v1508_v34  ;;  %v5331_v28 = vld [vmem:[#allocation61_spill] sm:$0xff] }
 0x2de   : > { %1641 = vmatmul.mubr.f32.gmra.mrb[110].mxu0 %v1505_v23  ;;  %1786 = vmatmul.mubr.f32.gmra.mrb[110].mxu1 %v1507_v51  ;;  %v1509_v62 = vmul.f32 %v4588_v21, %v4588_v21  ;;  %v1511_v22 = vmul.f32 %v4591_v42, %v4591_v42 }
 0x2df   : > { %v1510_v0 = vmul.f32 %v4596_v59, %v4596_v59  ;;  %v1512_v38 = vmul.f32 %v4599_v53, %v4599_v53  ;;  %v1211_v56 = vpop.f32.mrb[82].mxu0  ;;  %v1372_v11 = vpop.f32.mrb[82].mxu1  ;;  %3267 = vmatpush1.bf16.msra.mxu0 %v5322_v26  ;;  %3299 = vmatpush1.bf16.msra.mxu1 %v5323_v5  ;;  %v5335_v5 = vld [vmem:[#allocation63_spill] sm:$0xff] }
 0x2e0   : > { %v4612_v32 = vsub.f32 %v5324_v31, %v1211_v56  ;;  %v4615_v23 = vsub.f32 %v5325_v18, %v1372_v11  ;;  %v1213_v30 = vpop.f32.mrb[83].mxu0  ;;  %v1374_v34 = vpop.f32.mrb[83].mxu1  ;;  %v5333_v11 = vld [vmem:[#allocation62_spill] sm:$0xff] }
 0x2e1   : > { %v4618_v9 = vsub.f32 %v5326_v39, %v1213_v30  ;;  %v4621_v50 = vsub.f32 %v5327_v48, %v1374_v34  ;;  %1645 = vmatprep.mubr.f32.mxu0 %v1510_v0  ;;  %1790 = vmatprep.mubr.f32.mxu1 %v1512_v38  ;;  %v5337_v48 = vld [vmem:[#allocation64_spill] sm:$0xff] }
 0x2e2   : > { %1646 = vmatmul.mubr.f32.gmra.mrb[112].mxu0 %v1509_v62  ;;  %1791 = vmatmul.mubr.f32.gmra.mrb[112].mxu1 %v1511_v22  ;;  %v1513_v61 = vmul.f32 %v4612_v32, %v4612_v32  ;;  %v1515_v20 = vmul.f32 %v4615_v23, %v4615_v23 }
 0x2e3   : > { %5328 = vst [vmem:[#allocation12_spill] sm:$0xff] %v4621_v50  ;;  %v1514_v51 = vmul.f32 %v4618_v9, %v4618_v9  ;;  %v1516_v58 = vmul.f32 %v4621_v50, %v4621_v50  ;;  %v1217_v8 = vpop.f32.mrb[84].mxu0  ;;  %v1378_v46 = vpop.f32.mrb[84].mxu1 }
 0x2e4   : > { %v4632_v45 = vsub.f32 %v5329_v29, %v1217_v8  ;;  %v4635_v0 = vsub.f32 %v5331_v28, %v1378_v46  ;;  %v1219_v38 = vpop.f32.mrb[85].mxu0  ;;  %v1380_v56 = vpop.f32.mrb[85].mxu1  ;;  %v5343_v28 = vld [vmem:[#allocation67_spill] sm:$0xff] }
 0x2e5   : > { %v4638_v26 = vsub.f32 %v5333_v11, %v1219_v38  ;;  %v4641_v62 = vsub.f32 %v5335_v5, %v1380_v56  ;;  %1650 = vmatprep.mubr.f32.mxu0 %v1514_v51  ;;  %1795 = vmatprep.mubr.f32.mxu1 %v1516_v58  ;;  %v5339_v51 = vld [vmem:[#allocation65_spill] sm:$0xff] }
 0x2e6   : > { %5330 = vst [vmem:[#allocation5_spill] sm:$0xff] %v4632_v45  ;;  %5332 = vst [vmem:[#allocation6_spill] sm:$0xff] %v4635_v0  ;;  %1651 = vmatmul.mubr.f32.gmra.mrb[114].mxu0 %v1513_v61  ;;  %1796 = vmatmul.mubr.f32.gmra.mrb[114].mxu1 %v1515_v20  ;;  %v1517_v34 = vmul.f32 %v4632_v45, %v4632_v45  ;;  %v1519_v39 = vmul.f32 %v4635_v0, %v4635_v0  ;;  %v5341_v20 = vld [vmem:[#allocation66_spill] sm:$0xff] }
 0x2e7   : > { %5334 = vst [vmem:[#allocation13_spill] sm:$0xff] %v4638_v26  ;;  %5336 = vst [vmem:[#allocation16_spill] sm:$0xff] %v4641_v62  ;;  %v1518_v22 = vmul.f32 %v4638_v26, %v4638_v26  ;;  %v1520_v31 = vmul.f32 %v4641_v62, %v4641_v62  ;;  %v1223_v18 = vpop.f32.mrb[86].mxu0  ;;  %v1384_v30 = vpop.f32.mrb[86].mxu1 }
 0x2e8   : > { %v4652_v8 = vsub.f32 %v5337_v48, %v1223_v18  ;;  %v4655_v58 = vsub.f32 %v5339_v51, %v1384_v30  ;;  %v1225_v46 = vpop.f32.mrb[87].mxu0  ;;  %v1386_v61 = vpop.f32.mrb[87].mxu1  ;;  %v5345_v51 = vld [vmem:[#allocation68_spill] sm:$0xff] }
 0x2e9   : > { %v4658_v29 = vsub.f32 %v5341_v20, %v1225_v46  ;;  %v4661_v38 = vsub.f32 %v5343_v28, %v1386_v61  ;;  %1655 = vmatprep.mubr.f32.mxu0 %v1518_v22  ;;  %1800 = vmatprep.mubr.f32.mxu1 %v1520_v31  ;;  %v5347_v22 = vld [vmem:[#allocation69_spill] sm:$0xff]  ;;  %v5349_v61 = vld [vmem:[#allocation70_spill] sm:$0xff]  ;;  %v5351_v28 = vld [vmem:[#allocation71_spill] sm:$0xff] }
 0x2ea   : > { %5338 = vst [vmem:[#allocation7_spill] sm:$0xff] %v4652_v8  ;;  %5340 = vst [vmem:[#allocation8_spill] sm:$0xff] %v4655_v58  ;;  %1656 = vmatmul.mubr.f32.gmra.mrb[116].mxu0 %v1517_v34  ;;  %1801 = vmatmul.mubr.f32.gmra.mrb[116].mxu1 %v1519_v39  ;;  %v1521_v30 = vmul.f32 %v4652_v8, %v4652_v8  ;;  %v1523_v48 = vmul.f32 %v4655_v58, %v4655_v58 }
 0x2eb   : > { %5342 = vst [vmem:[#allocation18_spill] sm:$0xff] %v4658_v29  ;;  %5344 = vst [vmem:[#allocation20_spill] sm:$0xff] %v4661_v38  ;;  %v1522_v56 = vmul.f32 %v4658_v29, %v4658_v29  ;;  %v1524_v11 = vmul.f32 %v4661_v38, %v4661_v38  ;;  %v1229_v5 = vpop.f32.mrb[88].mxu0  ;;  %v1390_v18 = vpop.f32.mrb[88].mxu1 }
 0x2ec   : > { %v4672_v46 = vsub.f32 %v5345_v51, %v1229_v5  ;;  %v4675_v31 = vsub.f32 %v5347_v22, %v1390_v18  ;;  %v1231_v34 = vpop.f32.mrb[89].mxu0  ;;  %v1392_v39 = vpop.f32.mrb[89].mxu1 }
 0x2ed   : > { %v4678_v20 = vsub.f32 %v5349_v61, %v1231_v34  ;;  %v4681_v38 = vsub.f32 %v5351_v28, %v1392_v39  ;;  %1660 = vmatprep.mubr.f32.mxu0 %v1522_v56  ;;  %1805 = vmatprep.mubr.f32.mxu1 %v1524_v11  ;;  %v5353_v39 = vld [vmem:[#allocation72_spill] sm:$0xff]  ;;  %v5355_v56 = vld [vmem:[#allocation73_spill] sm:$0xff]  ;;  %v5357_v28 = vld [vmem:[#allocation74_spill] sm:$0xff] }
 0x2ee   : > { %5346 = vst [vmem:[#allocation9_spill] sm:$0xff] %v4672_v46  ;;  %5348 = vst [vmem:[#allocation10_spill] sm:$0xff] %v4675_v31  ;;  %1661 = vmatmul.mubr.f32.gmra.mrb[118].mxu0 %v1521_v30  ;;  %1806 = vmatmul.mubr.f32.gmra.mrb[118].mxu1 %v1523_v48  ;;  %v1525_v22 = vmul.f32 %v4672_v46, %v4672_v46  ;;  %v1527_v34 = vmul.f32 %v4675_v31, %v4675_v31 }
 0x2ef   : > { %5350 = vst [vmem:[#allocation21_spill] sm:$0xff] %v4678_v20  ;;  %5352 = vst [vmem:[#allocation24_spill] sm:$0xff] %v4681_v38  ;;  %v1526_v29 = vmul.f32 %v4678_v20, %v4678_v20  ;;  %v1528_v5 = vmul.f32 %v4681_v38, %v4681_v38  ;;  %v1235_v18 = vpop.f32.mrb[90].mxu0  ;;  %v1396_v51 = vpop.f32.mrb[90].mxu1  ;;  %v5359_v38 = vld [vmem:[#allocation75_spill] sm:$0xff] }
 0x2f0   : > { %v4692_v61 = vsub.f32 %v5353_v39, %v1235_v18  ;;  %v4695_v11 = vsub.f32 %v5355_v56, %v1396_v51  ;;  %v1237_v30 = vpop.f32.mrb[91].mxu0  ;;  %v1398_v48 = vpop.f32.mrb[91].mxu1 }
 0x2f1   : > { %v4698_v20 = vsub.f32 %v5357_v28, %v1237_v30  ;;  %v4701_v58 = vsub.f32 %v5359_v38, %v1398_v48  ;;  %1665 = vmatprep.mubr.f32.mxu0 %v1526_v29  ;;  %1810 = vmatprep.mubr.f32.mxu1 %v1528_v5  ;;  %v5361_v38 = vld [vmem:[#allocation76_spill] sm:$0xff]  ;;  %v5363_v29 = vld [vmem:[#allocation77_spill] sm:$0xff]  ;;  %v5365_v28 = vld [vmem:[#allocation78_spill] sm:$0xff] }
 0x2f2   : > { %5354 = vst [vmem:[#allocation11_spill] sm:$0xff] %v4692_v61  ;;  %5356 = vst [vmem:[#allocation14_spill] sm:$0xff] %v4695_v11  ;;  %1666 = vmatmul.mubr.f32.gmra.mrb[120].mxu0 %v1525_v22  ;;  %1811 = vmatmul.mubr.f32.gmra.mrb[120].mxu1 %v1527_v34  ;;  %v1529_v56 = vmul.f32 %v4692_v61, %v4692_v61  ;;  %v1531_v30 = vmul.f32 %v4695_v11, %v4695_v11 }
 0x2f3   : > { %5358 = vst [vmem:[#allocation26_spill] sm:$0xff] %v4698_v20  ;;  %5360 = vst [vmem:[#allocation28_spill] sm:$0xff] %v4701_v58  ;;  %v1530_v31 = vmul.f32 %v4698_v20, %v4698_v20  ;;  %v1532_v18 = vmul.f32 %v4701_v58, %v4701_v58  ;;  %v1241_v51 = vpop.f32.mrb[92].mxu0  ;;  %v1402_v39 = vpop.f32.mrb[92].mxu1  ;;  %v5367_v58 = vld [vmem:[#allocation79_spill] sm:$0xff] }
 0x2f4   : > { %v4712_v48 = vsub.f32 %v5361_v38, %v1241_v51  ;;  %v4715_v5 = vsub.f32 %v5363_v29, %v1402_v39  ;;  %v1243_v22 = vpop.f32.mrb[93].mxu0  ;;  %v1404_v34 = vpop.f32.mrb[93].mxu1 }
 0x2f5   : > { %v4718_v20 = vsub.f32 %v5365_v28, %v1243_v22  ;;  %v4721_v46 = vsub.f32 %v5367_v58, %v1404_v34  ;;  %1670 = vmatprep.mubr.f32.mxu0 %v1530_v31  ;;  %1815 = vmatprep.mubr.f32.mxu1 %v1532_v18  ;;  %v5369_v58 = vld [vmem:[#allocation80_spill] sm:$0xff]  ;;  %v5371_v31 = vld [vmem:[#allocation81_spill] sm:$0xff]  ;;  %v5373_v28 = vld [vmem:[#allocation82_spill] sm:$0xff] }
 0x2f6   : > { %5362 = vst [vmem:[#allocation15_spill] sm:$0xff] %v4712_v48  ;;  %5364 = vst [vmem:[#allocation17_spill] sm:$0xff] %v4715_v5  ;;  %1671 = vmatmul.mubr.f32.gmra.mrb[122].mxu0 %v1529_v56  ;;  %1816 = vmatmul.mubr.f32.gmra.mrb[122].mxu1 %v1531_v30  ;;  %v1533_v29 = vmul.f32 %v4712_v48, %v4712_v48  ;;  %v1535_v22 = vmul.f32 %v4715_v5, %v4715_v5 }
 0x2f7   : > { %5366 = vst [vmem:[#allocation29_spill] sm:$0xff] %v4718_v20  ;;  %5368 = vst [vmem:[#allocation32_spill] sm:$0xff] %v4721_v46  ;;  %v1534_v11 = vmul.f32 %v4718_v20, %v4718_v20  ;;  %v1536_v51 = vmul.f32 %v4721_v46, %v4721_v46  ;;  %v1247_v39 = vpop.f32.mrb[94].mxu0  ;;  %v1408_v38 = vpop.f32.mrb[94].mxu1  ;;  %v5375_v46 = vld [vmem:[#allocation83_spill] sm:$0xff] }
 0x2f8   : > { %v4732_v34 = vsub.f32 %v5369_v58, %v1247_v39  ;;  %v4735_v18 = vsub.f32 %v5371_v31, %v1408_v38  ;;  %v1249_v56 = vpop.f32.mrb[95].mxu0  ;;  %v1410_v30 = vpop.f32.mrb[95].mxu1 }
 0x2f9   : > { %v4738_v20 = vsub.f32 %v5373_v28, %v1249_v56  ;;  %v4741_v61 = vsub.f32 %v5375_v46, %v1410_v30  ;;  %1675 = vmatprep.mubr.f32.mxu0 %v1534_v11  ;;  %1820 = vmatprep.mubr.f32.mxu1 %v1536_v51 }
 0x2fa   : > { %5370 = vst [vmem:[#allocation19_spill] sm:$0xff] %v4732_v34  ;;  %5372 = vst [vmem:[#allocation22_spill] sm:$0xff] %v4735_v18  ;;  %1676 = vmatmul.mubr.f32.gmra.mrb[124].mxu0 %v1533_v29  ;;  %1821 = vmatmul.mubr.f32.gmra.mrb[124].mxu1 %v1535_v22  ;;  %v1537_v38 = vmul.f32 %v4732_v34, %v4732_v34  ;;  %v1539_v58 = vmul.f32 %v4735_v18, %v4735_v18 }
 0x2fb   : > { %5374 = vst [vmem:[#allocation34_spill] sm:$0xff] %v4738_v20  ;;  %5376 = vst [vmem:[#allocation36_spill] sm:$0xff] %v4741_v61  ;;  %v1538_v5 = vmul.f32 %v4738_v20, %v4738_v20  ;;  %v1540_v39 = vmul.f32 %v4741_v61, %v4741_v61 }
 0x2fd   : > { %1680 = vmatprep.mubr.f32.mxu0 %v1538_v5  ;;  %1825 = vmatprep.mubr.f32.mxu1 %v1540_v39 }
 0x2fe   : > { %1681 = vmatmul.mubr.f32.gmra.mrb[126].mxu0 %v1537_v38  ;;  %1826 = vmatmul.mubr.f32.gmra.mrb[126].mxu1 %v1539_v58 }
 0x2ff   : > { %1911 = vmatprep.mubr.f32.mxu0 %v5270_v14  ;;  %2072 = vmatprep.mubr.f32.mxu1 %v5270_v14 }
 0x395   : > { %v2900_v46 = vpop.f32.mrb[96].mxu0  ;;  %v2980_v11 = vpop.f32.mrb[96].mxu1 }
 0x396   : > { %v2901_v51 = vpop.f32.mrb[97].mxu0  ;;  %v2981_v29 = vpop.f32.mrb[97].mxu1 }
 0x397   : > { %v2902_v22 = vadd.f32 %v2901_v51, %v2900_v46  ;;  %v2982_v31 = vadd.f32 %v2981_v29, %v2980_v11 }
 0x399   : > { %v1608_v56 = vadd.f32 1e-05, %v2902_v22  ;;  %v2903_v30 = vpop.f32.mrb[98].mxu0  ;;  %v2983_v28 = vpop.f32.mrb[98].mxu1 }
 0x39a   : > { %v2904_v61 = vpop.f32.mrb[99].mxu0  ;;  %v2984_v20 = vpop.f32.mrb[99].mxu1 }
 0x39b   : > { %v1753_v18 = vadd.f32 %v2982_v31, %v1608_v56  ;;  %v2905_v5 = vadd.f32 %v2904_v61, %v2903_v30  ;;  %v2985_v39 = vadd.f32 %v2984_v20, %v2983_v28 }
 0x39d   : > { %3322 = vrsqrt.f32 %v1753_v18  ;;  %v1613_v38 = vadd.f32 1e-05, %v2905_v5  ;;  %v2906_v58 = vpop.f32.mrb[100].mxu0  ;;  %v2986_v34 = vpop.f32.mrb[100].mxu1 }
 0x39e   : > { %v2907_v48 = vpop.f32.mrb[101].mxu0  ;;  %v2987_v8 = vpop.f32.mrb[101].mxu1 }
 0x39f   : > { %v1758_v62 = vadd.f32 %v2985_v39, %v1613_v38  ;;  %v2908_v26 = vadd.f32 %v2907_v48, %v2906_v58  ;;  %v2988_v0 = vadd.f32 %v2987_v8, %v2986_v34 }
 0x3a1   : > { %3324 = vrsqrt.f32 %v1758_v62  ;;  %v1618_v46 = vadd.f32 1e-05, %v2908_v26  ;;  %v2909_v11 = vpop.f32.mrb[102].mxu0  ;;  %v2989_v51 = vpop.f32.mrb[102].mxu1 }
 0x3a2   : > { %v2910_v29 = vpop.f32.mrb[103].mxu0  ;;  %v2990_v22 = vpop.f32.mrb[103].mxu1 }
 0x3a3   : > { %v1763_v45 = vadd.f32 %v2988_v0, %v1618_v46  ;;  %v2911_v50 = vadd.f32 %v2910_v29, %v2909_v11  ;;  %v2991_v31 = vadd.f32 %v2990_v22, %v2989_v51 }
 0x3a5   : > { %3326 = vrsqrt.f32 %v1763_v45  ;;  %v1623_v20 = vadd.f32 1e-05, %v2911_v50  ;;  %v2912_v61 = vpop.f32.mrb[104].mxu0  ;;  %v2992_v18 = vpop.f32.mrb[104].mxu1 }
 0x3a6   : > { %v2913_v56 = vpop.f32.mrb[105].mxu0  ;;  %v2993_v30 = vpop.f32.mrb[105].mxu1 }
 0x3a7   : > { %v3323_v28 = vpop.eup %3322  ;;  %v1768_v5 = vadd.f32 %v2991_v31, %v1623_v20  ;;  %v2914_v39 = vadd.f32 %v2913_v56, %v2912_v61  ;;  %v2994_v48 = vadd.f32 %v2993_v30, %v2992_v18 }
 0x3a8   : > { %1912 = vmatmul.mubr.f32.vlgmr.msra.gmra.mrb[128].mxu0 %v3323_v28  ;;  %2073 = vmatmul.mubr.f32.vlgmr.msra.gmra.mrb[128].mxu1 %v3323_v28 }
 0x3a9   : > { %3328 = vrsqrt.f32 %v1768_v5  ;;  %v1628_v26 = vadd.f32 1e-05, %v2914_v39  ;;  %v2915_v62 = vpop.f32.mrb[106].mxu0  ;;  %v2995_v8 = vpop.f32.mrb[106].mxu1  ;;  %1917 = vmatprep.mubr.f32.mxu0 %v5270_v14  ;;  %2078 = vmatprep.mubr.f32.mxu1 %v5270_v14 }
 0x3aa   : > { %v2916_v45 = vpop.f32.mrb[107].mxu0  ;;  %v2996_v50 = vpop.f32.mrb[107].mxu1 }
 0x3ab   : > { %v3325_v0 = vpop.eup %3324  ;;  %v1773_v34 = vadd.f32 %v2994_v48, %v1628_v26  ;;  %v2917_v38 = vadd.f32 %v2916_v45, %v2915_v62  ;;  %v2997_v58 = vadd.f32 %v2996_v50, %v2995_v8 }
 0x3ac   : > { %1918 = vmatmul.mubr.f32.gmra.mrb[130].mxu0 %v3325_v0  ;;  %2079 = vmatmul.mubr.f32.gmra.mrb[130].mxu1 %v3325_v0 }
 0x3ad   : > { %3330 = vrsqrt.f32 %v1773_v34  ;;  %v1633_v46 = vadd.f32 1e-05, %v2917_v38  ;;  %v2918_v11 = vpop.f32.mrb[108].mxu0  ;;  %v2998_v51 = vpop.f32.mrb[108].mxu1  ;;  %1923 = vmatprep.mubr.f32.mxu0 %v5270_v14  ;;  %2084 = vmatprep.mubr.f32.mxu1 %v5270_v14 }
 0x3ae   : > { %v2919_v29 = vpop.f32.mrb[109].mxu0  ;;  %v2999_v22 = vpop.f32.mrb[109].mxu1 }
 0x3af   : > { %v3327_v31 = vpop.eup %3326  ;;  %v1778_v20 = vadd.f32 %v2997_v58, %v1633_v46  ;;  %v2920_v61 = vadd.f32 %v2919_v29, %v2918_v11  ;;  %v3000_v18 = vadd.f32 %v2999_v22, %v2998_v51 }
 0x3b0   : > { %1924 = vmatmul.mubr.f32.gmra.mrb[132].mxu0 %v3327_v31  ;;  %2085 = vmatmul.mubr.f32.gmra.mrb[132].mxu1 %v3327_v31 }
 0x3b1   : > { %3332 = vrsqrt.f32 %v1778_v20  ;;  %v1638_v56 = vadd.f32 1e-05, %v2920_v61  ;;  %v2921_v30 = vpop.f32.mrb[110].mxu0  ;;  %v3001_v28 = vpop.f32.mrb[110].mxu1  ;;  %1929 = vmatprep.mubr.f32.mxu0 %v5270_v14  ;;  %2090 = vmatprep.mubr.f32.mxu1 %v5270_v14 }
 0x3b2   : > { %v2922_v5 = vpop.f32.mrb[111].mxu0  ;;  %v3002_v39 = vpop.f32.mrb[111].mxu1 }
 0x3b3   : > { %v3329_v48 = vpop.eup %3328  ;;  %v1783_v26 = vadd.f32 %v3000_v18, %v1638_v56  ;;  %v2923_v62 = vadd.f32 %v2922_v5, %v2921_v30  ;;  %v3003_v8 = vadd.f32 %v3002_v39, %v3001_v28 }
 0x3b4   : > { %1930 = vmatmul.mubr.f32.gmra.mrb[134].mxu0 %v3329_v48  ;;  %2091 = vmatmul.mubr.f32.gmra.mrb[134].mxu1 %v3329_v48 }
 0x3b5   : > { %3334 = vrsqrt.f32 %v1783_v26  ;;  %v1643_v45 = vadd.f32 1e-05, %v2923_v62  ;;  %v2924_v50 = vpop.f32.mrb[112].mxu0  ;;  %v3004_v0 = vpop.f32.mrb[112].mxu1  ;;  %1935 = vmatprep.mubr.f32.mxu0 %v5270_v14  ;;  %2096 = vmatprep.mubr.f32.mxu1 %v5270_v14 }
 0x3b6   : > { %v2925_v34 = vpop.f32.mrb[113].mxu0  ;;  %v3005_v38 = vpop.f32.mrb[113].mxu1 }
 0x3b7   : > { %v3331_v58 = vpop.eup %3330  ;;  %v1788_v46 = vadd.f32 %v3003_v8, %v1643_v45  ;;  %v2926_v11 = vadd.f32 %v2925_v34, %v2924_v50  ;;  %v3006_v51 = vadd.f32 %v3005_v38, %v3004_v0 }
 0x3b8   : > { %1936 = vmatmul.mubr.f32.gmra.mrb[136].mxu0 %v3331_v58  ;;  %2097 = vmatmul.mubr.f32.gmra.mrb[136].mxu1 %v3331_v58 }
 0x3b9   : > { %3336 = vrsqrt.f32 %v1788_v46  ;;  %v1648_v29 = vadd.f32 1e-05, %v2926_v11  ;;  %v2927_v22 = vpop.f32.mrb[114].mxu0  ;;  %v3007_v31 = vpop.f32.mrb[114].mxu1  ;;  %1941 = vmatprep.mubr.f32.mxu0 %v5270_v14  ;;  %2102 = vmatprep.mubr.f32.mxu1 %v5270_v14 }
 0x3ba   : > { %v2928_v20 = vpop.f32.mrb[115].mxu0  ;;  %v3008_v61 = vpop.f32.mrb[115].mxu1 }
 0x3bb   : > { %v3333_v18 = vpop.eup %3332  ;;  %v1793_v56 = vadd.f32 %v3006_v51, %v1648_v29  ;;  %v2929_v30 = vadd.f32 %v2928_v20, %v2927_v22  ;;  %v3009_v28 = vadd.f32 %v3008_v61, %v3007_v31 }
 0x3bc   : > { %1942 = vmatmul.mubr.f32.gmra.mrb[138].mxu0 %v3333_v18  ;;  %2103 = vmatmul.mubr.f32.gmra.mrb[138].mxu1 %v3333_v18 }
 0x3bd   : > { %3338 = vrsqrt.f32 %v1793_v56  ;;  %v1653_v5 = vadd.f32 1e-05, %v2929_v30  ;;  %v2930_v39 = vpop.f32.mrb[116].mxu0  ;;  %v3010_v48 = vpop.f32.mrb[116].mxu1  ;;  %1947 = vmatprep.mubr.f32.mxu0 %v5270_v14  ;;  %2108 = vmatprep.mubr.f32.mxu1 %v5270_v14 }
 0x3be   : > { %v2931_v26 = vpop.f32.mrb[117].mxu0  ;;  %v3011_v62 = vpop.f32.mrb[117].mxu1 }
 0x3bf   : > { %v3335_v8 = vpop.eup %3334  ;;  %v1798_v45 = vadd.f32 %v3009_v28, %v1653_v5  ;;  %v2932_v50 = vadd.f32 %v2931_v26, %v2930_v39  ;;  %v3012_v0 = vadd.f32 %v3011_v62, %v3010_v48 }
 0x3c0   : > { %1948 = vmatmul.mubr.f32.gmra.mrb[140].mxu0 %v3335_v8  ;;  %2109 = vmatmul.mubr.f32.gmra.mrb[140].mxu1 %v3335_v8 }
 0x3c1   : > { %3340 = vrsqrt.f32 %v1798_v45  ;;  %v1658_v34 = vadd.f32 1e-05, %v2932_v50  ;;  %v2933_v38 = vpop.f32.mrb[118].mxu0  ;;  %v3013_v58 = vpop.f32.mrb[118].mxu1  ;;  %1953 = vmatprep.mubr.f32.mxu0 %v5270_v14  ;;  %2114 = vmatprep.mubr.f32.mxu1 %v5270_v14 }
 0x3c2   : > { %v2934_v46 = vpop.f32.mrb[119].mxu0  ;;  %v3014_v11 = vpop.f32.mrb[119].mxu1 }
 0x3c3   : > { %v3337_v51 = vpop.eup %3336  ;;  %v1803_v29 = vadd.f32 %v3012_v0, %v1658_v34  ;;  %v2935_v22 = vadd.f32 %v2934_v46, %v2933_v38  ;;  %v3015_v31 = vadd.f32 %v3014_v11, %v3013_v58 }
 0x3c4   : > { %1954 = vmatmul.mubr.f32.gmra.mrb[142].mxu0 %v3337_v51  ;;  %2115 = vmatmul.mubr.f32.gmra.mrb[142].mxu1 %v3337_v51 }
 0x3c5   : > { %3342 = vrsqrt.f32 %v1803_v29  ;;  %v1663_v20 = vadd.f32 1e-05, %v2935_v22  ;;  %v2936_v61 = vpop.f32.mrb[120].mxu0  ;;  %v3016_v18 = vpop.f32.mrb[120].mxu1  ;;  %1959 = vmatprep.mubr.f32.mxu0 %v5270_v14  ;;  %2120 = vmatprep.mubr.f32.mxu1 %v5270_v14 }
 0x3c6   : > { %v2937_v56 = vpop.f32.mrb[121].mxu0  ;;  %v3017_v30 = vpop.f32.mrb[121].mxu1 }
 0x3c7   : > { %v3339_v28 = vpop.eup %3338  ;;  %v1808_v5 = vadd.f32 %v3015_v31, %v1663_v20  ;;  %v2938_v39 = vadd.f32 %v2937_v56, %v2936_v61  ;;  %v3018_v48 = vadd.f32 %v3017_v30, %v3016_v18 }
 0x3c8   : > { %1960 = vmatmul.mubr.f32.gmra.mrb[144].mxu0 %v3339_v28  ;;  %2121 = vmatmul.mubr.f32.gmra.mrb[144].mxu1 %v3339_v28 }
 0x3c9   : > { %3344 = vrsqrt.f32 %v1808_v5  ;;  %v1668_v26 = vadd.f32 1e-05, %v2938_v39  ;;  %v2939_v62 = vpop.f32.mrb[122].mxu0  ;;  %v3019_v8 = vpop.f32.mrb[122].mxu1  ;;  %1965 = vmatprep.mubr.f32.mxu0 %v5270_v14  ;;  %2126 = vmatprep.mubr.f32.mxu1 %v5270_v14 }
 0x3ca   : > { %v2940_v45 = vpop.f32.mrb[123].mxu0  ;;  %v3020_v50 = vpop.f32.mrb[123].mxu1 }
 0x3cb   : > { %v3341_v0 = vpop.eup %3340  ;;  %v1813_v34 = vadd.f32 %v3018_v48, %v1668_v26  ;;  %v2941_v38 = vadd.f32 %v2940_v45, %v2939_v62  ;;  %v3021_v58 = vadd.f32 %v3020_v50, %v3019_v8 }
 0x3cc   : > { %1966 = vmatmul.mubr.f32.gmra.mrb[146].mxu0 %v3341_v0  ;;  %2127 = vmatmul.mubr.f32.gmra.mrb[146].mxu1 %v3341_v0 }
 0x3cd   : > { %3346 = vrsqrt.f32 %v1813_v34  ;;  %v1673_v46 = vadd.f32 1e-05, %v2941_v38  ;;  %v2942_v11 = vpop.f32.mrb[124].mxu0  ;;  %v3022_v51 = vpop.f32.mrb[124].mxu1  ;;  %1971 = vmatprep.mubr.f32.mxu0 %v5270_v14  ;;  %2132 = vmatprep.mubr.f32.mxu1 %v5270_v14 }
 0x3ce   : > { %v2943_v29 = vpop.f32.mrb[125].mxu0  ;;  %v3023_v22 = vpop.f32.mrb[125].mxu1 }
 0x3cf   : > { %v3343_v31 = vpop.eup %3342  ;;  %v1818_v20 = vadd.f32 %v3021_v58, %v1673_v46  ;;  %v2944_v61 = vadd.f32 %v2943_v29, %v2942_v11  ;;  %v3024_v18 = vadd.f32 %v3023_v22, %v3022_v51  ;;  %v2235_v46 = vlaneseq  ;;  %v2233_v22 = vld [vmem:[%s5074_s4] sm:$0xf] }
 0x3d0   : > { %1972 = vmatmul.mubr.f32.gmra.mrb[148].mxu0 %v3343_v31  ;;  %2133 = vmatmul.mubr.f32.gmra.mrb[148].mxu1 %v3343_v31 }
 0x3d1   : > { %3348 = vrsqrt.f32 %v1818_v20  ;;  %v1678_v56 = vadd.f32 1e-05, %v2944_v61  ;;  %v2945_v30 = vpop.f32.mrb[126].mxu0  ;;  %v3025_v28 = vpop.f32.mrb[126].mxu1  ;;  %1977 = vmatprep.mubr.f32.mxu0 %v5270_v14  ;;  %2138 = vmatprep.mubr.f32.mxu1 %v5270_v14  ;;  %v2236_v11 = vshrl.u32 %v2235_v46, 7 }
 0x3d2   : > { %v2946_v5 = vpop.f32.mrb[127].mxu0  ;;  %v3026_v39 = vpop.f32.mrb[127].mxu1 }
 0x3d3   : > { %v3345_v48 = vpop.eup %3344  ;;  %v1823_v26 = vadd.f32 %v3024_v18, %v1678_v56  ;;  %v2947_v62 = vadd.f32 %v2946_v5, %v2945_v30  ;;  %v3027_v8 = vadd.f32 %v3026_v39, %v3025_v28  ;;  %v2237_v51 = vsub.s32 0, %v2236_v11 }
 0x3d4   : > { %1978 = vmatmul.mubr.f32.gmra.mrb[150].mxu0 %v3345_v48  ;;  %2139 = vmatmul.mubr.f32.gmra.mrb[150].mxu1 %v3345_v48  ;;  %v2245_v29 = vsub.s32 2, %v2236_v11  ;;  %v2241_v31 = vsub.s32 1, %v2236_v11  ;;  %v2249_v20 = vsub.s32 3, %v2236_v11 }
 0x3d5   : > { %3350 = vrsqrt.f32 %v1823_v26  ;;  %v1683_v45 = vadd.f32 1e-05, %v2947_v62  ;;  %1983 = vmatprep.mubr.f32.mxu0 %v5270_v14  ;;  %2144 = vmatprep.mubr.f32.mxu1 %v5270_v14  ;;  %v4790_v61 = vrot.slane %v2233_v22, %v2237_v51 }
 0x3d6   : > { %v4792_v18 = vrot.slane %v2233_v22, %v2245_v29  ;;  %v4794_v28 = vrot.slane %v2233_v22, %v2241_v31  ;;  %v4796_v5 = vrot.slane %v2233_v22, %v2249_v20 }
 0x3d7   : > { %v3347_v50 = vpop.eup %3346  ;;  %v1828_v0 = vadd.f32 %v3027_v8, %v1683_v45 }
 0x3d8   : > { %1984 = vmatmul.mubr.f32.gmra.mrb[152].mxu0 %v3347_v50  ;;  %2145 = vmatmul.mubr.f32.gmra.mrb[152].mxu1 %v3347_v50 }
 0x3d9   : > { %3352 = vrsqrt.f32 %v1828_v0  ;;  %1989 = vmatprep.mubr.f32.mxu0 %v5270_v14  ;;  %2150 = vmatprep.mubr.f32.mxu1 %v5270_v14 }
 0x3db   : > { %v3349_v34 = vpop.eup %3348 }
 0x3dc   : > { %1990 = vmatmul.mubr.f32.gmra.mrb[154].mxu0 %v3349_v34  ;;  %2151 = vmatmul.mubr.f32.gmra.mrb[154].mxu1 %v3349_v34 }
 0x3dd   : > { %1995 = vmatprep.mubr.f32.mxu0 %v5270_v14  ;;  %2156 = vmatprep.mubr.f32.mxu1 %v5270_v14 }
 0x3df   : > { %v3351_v38 = vpop.eup %3350 }
 0x3e0   : > { %1996 = vmatmul.mubr.f32.gmra.mrb[156].mxu0 %v3351_v38  ;;  %2157 = vmatmul.mubr.f32.gmra.mrb[156].mxu1 %v3351_v38 }
 0x3e1   : > { %2001 = vmatprep.mubr.f32.mxu0 %v5270_v14  ;;  %2162 = vmatprep.mubr.f32.mxu1 %v5270_v14  ;;  %v2319_v14 = vld [vmem:[%s5075_s5] sm:$0xf] }
 0x3e2   : > { %v4799_v48 = vrot.slane %v2319_v14, %v2237_v51  ;;  %v4802_v62 = vrot.slane %v2319_v14, %v2245_v29  ;;  %v4805_v0 = vrot.slane %v2319_v14, %v2241_v31  ;;  %v4808_v38 = vrot.slane %v2319_v14, %v2249_v20 }
 0x3e3   : > { %v3353_v58 = vpop.eup %3352 }
 0x3e4   : > { %2002 = vmatmul.mubr.f32.gmra.mrb[158].mxu0 %v3353_v58  ;;  %2163 = vmatmul.mubr.f32.gmra.mrb[158].mxu1 %v3353_v58 }
 0x47b   : > { %v1913_v56 = vpop.f32.mrb[128].mxu0  ;;  %v2074_v30 = vpop.f32.mrb[128].mxu1 }
 0x47c   : > { %v2169_v39 = vmul.f32 %v1913_v56, %v4402_v36  ;;  %v2171_v26 = vmul.f32 %v2074_v30, %v4405_v3  ;;  %v1915_v8 = vpop.f32.mrb[129].mxu0  ;;  %v2076_v45 = vpop.f32.mrb[129].mxu1 }
 0x47d   : > { %v2170_v50 = vmul.f32 %v1915_v8, %v4408_v12  ;;  %v2172_v34 = vmul.f32 %v2076_v45, %v4411_v41 }
 0x47e   : > { %v2255_v58 = vmul.f32 %v4790_v61, %v2169_v39  ;;  %v2257_v36 = vmul.f32 %v4792_v18, %v2171_v26 }
 0x47f   : > { %v2256_v3 = vmul.f32 %v4794_v28, %v2170_v50  ;;  %v2258_v12 = vmul.f32 %v4796_v5, %v2172_v34  ;;  %v1919_v46 = vpop.f32.mrb[130].mxu0  ;;  %v2080_v41 = vpop.f32.mrb[130].mxu1 }
 0x480   : > { %v2341_v11 = vadd.f32 %v4799_v48, %v2255_v58  ;;  %v2343_v51 = vadd.f32 %v4802_v62, %v2257_v36  ;;  %v2173_v29 = vmul.f32 %v1919_v46, %v4422_v1  ;;  %v2175_v22 = vmul.f32 %v2080_v41, %v4425_v15  ;;  %v1921_v31 = vpop.f32.mrb[131].mxu0  ;;  %v2082_v20 = vpop.f32.mrb[131].mxu1 }
 0x481   : > { %v2342_v14 = vadd.f32 %v4805_v0, %v2256_v3  ;;  %v2344_v56 = vadd.f32 %v4808_v38, %v2258_v12  ;;  %v2174_v30 = vmul.f32 %v1921_v31, %v4428_v37  ;;  %v2176_v39 = vmul.f32 %v2082_v20, %v4431_v43 }
 0x482   : > { %2405 = vst [vmem:[%s4815_s27] sm:$0xff] %v2341_v11  ;;  %2644 = vst [vmem:[%s4815_s27 + $0x10] sm:$0xff] %v2343_v51  ;;  %v2259_v26 = vmul.f32 %v4790_v61, %v2173_v29  ;;  %v2261_v8 = vmul.f32 %v4792_v18, %v2175_v22 }
 0x483   : > { %2643 = vst [vmem:[%s4815_s27 + $0x8] sm:$0xff] %v2342_v14  ;;  %2645 = vst [vmem:[%s4815_s27 + $0x18] sm:$0xff] %v2344_v56  ;;  %v2260_v1 = vmul.f32 %v4794_v28, %v2174_v30  ;;  %v2262_v15 = vmul.f32 %v4796_v5, %v2176_v39  ;;  %v1925_v45 = vpop.f32.mrb[132].mxu0  ;;  %v2086_v50 = vpop.f32.mrb[132].mxu1 }
 0x484   : > { %v2345_v37 = vadd.f32 %v4799_v48, %v2259_v26  ;;  %v2347_v43 = vadd.f32 %v4802_v62, %v2261_v8  ;;  %v2177_v34 = vmul.f32 %v1925_v45, %v4444_v52  ;;  %v2179_v58 = vmul.f32 %v2086_v50, %v4447_v60  ;;  %v1927_v36 = vpop.f32.mrb[133].mxu0  ;;  %v2088_v3 = vpop.f32.mrb[133].mxu1 }
 0x485   : > { %v2346_v12 = vadd.f32 %v4805_v0, %v2260_v1  ;;  %v2348_v46 = vadd.f32 %v4808_v38, %v2262_v15  ;;  %v2178_v41 = vmul.f32 %v1927_v36, %v4452_v6  ;;  %v2180_v11 = vmul.f32 %v2088_v3, %v4455_v2 }
 0x486   : > { %2646 = vst [vmem:[%s4815_s27 + $0x20] sm:$0xff] %v2345_v37  ;;  %2648 = vst [vmem:[%s4815_s27 + $0x30] sm:$0xff] %v2347_v43  ;;  %v2263_v51 = vmul.f32 %v4790_v61, %v2177_v34  ;;  %v2265_v29 = vmul.f32 %v4792_v18, %v2179_v58 }
 0x487   : > { %2647 = vst [vmem:[%s4815_s27 + $0x28] sm:$0xff] %v2346_v12  ;;  %2649 = vst [vmem:[%s4815_s27 + $0x38] sm:$0xff] %v2348_v46  ;;  %v2264_v52 = vmul.f32 %v4794_v28, %v2178_v41  ;;  %v2266_v60 = vmul.f32 %v4796_v5, %v2180_v11  ;;  %v1931_v22 = vpop.f32.mrb[134].mxu0  ;;  %v2092_v31 = vpop.f32.mrb[134].mxu1 }
 0x488   : > { %v2349_v6 = vadd.f32 %v4799_v48, %v2263_v51  ;;  %v2351_v2 = vadd.f32 %v4802_v62, %v2265_v29  ;;  %v2181_v20 = vmul.f32 %v1931_v22, %v4468_v27  ;;  %v2183_v14 = vmul.f32 %v2092_v31, %v4471_v54  ;;  %v1933_v56 = vpop.f32.mrb[135].mxu0  ;;  %v2094_v30 = vpop.f32.mrb[135].mxu1 }
 0x489   : > { %v2350_v39 = vadd.f32 %v4805_v0, %v2264_v52  ;;  %v2352_v26 = vadd.f32 %v4808_v38, %v2266_v60  ;;  %v2182_v8 = vmul.f32 %v1933_v56, %v4476_v24  ;;  %v2184_v1 = vmul.f32 %v2094_v30, %v4479_v49 }
 0x48a   : > { %2650 = vst [vmem:[%s4815_s27 + $0x40] sm:$0xff] %v2349_v6  ;;  %2652 = vst [vmem:[%s4815_s27 + $0x50] sm:$0xff] %v2351_v2  ;;  %v2267_v15 = vmul.f32 %v4790_v61, %v2181_v20  ;;  %v2269_v45 = vmul.f32 %v4792_v18, %v2183_v14 }
 0x48b   : > { %2651 = vst [vmem:[%s4815_s27 + $0x48] sm:$0xff] %v2350_v39  ;;  %2653 = vst [vmem:[%s4815_s27 + $0x58] sm:$0xff] %v2352_v26  ;;  %v2268_v27 = vmul.f32 %v4794_v28, %v2182_v8  ;;  %v2270_v54 = vmul.f32 %v4796_v5, %v2184_v1  ;;  %v1937_v50 = vpop.f32.mrb[136].mxu0  ;;  %v2098_v37 = vpop.f32.mrb[136].mxu1 }
 0x48c   : > { %v2353_v24 = vadd.f32 %v4799_v48, %v2267_v15  ;;  %v2355_v49 = vadd.f32 %v4802_v62, %v2269_v45  ;;  %v2185_v43 = vmul.f32 %v1937_v50, %v4492_v16  ;;  %v2187_v34 = vmul.f32 %v2098_v37, %v4495_v63  ;;  %v1939_v58 = vpop.f32.mrb[137].mxu0  ;;  %v2100_v36 = vpop.f32.mrb[137].mxu1 }
 0x48d   : > { %v2354_v3 = vadd.f32 %v4805_v0, %v2268_v27  ;;  %v2356_v12 = vadd.f32 %v4808_v38, %v2270_v54  ;;  %v2186_v46 = vmul.f32 %v1939_v58, %v4500_v35  ;;  %v2188_v41 = vmul.f32 %v2100_v36, %v4503_v55 }
 0x48e   : > { %2654 = vst [vmem:[%s4815_s27 + $0x60] sm:$0xff] %v2353_v24  ;;  %2656 = vst [vmem:[%s4815_s27 + $0x70] sm:$0xff] %v2355_v49  ;;  %v2271_v11 = vmul.f32 %v4790_v61, %v2185_v43  ;;  %v2273_v51 = vmul.f32 %v4792_v18, %v2187_v34 }
 0x48f   : > { %2655 = vst [vmem:[%s4815_s27 + $0x68] sm:$0xff] %v2354_v3  ;;  %2657 = vst [vmem:[%s4815_s27 + $0x78] sm:$0xff] %v2356_v12  ;;  %v2272_v16 = vmul.f32 %v4794_v28, %v2186_v46  ;;  %v2274_v63 = vmul.f32 %v4796_v5, %v2188_v41  ;;  %v1943_v29 = vpop.f32.mrb[138].mxu0  ;;  %v2104_v52 = vpop.f32.mrb[138].mxu1 }
 0x490   : > { %v2357_v35 = vadd.f32 %v4799_v48, %v2271_v11  ;;  %v2359_v55 = vadd.f32 %v4802_v62, %v2273_v51  ;;  %v2189_v60 = vmul.f32 %v1943_v29, %v4516_v10  ;;  %v2191_v22 = vmul.f32 %v2104_v52, %v4519_v47  ;;  %v1945_v31 = vpop.f32.mrb[139].mxu0  ;;  %v2106_v6 = vpop.f32.mrb[139].mxu1 }
 0x491   : > { %v2358_v2 = vadd.f32 %v4805_v0, %v2272_v16  ;;  %v2360_v20 = vadd.f32 %v4808_v38, %v2274_v63  ;;  %v2190_v14 = vmul.f32 %v1945_v31, %v4524_v44  ;;  %v2192_v56 = vmul.f32 %v2106_v6, %v4527_v33 }
 0x492   : > { %2658 = vst [vmem:[%s4815_s27 + $0x80] sm:$0xff] %v2357_v35  ;;  %2660 = vst [vmem:[%s4815_s27 + $0x90] sm:$0xff] %v2359_v55  ;;  %v2275_v30 = vmul.f32 %v4790_v61, %v2189_v60  ;;  %v2277_v39 = vmul.f32 %v4792_v18, %v2191_v22 }
 0x493   : > { %2659 = vst [vmem:[%s4815_s27 + $0x88] sm:$0xff] %v2358_v2  ;;  %2661 = vst [vmem:[%s4815_s27 + $0x98] sm:$0xff] %v2360_v20  ;;  %v2276_v10 = vmul.f32 %v4794_v28, %v2190_v14  ;;  %v2278_v47 = vmul.f32 %v4796_v5, %v2192_v56  ;;  %v1949_v26 = vpop.f32.mrb[140].mxu0  ;;  %v2110_v8 = vpop.f32.mrb[140].mxu1 }
 0x494   : > { %v2361_v44 = vadd.f32 %v4799_v48, %v2275_v30  ;;  %v2363_v33 = vadd.f32 %v4802_v62, %v2277_v39  ;;  %v2193_v1 = vmul.f32 %v1949_v26, %v4540_v40  ;;  %v2195_v15 = vmul.f32 %v2110_v8, %v4543_v7  ;;  %v1951_v45 = vpop.f32.mrb[141].mxu0  ;;  %v2112_v27 = vpop.f32.mrb[141].mxu1 }
 0x495   : > { %v2362_v54 = vadd.f32 %v4805_v0, %v2276_v10  ;;  %v2364_v50 = vadd.f32 %v4808_v38, %v2278_v47  ;;  %v2194_v37 = vmul.f32 %v1951_v45, %v4548_v25  ;;  %v2196_v24 = vmul.f32 %v2112_v27, %v4551_v57  ;;  %v5377_v45 = vld [vmem:[#allocation12_spill] sm:$0xff] }
 0x496   : > { %2662 = vst [vmem:[%s4815_s27 + $0xa0] sm:$0xff] %v2361_v44  ;;  %2664 = vst [vmem:[%s4815_s27 + $0xb0] sm:$0xff] %v2363_v33  ;;  %v2279_v49 = vmul.f32 %v4790_v61, %v2193_v1  ;;  %v2281_v43 = vmul.f32 %v4792_v18, %v2195_v15 }
 0x497   : > { %2663 = vst [vmem:[%s4815_s27 + $0xa8] sm:$0xff] %v2362_v54  ;;  %2665 = vst [vmem:[%s4815_s27 + $0xb8] sm:$0xff] %v2364_v50  ;;  %v2280_v40 = vmul.f32 %v4794_v28, %v2194_v37  ;;  %v2282_v7 = vmul.f32 %v4796_v5, %v2196_v24  ;;  %v1955_v34 = vpop.f32.mrb[142].mxu0  ;;  %v2116_v58 = vpop.f32.mrb[142].mxu1 }
 0x498   : > { %v2365_v25 = vadd.f32 %v4799_v48, %v2279_v49  ;;  %v2367_v57 = vadd.f32 %v4802_v62, %v2281_v43  ;;  %v2197_v36 = vmul.f32 %v1955_v34, %v4564_v13  ;;  %v2199_v3 = vmul.f32 %v2116_v58, %v4567_v4  ;;  %v1957_v12 = vpop.f32.mrb[143].mxu0  ;;  %v2118_v46 = vpop.f32.mrb[143].mxu1  ;;  %v5378_v43 = vld [vmem:[#allocation5_spill] sm:$0xff] }
 0x499   : > { %v2366_v41 = vadd.f32 %v4805_v0, %v2280_v40  ;;  %v2368_v11 = vadd.f32 %v4808_v38, %v2282_v7  ;;  %v2198_v51 = vmul.f32 %v1957_v12, %v4572_v17  ;;  %v2200_v16 = vmul.f32 %v2118_v46, %v4575_v19  ;;  %v5379_v7 = vld [vmem:[#allocation6_spill] sm:$0xff]  ;;  %v5381_v46 = vld [vmem:[#allocation16_spill] sm:$0xff] }
 0x49a   : > { %2666 = vst [vmem:[%s4815_s27 + $0xc0] sm:$0xff] %v2365_v25  ;;  %2668 = vst [vmem:[%s4815_s27 + $0xd0] sm:$0xff] %v2367_v57  ;;  %v2283_v63 = vmul.f32 %v4790_v61, %v2197_v36  ;;  %v2285_v29 = vmul.f32 %v4792_v18, %v2199_v3  ;;  %v5380_v3 = vld [vmem:[#allocation13_spill] sm:$0xff] }
 0x49b   : > { %2667 = vst [vmem:[%s4815_s27 + $0xc8] sm:$0xff] %v2366_v41  ;;  %2669 = vst [vmem:[%s4815_s27 + $0xd8] sm:$0xff] %v2368_v11  ;;  %v2284_v13 = vmul.f32 %v4794_v28, %v2198_v51  ;;  %v2286_v4 = vmul.f32 %v4796_v5, %v2200_v16  ;;  %v1961_v52 = vpop.f32.mrb[144].mxu0  ;;  %v2122_v35 = vpop.f32.mrb[144].mxu1 }
 0x49c   : > { %v2369_v17 = vadd.f32 %v4799_v48, %v2283_v63  ;;  %v2371_v19 = vadd.f32 %v4802_v62, %v2285_v29  ;;  %v2201_v55 = vmul.f32 %v1961_v52, %v4588_v21  ;;  %v2203_v60 = vmul.f32 %v2122_v35, %v4591_v42  ;;  %v1963_v22 = vpop.f32.mrb[145].mxu0  ;;  %v2124_v31 = vpop.f32.mrb[145].mxu1  ;;  %v5382_v35 = vld [vmem:[#allocation7_spill] sm:$0xff] }
 0x49d   : > { %v2370_v6 = vadd.f32 %v4805_v0, %v2284_v13  ;;  %v2372_v2 = vadd.f32 %v4808_v38, %v2286_v4  ;;  %v2202_v20 = vmul.f32 %v1963_v22, %v4596_v59  ;;  %v2204_v14 = vmul.f32 %v2124_v31, %v4599_v53 }
 0x49e   : > { %2670 = vst [vmem:[%s4815_s27 + $0xe0] sm:$0xff] %v2369_v17  ;;  %2672 = vst [vmem:[%s4815_s27 + $0xf0] sm:$0xff] %v2371_v19  ;;  %v2287_v56 = vmul.f32 %v4790_v61, %v2201_v55  ;;  %v2289_v30 = vmul.f32 %v4792_v18, %v2203_v60  ;;  %v5383_v19 = vld [vmem:[#allocation8_spill] sm:$0xff] }
 0x49f   : > { %2671 = vst [vmem:[%s4815_s27 + $0xe8] sm:$0xff] %v2370_v6  ;;  %2673 = vst [vmem:[%s4815_s27 + $0xf8] sm:$0xff] %v2372_v2  ;;  %v2288_v21 = vmul.f32 %v4794_v28, %v2202_v20  ;;  %v2290_v42 = vmul.f32 %v4796_v5, %v2204_v14  ;;  %v1967_v39 = vpop.f32.mrb[146].mxu0  ;;  %v2128_v10 = vpop.f32.mrb[146].mxu1  ;;  %v5384_v2 = vld [vmem:[#allocation18_spill] sm:$0xff]  ;;  %v5385_v14 = vld [vmem:[#allocation20_spill] sm:$0xff] }
 0x4a0   : > { %v2373_v59 = vadd.f32 %v4799_v48, %v2287_v56  ;;  %v2375_v53 = vadd.f32 %v4802_v62, %v2289_v30  ;;  %v2205_v47 = vmul.f32 %v1967_v39, %v4612_v32  ;;  %v2207_v26 = vmul.f32 %v2128_v10, %v4615_v23  ;;  %v1969_v8 = vpop.f32.mrb[147].mxu0  ;;  %v2130_v44 = vpop.f32.mrb[147].mxu1 }
 0x4a1   : > { %v2374_v33 = vadd.f32 %v4805_v0, %v2288_v21  ;;  %v2376_v1 = vadd.f32 %v4808_v38, %v2290_v42  ;;  %v2206_v15 = vmul.f32 %v1969_v8, %v4618_v9  ;;  %v2208_v27 = vmul.f32 %v2130_v44, %v5377_v45  ;;  %v5387_v44 = vld [vmem:[#allocation10_spill] sm:$0xff] }
 0x4a2   : > { %2674 = vst [vmem:[%s4815_s27 + $0x100] sm:$0xff] %v2373_v59  ;;  %2676 = vst [vmem:[%s4815_s27 + $0x110] sm:$0xff] %v2375_v53  ;;  %v2291_v54 = vmul.f32 %v4790_v61, %v2205_v47  ;;  %v2293_v50 = vmul.f32 %v4792_v18, %v2207_v26  ;;  %v5386_v26 = vld [vmem:[#allocation9_spill] sm:$0xff] }
 0x4a3   : > { %2675 = vst [vmem:[%s4815_s27 + $0x108] sm:$0xff] %v2374_v33  ;;  %2677 = vst [vmem:[%s4815_s27 + $0x118] sm:$0xff] %v2376_v1  ;;  %v2292_v32 = vmul.f32 %v4794_v28, %v2206_v15  ;;  %v2294_v23 = vmul.f32 %v4796_v5, %v2208_v27  ;;  %v1973_v37 = vpop.f32.mrb[148].mxu0  ;;  %v2134_v24 = vpop.f32.mrb[148].mxu1 }
 0x4a4   : > { %v2377_v9 = vadd.f32 %v4799_v48, %v2291_v54  ;;  %v2379_v49 = vadd.f32 %v4802_v62, %v2293_v50  ;;  %v2209_v40 = vmul.f32 %v1973_v37, %v5378_v43  ;;  %v2211_v34 = vmul.f32 %v2134_v24, %v5379_v7  ;;  %v1975_v58 = vpop.f32.mrb[149].mxu0  ;;  %v2136_v25 = vpop.f32.mrb[149].mxu1  ;;  %v5388_v54 = vld [vmem:[#allocation21_spill] sm:$0xff] }
 0x4a5   : > { %v2378_v57 = vadd.f32 %v4805_v0, %v2292_v32  ;;  %v2380_v36 = vadd.f32 %v4808_v38, %v2294_v23  ;;  %v2210_v12 = vmul.f32 %v1975_v58, %v5380_v3  ;;  %v2212_v41 = vmul.f32 %v2136_v25, %v5381_v46  ;;  %v5389_v32 = vld [vmem:[#allocation24_spill] sm:$0xff]  ;;  %v5390_v58 = vld [vmem:[#allocation11_spill] sm:$0xff] }
 0x4a6   : > { %2678 = vst [vmem:[%s4815_s27 + $0x120] sm:$0xff] %v2377_v9  ;;  %2680 = vst [vmem:[%s4815_s27 + $0x130] sm:$0xff] %v2379_v49  ;;  %v2295_v11 = vmul.f32 %v4790_v61, %v2209_v40  ;;  %v2297_v51 = vmul.f32 %v4792_v18, %v2211_v34 }
 0x4a7   : > { %2679 = vst [vmem:[%s4815_s27 + $0x128] sm:$0xff] %v2378_v57  ;;  %2681 = vst [vmem:[%s4815_s27 + $0x138] sm:$0xff] %v2380_v36  ;;  %v2296_v16 = vmul.f32 %v4794_v28, %v2210_v12  ;;  %v2298_v63 = vmul.f32 %v4796_v5, %v2212_v41  ;;  %v1979_v29 = vpop.f32.mrb[150].mxu0  ;;  %v2140_v13 = vpop.f32.mrb[150].mxu1  ;;  %v5391_v57 = vld [vmem:[#allocation14_spill] sm:$0xff] }
 0x4a8   : > { %v2381_v4 = vadd.f32 %v4799_v48, %v2295_v11  ;;  %v2383_v52 = vadd.f32 %v4802_v62, %v2297_v51  ;;  %v2213_v17 = vmul.f32 %v1979_v29, %v5382_v35  ;;  %v2215_v55 = vmul.f32 %v2140_v13, %v5383_v19  ;;  %v1981_v60 = vpop.f32.mrb[151].mxu0  ;;  %v2142_v22 = vpop.f32.mrb[151].mxu1  ;;  %v5392_v11 = vld [vmem:[#allocation26_spill] sm:$0xff] }
 0x4a9   : > { %v2382_v31 = vadd.f32 %v4805_v0, %v2296_v16  ;;  %v2384_v6 = vadd.f32 %v4808_v38, %v2298_v63  ;;  %v2214_v20 = vmul.f32 %v1981_v60, %v5384_v2  ;;  %v2216_v56 = vmul.f32 %v2142_v22, %v5385_v14  ;;  %v5393_v16 = vld [vmem:[#allocation28_spill] sm:$0xff]  ;;  %v5394_v60 = vld [vmem:[#allocation15_spill] sm:$0xff] }
 0x4aa   : > { %2682 = vst [vmem:[%s4815_s27 + $0x140] sm:$0xff] %v2381_v4  ;;  %2684 = vst [vmem:[%s4815_s27 + $0x150] sm:$0xff] %v2383_v52  ;;  %v2299_v30 = vmul.f32 %v4790_v61, %v2213_v17  ;;  %v2301_v21 = vmul.f32 %v4792_v18, %v2215_v55 }
 0x4ab   : > { %2683 = vst [vmem:[%s4815_s27 + $0x148] sm:$0xff] %v2382_v31  ;;  %2685 = vst [vmem:[%s4815_s27 + $0x158] sm:$0xff] %v2384_v6  ;;  %v2300_v42 = vmul.f32 %v4794_v28, %v2214_v20  ;;  %v2302_v39 = vmul.f32 %v4796_v5, %v2216_v56  ;;  %v1985_v10 = vpop.f32.mrb[152].mxu0  ;;  %v2146_v59 = vpop.f32.mrb[152].mxu1  ;;  %v5395_v31 = vld [vmem:[#allocation17_spill] sm:$0xff] }
 0x4ac   : > { %v2385_v53 = vadd.f32 %v4799_v48, %v2299_v30  ;;  %v2387_v47 = vadd.f32 %v4802_v62, %v2301_v21  ;;  %v2217_v8 = vmul.f32 %v1985_v10, %v5386_v26  ;;  %v2219_v33 = vmul.f32 %v2146_v59, %v5387_v44  ;;  %v1987_v1 = vpop.f32.mrb[153].mxu0  ;;  %v2148_v15 = vpop.f32.mrb[153].mxu1  ;;  %v5396_v30 = vld [vmem:[#allocation29_spill] sm:$0xff] }
 0x4ad   : > { %v2386_v45 = vadd.f32 %v4805_v0, %v2300_v42  ;;  %v2388_v27 = vadd.f32 %v4808_v38, %v2302_v39  ;;  %v2218_v50 = vmul.f32 %v1987_v1, %v5388_v54  ;;  %v2220_v23 = vmul.f32 %v2148_v15, %v5389_v32  ;;  %v5397_v42 = vld [vmem:[#allocation32_spill] sm:$0xff]  ;;  %v5398_v1 = vld [vmem:[#allocation19_spill] sm:$0xff] }
 0x4ae   : > { %2686 = vst [vmem:[%s4815_s27 + $0x160] sm:$0xff] %v2385_v53  ;;  %2688 = vst [vmem:[%s4815_s27 + $0x170] sm:$0xff] %v2387_v47  ;;  %v2303_v37 = vmul.f32 %v4790_v61, %v2217_v8  ;;  %v2305_v24 = vmul.f32 %v4792_v18, %v2219_v33 }
 0x4af   : > { %2687 = vst [vmem:[%s4815_s27 + $0x168] sm:$0xff] %v2386_v45  ;;  %2689 = vst [vmem:[%s4815_s27 + $0x178] sm:$0xff] %v2388_v27  ;;  %v2304_v9 = vmul.f32 %v4794_v28, %v2218_v50  ;;  %v2306_v49 = vmul.f32 %v4796_v5, %v2220_v23  ;;  %v1991_v43 = vpop.f32.mrb[154].mxu0  ;;  %v2152_v40 = vpop.f32.mrb[154].mxu1  ;;  %v5399_v45 = vld [vmem:[#allocation22_spill] sm:$0xff] }
 0x4b0   : > { %v2389_v7 = vadd.f32 %v4799_v48, %v2303_v37  ;;  %v2391_v34 = vadd.f32 %v4802_v62, %v2305_v24  ;;  %v2221_v25 = vmul.f32 %v1991_v43, %v5390_v58  ;;  %v2223_v36 = vmul.f32 %v2152_v40, %v5391_v57  ;;  %v1993_v3 = vpop.f32.mrb[155].mxu0  ;;  %v2154_v12 = vpop.f32.mrb[155].mxu1  ;;  %v5400_v37 = vld [vmem:[#allocation34_spill] sm:$0xff] }
 0x4b1   : > { %v2390_v46 = vadd.f32 %v4805_v0, %v2304_v9  ;;  %v2392_v41 = vadd.f32 %v4808_v38, %v2306_v49  ;;  %v2222_v51 = vmul.f32 %v1993_v3, %v5392_v11  ;;  %v2224_v63 = vmul.f32 %v2154_v12, %v5393_v16  ;;  %v5401_v9 = vld [vmem:[#allocation36_spill] sm:$0xff] }
 0x4b2   : > { %2690 = vst [vmem:[%s4815_s27 + $0x180] sm:$0xff] %v2389_v7  ;;  %2692 = vst [vmem:[%s4815_s27 + $0x190] sm:$0xff] %v2391_v34  ;;  %v2307_v29 = vmul.f32 %v4790_v61, %v2221_v25  ;;  %v2309_v13 = vmul.f32 %v4792_v18, %v2223_v36 }
 0x4b3   : > { %2691 = vst [vmem:[%s4815_s27 + $0x188] sm:$0xff] %v2390_v46  ;;  %2693 = vst [vmem:[%s4815_s27 + $0x198] sm:$0xff] %v2392_v41  ;;  %v2308_v4 = vmul.f32 %v4794_v28, %v2222_v51  ;;  %v2310_v52 = vmul.f32 %v4796_v5, %v2224_v63  ;;  %v1997_v35 = vpop.f32.mrb[156].mxu0  ;;  %v2158_v17 = vpop.f32.mrb[156].mxu1 }
 0x4b4   : > { %v2393_v19 = vadd.f32 %v4799_v48, %v2307_v29  ;;  %v2395_v55 = vadd.f32 %v4802_v62, %v2309_v13  ;;  %v2225_v22 = vmul.f32 %v1997_v35, %v5394_v60  ;;  %v2227_v6 = vmul.f32 %v2158_v17, %v5395_v31  ;;  %v1999_v2 = vpop.f32.mrb[157].mxu0  ;;  %v2160_v20 = vpop.f32.mrb[157].mxu1 }
 0x4b5   : > { %v2394_v14 = vadd.f32 %v4805_v0, %v2308_v4  ;;  %v2396_v56 = vadd.f32 %v4808_v38, %v2310_v52  ;;  %v2226_v21 = vmul.f32 %v1999_v2, %v5396_v30  ;;  %v2228_v39 = vmul.f32 %v2160_v20, %v5397_v42 }
 0x4b6   : > { %2694 = vst [vmem:[%s4815_s27 + $0x1a0] sm:$0xff] %v2393_v19  ;;  %2696 = vst [vmem:[%s4815_s27 + $0x1b0] sm:$0xff] %v2395_v55  ;;  %v2311_v10 = vmul.f32 %v4790_v61, %v2225_v22  ;;  %v2313_v59 = vmul.f32 %v4792_v18, %v2227_v6 }
 0x4b7   : > { %2695 = vst [vmem:[%s4815_s27 + $0x1a8] sm:$0xff] %v2394_v14  ;;  %2697 = vst [vmem:[%s4815_s27 + $0x1b8] sm:$0xff] %v2396_v56  ;;  %v2312_v53 = vmul.f32 %v4794_v28, %v2226_v21  ;;  %v2314_v47 = vmul.f32 %v4796_v5, %v2228_v39  ;;  %v2003_v26 = vpop.f32.mrb[158].mxu0  ;;  %v2164_v8 = vpop.f32.mrb[158].mxu1 }
 0x4b8   : > { %v2397_v44 = vadd.f32 %v4799_v48, %v2311_v10  ;;  %v2399_v33 = vadd.f32 %v4802_v62, %v2313_v59  ;;  %v2229_v15 = vmul.f32 %v2003_v26, %v5398_v1  ;;  %v2231_v27 = vmul.f32 %v2164_v8, %v5399_v45  ;;  %v2005_v54 = vpop.f32.mrb[159].mxu0  ;;  %v2166_v50 = vpop.f32.mrb[159].mxu1 }
 0x4b9   : > { %v2398_v32 = vadd.f32 %v4805_v0, %v2312_v53  ;;  %v2400_v23 = vadd.f32 %v4808_v38, %v2314_v47  ;;  %v2230_v24 = vmul.f32 %v2005_v54, %v5400_v37  ;;  %v2232_v49 = vmul.f32 %v2166_v50, %v5401_v9 }
 0x4ba   : > { %2698 = vst [vmem:[%s4815_s27 + $0x1c0] sm:$0xff] %v2397_v44  ;;  %2700 = vst [vmem:[%s4815_s27 + $0x1d0] sm:$0xff] %v2399_v33  ;;  %v2315_v43 = vmul.f32 %v4790_v61, %v2229_v15  ;;  %v2317_v40 = vmul.f32 %v4792_v18, %v2231_v27 }
 0x4bb   : > { %2699 = vst [vmem:[%s4815_s27 + $0x1c8] sm:$0xff] %v2398_v32  ;;  %2701 = vst [vmem:[%s4815_s27 + $0x1d8] sm:$0xff] %v2400_v23  ;;  %v2316_v7 = vmul.f32 %v4794_v28, %v2230_v24  ;;  %v2318_v34 = vmul.f32 %v4796_v5, %v2232_v49 }
 0x4bc   : > { %v2401_v58 = vadd.f32 %v4799_v48, %v2315_v43  ;;  %v2403_v25 = vadd.f32 %v4802_v62, %v2317_v40 }
 0x4bd   : > { %v2402_v57 = vadd.f32 %v4805_v0, %v2316_v7  ;;  %v2404_v36 = vadd.f32 %v4808_v38, %v2318_v34 }
 0x4be   : > { %2702 = vst [vmem:[%s4815_s27 + $0x1e0] sm:$0xff] %v2401_v58  ;;  %2704 = vst [vmem:[%s4815_s27 + $0x1f0] sm:$0xff] %v2403_v25 }
 0x4bf   : > { %2703 = vst [vmem:[%s4815_s27 + $0x1e8] sm:$0xff] %v2402_v57  ;;  %2705 = vst [vmem:[%s4815_s27 + $0x1f8] sm:$0xff] %v2404_v36 }
 0x4c0 PF: > { %s17_s21 = sadd.s32 1, %s3392_s21  }
 0x4c1   : > { %p14_p5 = scmp.ge.s32.totalorder %s17_s21, 4  }
 0x4c3   :  { %16 = sbr.rel (!%p14_p5) target bundleno = 1 (0x1), region = 142 }
 0x4ca   :  { %2554 = vsyncpa [#allocation3], 1 }
 0x4cb   :  { %2556 = vsyncpa [#allocation3 + $0x1], 1 }

</bundles_post_ra>
